<compile_context>
chip_gen: v7x
topology: tpu7x:2x2x1
jax: 0.10.0
libtpu: 0.0.40
codegen_flags: <defaults>
</compile_context>

<pallas_src>
import functools

import jax
import jax.numpy as jnp
from jax.experimental import pallas as pl
from jax.experimental.pallas import tpu as pltpu


def _sigmoid(v):
    # Exact sigmoid: the attention maps multiply the whole feature map, and
    # these arrays are tiny, so the exact reciprocal is essentially free.
    return 1.0 / (1.0 + jnp.exp(-v))


def sdab_kernel(x_ref, m_ref, w1_ref, b1_ref, w2_ref, b2_ref,
                wc1t_ref, wc2_ref, ws_ref, o_ref, ca_ref, *, W, HW, b_blk):
    # x_ref / o_ref / ca_ref: (C, b_blk*HW) lane-dense slabs.
    C, Ntot = x_ref.shape
    f32 = jnp.float32
    bf16 = jnp.bfloat16

    # Flattened lane shift for each 3x3 tap t = dy*3 + dx.
    shifts = [(dy - 1) * W + (dx - 1) for dy in range(3) for dx in range(3)]

    def tap_roll(a, t):
        """roll `a` (R, Ntot) so position p sees p+shift, then zero every lane
        whose neighbour falls outside its own image (SAME padding)."""
        s = shifts[t]
        if s == 0:
            return a
        r = pltpu.roll(a, (-s) % Ntot, axis=1)        # XLU lane roll
        return r * m_ref[t]                           # (1, Ntot) edge mask

    def conv3x3(a_bf, wstack_ref, bias_ref):
        """3x3 SAME conv as ONE bf16 MXU matmul + 9 roll/mask accumulations.
        a_bf: (C, Ntot) bf16; wstack_ref: (9C, C) bf16; bias_ref: (C, 1) f32.
        Y[t*C + co, p] = sum_ci w[co, ci, dy, dx] * a[ci, p]; rolling Y_t by
        the tap shift and masking is exactly the zero-padded conv."""
        y = jnp.dot(wstack_ref[...], a_bf, preferred_element_type=f32)
        acc = y[4 * C:5 * C, :]                       # center tap: no roll/mask
        for t in range(9):
            if t == 4:
                continue
            acc = acc + tap_roll(y[t * C:(t + 1) * C, :], t)
        return acc + bias_ref[...]

    x_f32 = x_ref[...].astype(f32)

    # ---- head1: conv3x3 -> ReLU -> conv3x3 (whole batch block at once) ----
    h = jnp.maximum(conv3x3(x_ref[...].astype(bf16), w1_ref, b1_ref), 0.0)
    h = conv3x3(h.astype(bf16), w2_ref, b2_ref)       # (C, Ntot) f32
    ca_ref[...] = h                                   # park in VMEM scratch

    # ---- channel attention: per-image spatial mean -> tiny FCs -> scale ----
    wc1t = wc1t_ref[...]                              # (C, Cr)
    wc2 = wc2_ref[...]                                # (C, Cr)
    for b in range(b_blk):                            # tiny per-image work only
        lo, hi = b * HW, (b + 1) * HW                 # lane-aligned static slice
        hb = ca_ref[:, lo:hi]                         # (C, HW)
        avg = jnp.mean(hb, axis=1, keepdims=True)                         # (C, 1)
        s = jnp.maximum(jnp.sum(wc1t * avg, axis=0, keepdims=True), 0.0)  # (1, Cr)
        cs = _sigmoid(jnp.sum(wc2 * s, axis=1, keepdims=True))            # (C, 1)
        ca_ref[:, lo:hi] = hb * cs

    ca = ca_ref[...]                                  # (C, Ntot) f32

    # ---- spatial attention: channel max/mean -> 3x3 conv -> sigmoid ----
    maxc = jnp.max(ca, axis=0, keepdims=True)         # (1, Ntot)
    meanc = jnp.mean(ca, axis=0, keepdims=True)       # (1, Ntot)
    # Combine the two input channels with their scalar weights BEFORE the
    # roll (commutes with the per-lane roll+mask): 9 rolls instead of 18.
    sc = ws_ref[8] * maxc + ws_ref[9] * meanc         # center tap (t = 4)
    for t in range(9):
        if t == 4:
            continue
        z = ws_ref[2 * t] * maxc + ws_ref[2 * t + 1] * meanc
        sc = sc + tap_roll(z, t)
    sa = _sigmoid(sc)                                 # (1, Ntot)

    # ---- residual + store (lane-dense, unmasked) ----
    o_ref[...] = (ca * sa + x_f32).astype(o_ref.dtype)


def _vmem_budget_bytes():
    # Conservative per-grid-step VMEM budget for sizing the batch block.
    try:
        cap = int(pltpu.get_tpu_info().vmem_capacity_bytes)
        return min(cap // 4, 24 * 1024 * 1024)
    except Exception:
        return 12 * 1024 * 1024


def _num_tensorcores():
    # TensorCores sharing the grid via "parallel" semantics (v7x/megacore: 2).
    try:
        dev = jax.devices()[0]
        nc = getattr(dev, "num_cores", None)
        if nc:
            return max(1, int(nc))
        kind = (getattr(dev, "device_kind", "") or "").lower()
        if any(v in kind for v in ("v7", "v5p", "v4")):
            return 2
    except Exception:
        pass
    return 1


def _pick_batch_block(n, c, hw):
    """Images per grid step: as many as VMEM allows; on single-TC chips take
    the whole batch in one step, on multi-TC chips keep one step per core."""
    per_image = 16 * c * hw * 4          # conv temp (9C rows) + x/h/ca/out, f32
    cap = max(1, _vmem_budget_bytes() // per_image)
    cores = _num_tensorcores()
    if cores > 1:
        cap = min(cap, max(1, n // cores))
    cap = min(cap, n)
    for d in range(cap, 0, -1):          # largest divisor of n that fits
        if n % d == 0:
            return d
    return 1


@jax.jit
def sdab_forward(x, w1, b1, w2, b2, wc1, wc2, ws):
    """x: (N, C, H, W) NCHW.  Weights in PyTorch layouts:
       w1, w2: (C, C, 3, 3); b1, b2: (C,);
       wc1: (C//r, C, 1, 1); wc2: (C, C//r, 1, 1); ws: (1, 2, 3, 3)."""
    N, C, H, W = x.shape
    HW = H * W
    Cr = wc1.shape[0]

    b_blk = _pick_batch_block(N, C, HW)
    Ntot = b_blk * HW

    # Weight-stacked conv layout: row block t holds the (C_out, C_in) slice of
    # tap t = dy*3+dx.  bf16 for the MXU, f32 accumulate in-kernel.
    w1s = jnp.transpose(w1, (2, 3, 0, 1)).reshape(9 * C, C).astype(jnp.bfloat16)
    w2s = jnp.transpose(w2, (2, 3, 0, 1)).reshape(9 * C, C).astype(jnp.bfloat16)
    b1c = b1.reshape(C, 1).astype(jnp.float32)
    b2c = b2.reshape(C, 1).astype(jnp.float32)
    wc1t = jnp.transpose(wc1.reshape(Cr, C)).astype(jnp.float32)   # (C, Cr)
    wc2_2d = wc2.reshape(C, Cr).astype(jnp.float32)                # (C, Cr)
    ws_flat = jnp.transpose(ws, (0, 2, 3, 1)).reshape(-1).astype(jnp.float32)  # (18,)

    # Per-image SAME-padding validity masks for the 9 taps, tiled across the
    # b_blk images of a slab so cross-image lane rolls are zeroed: (9,1,Ntot).
    yy, xx = jnp.meshgrid(jnp.arange(H), jnp.arange(W), indexing="ij")
    rows = []
    for dy in range(3):
        for dx in range(3):
            sy, sx = dy - 1, dx - 1
            valid = ((yy + sy >= 0) & (yy + sy < H) &
                     (xx + sx >= 0) & (xx + sx < W))
            rows.append(valid.reshape(1, HW))
    masks = jnp.stack(rows, axis=0).astype(jnp.float32)            # (9, 1, HW)
    masks = jnp.tile(masks, (1, 1, b_blk))                         # (9, 1, Ntot)

    # Lane-dense slab: (C, N*HW), images concatenated along lanes.
    x_slab = jnp.transpose(x.reshape(N, C, HW), (1, 0, 2)).reshape(C, N * HW)

    grid = (N // b_blk,)
    kernel = functools.partial(sdab_kernel, W=W, HW=HW, b_blk=b_blk)

    out = pl.pallas_call(
        kernel,
        out_shape=jax.ShapeDtypeStruct((C, N * HW), x.dtype),
        grid_spec=pltpu.PrefetchScalarGridSpec(
            num_scalar_prefetch=0,
            grid=grid,
            in_specs=[
                pl.BlockSpec((C, Ntot), lambda n: (0, n)),           # x slab
                pl.BlockSpec((9, 1, Ntot), lambda n: (0, 0, 0)),     # edge masks
                pl.BlockSpec((9 * C, C), lambda n: (0, 0)),          # w1 stacked (bf16)
                pl.BlockSpec((C, 1), lambda n: (0, 0)),              # b1
                pl.BlockSpec((9 * C, C), lambda n: (0, 0)),          # w2 stacked (bf16)
                pl.BlockSpec((C, 1), lambda n: (0, 0)),              # b2
                pl.BlockSpec((C, Cr), lambda n: (0, 0)),             # wc1^T
                pl.BlockSpec((C, Cr), lambda n: (0, 0)),             # wc2
                pl.BlockSpec(memory_space=pltpu.MemorySpace.SMEM),   # ws (18,)
            ],
            out_specs=pl.BlockSpec((C, Ntot), lambda n: (0, n)),
            scratch_shapes=[pltpu.VMEM((C, Ntot), jnp.float32)],     # ca slab
        ),
        compiler_params=pltpu.CompilerParams(
            dimension_semantics=("parallel",),
            vmem_limit_bytes=32 * 1024 * 1024),
    )(x_slab, masks, w1s, b1c, w2s, b2c, wc1t, wc2_2d, ws_flat)

    return jnp.transpose(out.reshape(C, N, HW), (1, 0, 2)).reshape(N, C, H, W)


def sdab_reference(x, w1, b1, w2, b2, wc1, wc2, ws):
    """Pure-JAX NCHW reference, mirrors the PyTorch module exactly."""
    dn = ("NCHW", "OIHW", "NCHW")
    conv = functools.partial(jax.lax.conv_general_dilated,
                             window_strides=(1, 1), dimension_numbers=dn)
    h = conv(x, w1, padding="SAME") + b1.reshape(1, -1, 1, 1)
    h = jnp.maximum(h, 0.0)
    h = conv(h, w2, padding="SAME") + b2.reshape(1, -1, 1, 1)
    # channel attention
    avg = jnp.mean(h, axis=(2, 3), keepdims=True)               # (N, C, 1, 1)
    s = jnp.maximum(conv(avg, wc1, padding="VALID"), 0.0)
    s = jax.nn.sigmoid(conv(s, wc2, padding="VALID"))
    h = h * s
    # spatial attention: torch.cat((max, mean), dim=1)
    comp = jnp.concatenate([jnp.max(h, axis=1, keepdims=True),
                            jnp.mean(h, axis=1, keepdims=True)], axis=1)
    sc = jax.nn.sigmoid(conv(comp, ws, padding="SAME"))
    return h * sc + x


if __name__ == "__main__":
    N, C, H, W = 2, 32, 16, 16          # n_feat = 32
    reduction = 16
    Cr = C // reduction                  # = 2

    key = jax.random.PRNGKey(0)
    ks = jax.random.split(key, 8)
    # Parameters in PyTorch layouts.
    w1 = jax.random.normal(ks[0], (C, C, 3, 3), jnp.float32) * 0.05
    b1 = jax.random.normal(ks[1], (C,), jnp.float32) * 0.05
    w2 = jax.random.normal(ks[2], (C, C, 3, 3), jnp.float32) * 0.05
    b2 = jax.random.normal(ks[3], (C,), jnp.float32) * 0.05
    wc1 = jax.random.normal(ks[4], (Cr, C, 1, 1), jnp.float32) * 0.1
    wc2 = jax.random.normal(ks[5], (C, Cr, 1, 1), jnp.float32) * 0.1
    ws = jax.random.normal(ks[6], (1, 2, 3, 3), jnp.float32) * 0.1
    x = jax.random.normal(ks[7], (N, C, H, W), jnp.float32)      # NCHW input

    out = jax.block_until_ready(sdab_forward(x, w1, b1, w2, b2, wc1, wc2, ws))
    ref = jax.block_until_ready(sdab_reference(x, w1, b1, w2, b2, wc1, wc2, ws))

    assert out.shape == (N, C, H, W)
    err = float(jnp.max(jnp.abs(out - ref)))
    # bf16 MXU conv inputs (f32 accumulation) -> slightly looser tolerance.
    assert jnp.allclose(out, ref, atol=3e-2, rtol=3e-2), err

    print("KERNEL_OK")
</pallas_src>

<mosaic_0001>
module attributes {stable_mosaic.version = 11 : i64} {
  func.func @sdab_kernel(%arg0: i32, %arg1: memref<32x512xf32, #tpu.memory_space<vmem>>, %arg2: memref<9x1x512xf32, #tpu.memory_space<vmem>>, %arg3: memref<288x32xbf16, #tpu.memory_space<vmem>>, %arg4: memref<32x1xf32, #tpu.memory_space<vmem>>, %arg5: memref<288x32xbf16, #tpu.memory_space<vmem>>, %arg6: memref<32x1xf32, #tpu.memory_space<vmem>>, %arg7: memref<32x2xf32, #tpu.memory_space<vmem>>, %arg8: memref<32x2xf32, #tpu.memory_space<vmem>>, %arg9: memref<18xf32, #tpu.memory_space<smem>>, %arg10: memref<32x512xf32, #tpu.memory_space<vmem>>, %arg11: memref<32x512xf32, #tpu.memory_space<vmem>>) attributes {dimension_semantics = [#tpu.dimension_semantics<parallel>], iteration_bounds = array<i64: 1>, scalar_prefetch = 0 : i64, scratch_operands = 1 : i64, tpu.core_type = #tpu.core_type<tc>, window_params = [{transform_indices = @transform_0, window_bounds = array<i64: 32, 512>}, {pipeline_mode = #tpu.pipeline_mode<synchronous>, transform_indices = @transform_1, window_bounds = array<i64: 9, 1, 512>}, {pipeline_mode = #tpu.pipeline_mode<synchronous>, transform_indices = @transform_2, window_bounds = array<i64: 288, 32>}, {pipeline_mode = #tpu.pipeline_mode<synchronous>, transform_indices = @transform_3, window_bounds = array<i64: 32, 1>}, {pipeline_mode = #tpu.pipeline_mode<synchronous>, transform_indices = @transform_4, window_bounds = array<i64: 288, 32>}, {pipeline_mode = #tpu.pipeline_mode<synchronous>, transform_indices = @transform_5, window_bounds = array<i64: 32, 1>}, {pipeline_mode = #tpu.pipeline_mode<synchronous>, transform_indices = @transform_6, window_bounds = array<i64: 32, 2>}, {pipeline_mode = #tpu.pipeline_mode<synchronous>, transform_indices = @transform_7, window_bounds = array<i64: 32, 2>}, {transform_indices = @transform_8, window_bounds = array<i64: 18>}, {transform_indices = @transform_9, window_bounds = array<i64: 32, 512>}]} {
    %c0 = arith.constant 0 : index
    %c0_0 = arith.constant 0 : index
    %0 = vector.load %arg1[%c0, %c0_0] : memref<32x512xf32, #tpu.memory_space<vmem>>, vector<32x512xf32>
    %c0_1 = arith.constant 0 : index
    %c0_2 = arith.constant 0 : index
    %1 = vector.load %arg1[%c0_1, %c0_2] : memref<32x512xf32, #tpu.memory_space<vmem>>, vector<32x512xf32>
    %2 = arith.truncf %1 : vector<32x512xf32> to vector<32x512xbf16>
    %c0_3 = arith.constant 0 : index
    %c0_4 = arith.constant 0 : index
    %3 = vector.load %arg3[%c0_3, %c0_4] : memref<288x32xbf16, #tpu.memory_space<vmem>>, vector<288x32xbf16>
    %cst = arith.constant dense<0.000000e+00> : vector<288x512xf32>
    %4 = tpu.matmul %3, %2, %cst {dimension_numbers = #tpu.dot_dimension_numbers<[1], [0], [0], [1], [0, 0, 1, 1], [], []>} : vector<288x32xbf16>, vector<32x512xbf16>, vector<288x512xf32> -> vector<288x512xf32>
    %5 = vector.extract_strided_slice %4 {offsets = [128, 0], sizes = [32, 512], strides = [1, 1]} : vector<288x512xf32> to vector<32x512xf32>
    %6 = vector.extract_strided_slice %4 {offsets = [0, 0], sizes = [32, 512], strides = [1, 1]} : vector<288x512xf32> to vector<32x512xf32>
    %c17_i32 = arith.constant 17 : i32
    %7 = tpu.dynamic_rotate %6 by %c17_i32 dim 1 : vector<32x512xf32>, i32 -> vector<32x512xf32>
    %c0_5 = arith.constant 0 : index
    %c0_6 = arith.constant 0 : index
    %c0_7 = arith.constant 0 : index
    %8 = vector.load %arg2[%c0_5, %c0_6, %c0_7] : memref<9x1x512xf32, #tpu.memory_space<vmem>>, vector<1x1x512xf32>
    %9 = vector.shape_cast %8 : vector<1x1x512xf32> to vector<1x512xf32>
    %10 = vector.broadcast %9 : vector<1x512xf32> to vector<32x512xf32>
    %11 = arith.mulf %7, %10 : vector<32x512xf32>
    %12 = arith.addf %5, %11 : vector<32x512xf32>
    %13 = vector.extract_strided_slice %4 {offsets = [32, 0], sizes = [32, 512], strides = [1, 1]} : vector<288x512xf32> to vector<32x512xf32>
    %c16_i32 = arith.constant 16 : i32
    %14 = tpu.dynamic_rotate %13 by %c16_i32 dim 1 : vector<32x512xf32>, i32 -> vector<32x512xf32>
    %c1 = arith.constant 1 : index
    %c0_8 = arith.constant 0 : index
    %c0_9 = arith.constant 0 : index
    %15 = vector.load %arg2[%c1, %c0_8, %c0_9] : memref<9x1x512xf32, #tpu.memory_space<vmem>>, vector<1x1x512xf32>
    %16 = vector.shape_cast %15 : vector<1x1x512xf32> to vector<1x512xf32>
    %17 = vector.broadcast %16 : vector<1x512xf32> to vector<32x512xf32>
    %18 = arith.mulf %14, %17 : vector<32x512xf32>
    %19 = arith.addf %12, %18 : vector<32x512xf32>
    %20 = vector.extract_strided_slice %4 {offsets = [64, 0], sizes = [32, 512], strides = [1, 1]} : vector<288x512xf32> to vector<32x512xf32>
    %c15_i32 = arith.constant 15 : i32
    %21 = tpu.dynamic_rotate %20 by %c15_i32 dim 1 : vector<32x512xf32>, i32 -> vector<32x512xf32>
    %c2 = arith.constant 2 : index
    %c0_10 = arith.constant 0 : index
    %c0_11 = arith.constant 0 : index
    %22 = vector.load %arg2[%c2, %c0_10, %c0_11] : memref<9x1x512xf32, #tpu.memory_space<vmem>>, vector<1x1x512xf32>
    %23 = vector.shape_cast %22 : vector<1x1x512xf32> to vector<1x512xf32>
    %24 = vector.broadcast %23 : vector<1x512xf32> to vector<32x512xf32>
    %25 = arith.mulf %21, %24 : vector<32x512xf32>
    %26 = arith.addf %19, %25 : vector<32x512xf32>
    %27 = vector.extract_strided_slice %4 {offsets = [96, 0], sizes = [32, 512], strides = [1, 1]} : vector<288x512xf32> to vector<32x512xf32>
    %c1_i32 = arith.constant 1 : i32
    %28 = tpu.dynamic_rotate %27 by %c1_i32 dim 1 : vector<32x512xf32>, i32 -> vector<32x512xf32>
    %c3 = arith.constant 3 : index
    %c0_12 = arith.constant 0 : index
    %c0_13 = arith.constant 0 : index
    %29 = vector.load %arg2[%c3, %c0_12, %c0_13] : memref<9x1x512xf32, #tpu.memory_space<vmem>>, vector<1x1x512xf32>
    %30 = vector.shape_cast %29 : vector<1x1x512xf32> to vector<1x512xf32>
    %31 = vector.broadcast %30 : vector<1x512xf32> to vector<32x512xf32>
    %32 = arith.mulf %28, %31 : vector<32x512xf32>
    %33 = arith.addf %26, %32 : vector<32x512xf32>
    %34 = vector.extract_strided_slice %4 {offsets = [160, 0], sizes = [32, 512], strides = [1, 1]} : vector<288x512xf32> to vector<32x512xf32>
    %c511_i32 = arith.constant 511 : i32
    %35 = tpu.dynamic_rotate %34 by %c511_i32 dim 1 : vector<32x512xf32>, i32 -> vector<32x512xf32>
    %c5 = arith.constant 5 : index
    %c0_14 = arith.constant 0 : index
    %c0_15 = arith.constant 0 : index
    %36 = vector.load %arg2[%c5, %c0_14, %c0_15] : memref<9x1x512xf32, #tpu.memory_space<vmem>>, vector<1x1x512xf32>
    %37 = vector.shape_cast %36 : vector<1x1x512xf32> to vector<1x512xf32>
    %38 = vector.broadcast %37 : vector<1x512xf32> to vector<32x512xf32>
    %39 = arith.mulf %35, %38 : vector<32x512xf32>
    %40 = arith.addf %33, %39 : vector<32x512xf32>
    %41 = vector.extract_strided_slice %4 {offsets = [192, 0], sizes = [32, 512], strides = [1, 1]} : vector<288x512xf32> to vector<32x512xf32>
    %c497_i32 = arith.constant 497 : i32
    %42 = tpu.dynamic_rotate %41 by %c497_i32 dim 1 : vector<32x512xf32>, i32 -> vector<32x512xf32>
    %c6 = arith.constant 6 : index
    %c0_16 = arith.constant 0 : index
    %c0_17 = arith.constant 0 : index
    %43 = vector.load %arg2[%c6, %c0_16, %c0_17] : memref<9x1x512xf32, #tpu.memory_space<vmem>>, vector<1x1x512xf32>
    %44 = vector.shape_cast %43 : vector<1x1x512xf32> to vector<1x512xf32>
    %45 = vector.broadcast %44 : vector<1x512xf32> to vector<32x512xf32>
    %46 = arith.mulf %42, %45 : vector<32x512xf32>
    %47 = arith.addf %40, %46 : vector<32x512xf32>
    %48 = vector.extract_strided_slice %4 {offsets = [224, 0], sizes = [32, 512], strides = [1, 1]} : vector<288x512xf32> to vector<32x512xf32>
    %c496_i32 = arith.constant 496 : i32
    %49 = tpu.dynamic_rotate %48 by %c496_i32 dim 1 : vector<32x512xf32>, i32 -> vector<32x512xf32>
    %c7 = arith.constant 7 : index
    %c0_18 = arith.constant 0 : index
    %c0_19 = arith.constant 0 : index
    %50 = vector.load %arg2[%c7, %c0_18, %c0_19] : memref<9x1x512xf32, #tpu.memory_space<vmem>>, vector<1x1x512xf32>
    %51 = vector.shape_cast %50 : vector<1x1x512xf32> to vector<1x512xf32>
    %52 = vector.broadcast %51 : vector<1x512xf32> to vector<32x512xf32>
    %53 = arith.mulf %49, %52 : vector<32x512xf32>
    %54 = arith.addf %47, %53 : vector<32x512xf32>
    %55 = vector.extract_strided_slice %4 {offsets = [256, 0], sizes = [32, 512], strides = [1, 1]} : vector<288x512xf32> to vector<32x512xf32>
    %c495_i32 = arith.constant 495 : i32
    %56 = tpu.dynamic_rotate %55 by %c495_i32 dim 1 : vector<32x512xf32>, i32 -> vector<32x512xf32>
    %c8 = arith.constant 8 : index
    %c0_20 = arith.constant 0 : index
    %c0_21 = arith.constant 0 : index
    %57 = vector.load %arg2[%c8, %c0_20, %c0_21] : memref<9x1x512xf32, #tpu.memory_space<vmem>>, vector<1x1x512xf32>
    %58 = vector.shape_cast %57 : vector<1x1x512xf32> to vector<1x512xf32>
    %59 = vector.broadcast %58 : vector<1x512xf32> to vector<32x512xf32>
    %60 = arith.mulf %56, %59 : vector<32x512xf32>
    %61 = arith.addf %54, %60 : vector<32x512xf32>
    %c0_22 = arith.constant 0 : index
    %c0_23 = arith.constant 0 : index
    %62 = vector.load %arg4[%c0_22, %c0_23] : memref<32x1xf32, #tpu.memory_space<vmem>>, vector<32x1xf32>
    %63 = vector.broadcast %62 : vector<32x1xf32> to vector<32x512xf32>
    %64 = arith.addf %61, %63 : vector<32x512xf32>
    %cst_24 = arith.constant 0.000000e+00 : f32
    %65 = vector.broadcast %cst_24 : f32 to vector<32x512xf32>
    %66 = arith.maximumf %64, %65 : vector<32x512xf32>
    %67 = arith.truncf %66 : vector<32x512xf32> to vector<32x512xbf16>
    %c0_25 = arith.constant 0 : index
    %c0_26 = arith.constant 0 : index
    %68 = vector.load %arg5[%c0_25, %c0_26] : memref<288x32xbf16, #tpu.memory_space<vmem>>, vector<288x32xbf16>
    %cst_27 = arith.constant dense<0.000000e+00> : vector<288x512xf32>
    %69 = tpu.matmul %68, %67, %cst_27 {dimension_numbers = #tpu.dot_dimension_numbers<[1], [0], [0], [1], [0, 0, 1, 1], [], []>} : vector<288x32xbf16>, vector<32x512xbf16>, vector<288x512xf32> -> vector<288x512xf32>
    %70 = vector.extract_strided_slice %69 {offsets = [128, 0], sizes = [32, 512], strides = [1, 1]} : vector<288x512xf32> to vector<32x512xf32>
    %71 = vector.extract_strided_slice %69 {offsets = [0, 0], sizes = [32, 512], strides = [1, 1]} : vector<288x512xf32> to vector<32x512xf32>
    %c17_i32_28 = arith.constant 17 : i32
    %72 = tpu.dynamic_rotate %71 by %c17_i32_28 dim 1 : vector<32x512xf32>, i32 -> vector<32x512xf32>
    %c0_29 = arith.constant 0 : index
    %c0_30 = arith.constant 0 : index
    %c0_31 = arith.constant 0 : index
    %73 = vector.load %arg2[%c0_29, %c0_30, %c0_31] : memref<9x1x512xf32, #tpu.memory_space<vmem>>, vector<1x1x512xf32>
    %74 = vector.shape_cast %73 : vector<1x1x512xf32> to vector<1x512xf32>
    %75 = vector.broadcast %74 : vector<1x512xf32> to vector<32x512xf32>
    %76 = arith.mulf %72, %75 : vector<32x512xf32>
    %77 = arith.addf %70, %76 : vector<32x512xf32>
    %78 = vector.extract_strided_slice %69 {offsets = [32, 0], sizes = [32, 512], strides = [1, 1]} : vector<288x512xf32> to vector<32x512xf32>
    %c16_i32_32 = arith.constant 16 : i32
    %79 = tpu.dynamic_rotate %78 by %c16_i32_32 dim 1 : vector<32x512xf32>, i32 -> vector<32x512xf32>
    %c1_33 = arith.constant 1 : index
    %c0_34 = arith.constant 0 : index
    %c0_35 = arith.constant 0 : index
    %80 = vector.load %arg2[%c1_33, %c0_34, %c0_35] : memref<9x1x512xf32, #tpu.memory_space<vmem>>, vector<1x1x512xf32>
    %81 = vector.shape_cast %80 : vector<1x1x512xf32> to vector<1x512xf32>
    %82 = vector.broadcast %81 : vector<1x512xf32> to vector<32x512xf32>
    %83 = arith.mulf %79, %82 : vector<32x512xf32>
    %84 = arith.addf %77, %83 : vector<32x512xf32>
    %85 = vector.extract_strided_slice %69 {offsets = [64, 0], sizes = [32, 512], strides = [1, 1]} : vector<288x512xf32> to vector<32x512xf32>
    %c15_i32_36 = arith.constant 15 : i32
    %86 = tpu.dynamic_rotate %85 by %c15_i32_36 dim 1 : vector<32x512xf32>, i32 -> vector<32x512xf32>
    %c2_37 = arith.constant 2 : index
    %c0_38 = arith.constant 0 : index
    %c0_39 = arith.constant 0 : index
    %87 = vector.load %arg2[%c2_37, %c0_38, %c0_39] : memref<9x1x512xf32, #tpu.memory_space<vmem>>, vector<1x1x512xf32>
    %88 = vector.shape_cast %87 : vector<1x1x512xf32> to vector<1x512xf32>
    %89 = vector.broadcast %88 : vector<1x512xf32> to vector<32x512xf32>
    %90 = arith.mulf %86, %89 : vector<32x512xf32>
    %91 = arith.addf %84, %90 : vector<32x512xf32>
    %92 = vector.extract_strided_slice %69 {offsets = [96, 0], sizes = [32, 512], strides = [1, 1]} : vector<288x512xf32> to vector<32x512xf32>
    %c1_i32_40 = arith.constant 1 : i32
    %93 = tpu.dynamic_rotate %92 by %c1_i32_40 dim 1 : vector<32x512xf32>, i32 -> vector<32x512xf32>
    %c3_41 = arith.constant 3 : index
    %c0_42 = arith.constant 0 : index
    %c0_43 = arith.constant 0 : index
    %94 = vector.load %arg2[%c3_41, %c0_42, %c0_43] : memref<9x1x512xf32, #tpu.memory_space<vmem>>, vector<1x1x512xf32>
    %95 = vector.shape_cast %94 : vector<1x1x512xf32> to vector<1x512xf32>
    %96 = vector.broadcast %95 : vector<1x512xf32> to vector<32x512xf32>
    %97 = arith.mulf %93, %96 : vector<32x512xf32>
    %98 = arith.addf %91, %97 : vector<32x512xf32>
    %99 = vector.extract_strided_slice %69 {offsets = [160, 0], sizes = [32, 512], strides = [1, 1]} : vector<288x512xf32> to vector<32x512xf32>
    %c511_i32_44 = arith.constant 511 : i32
    %100 = tpu.dynamic_rotate %99 by %c511_i32_44 dim 1 : vector<32x512xf32>, i32 -> vector<32x512xf32>
    %c5_45 = arith.constant 5 : index
    %c0_46 = arith.constant 0 : index
    %c0_47 = arith.constant 0 : index
    %101 = vector.load %arg2[%c5_45, %c0_46, %c0_47] : memref<9x1x512xf32, #tpu.memory_space<vmem>>, vector<1x1x512xf32>
    %102 = vector.shape_cast %101 : vector<1x1x512xf32> to vector<1x512xf32>
    %103 = vector.broadcast %102 : vector<1x512xf32> to vector<32x512xf32>
    %104 = arith.mulf %100, %103 : vector<32x512xf32>
    %105 = arith.addf %98, %104 : vector<32x512xf32>
    %106 = vector.extract_strided_slice %69 {offsets = [192, 0], sizes = [32, 512], strides = [1, 1]} : vector<288x512xf32> to vector<32x512xf32>
    %c497_i32_48 = arith.constant 497 : i32
    %107 = tpu.dynamic_rotate %106 by %c497_i32_48 dim 1 : vector<32x512xf32>, i32 -> vector<32x512xf32>
    %c6_49 = arith.constant 6 : index
    %c0_50 = arith.constant 0 : index
    %c0_51 = arith.constant 0 : index
    %108 = vector.load %arg2[%c6_49, %c0_50, %c0_51] : memref<9x1x512xf32, #tpu.memory_space<vmem>>, vector<1x1x512xf32>
    %109 = vector.shape_cast %108 : vector<1x1x512xf32> to vector<1x512xf32>
    %110 = vector.broadcast %109 : vector<1x512xf32> to vector<32x512xf32>
    %111 = arith.mulf %107, %110 : vector<32x512xf32>
    %112 = arith.addf %105, %111 : vector<32x512xf32>
    %113 = vector.extract_strided_slice %69 {offsets = [224, 0], sizes = [32, 512], strides = [1, 1]} : vector<288x512xf32> to vector<32x512xf32>
    %c496_i32_52 = arith.constant 496 : i32
    %114 = tpu.dynamic_rotate %113 by %c496_i32_52 dim 1 : vector<32x512xf32>, i32 -> vector<32x512xf32>
    %c7_53 = arith.constant 7 : index
    %c0_54 = arith.constant 0 : index
    %c0_55 = arith.constant 0 : index
    %115 = vector.load %arg2[%c7_53, %c0_54, %c0_55] : memref<9x1x512xf32, #tpu.memory_space<vmem>>, vector<1x1x512xf32>
    %116 = vector.shape_cast %115 : vector<1x1x512xf32> to vector<1x512xf32>
    %117 = vector.broadcast %116 : vector<1x512xf32> to vector<32x512xf32>
    %118 = arith.mulf %114, %117 : vector<32x512xf32>
    %119 = arith.addf %112, %118 : vector<32x512xf32>
    %120 = vector.extract_strided_slice %69 {offsets = [256, 0], sizes = [32, 512], strides = [1, 1]} : vector<288x512xf32> to vector<32x512xf32>
    %c495_i32_56 = arith.constant 495 : i32
    %121 = tpu.dynamic_rotate %120 by %c495_i32_56 dim 1 : vector<32x512xf32>, i32 -> vector<32x512xf32>
    %c8_57 = arith.constant 8 : index
    %c0_58 = arith.constant 0 : index
    %c0_59 = arith.constant 0 : index
    %122 = vector.load %arg2[%c8_57, %c0_58, %c0_59] : memref<9x1x512xf32, #tpu.memory_space<vmem>>, vector<1x1x512xf32>
    %123 = vector.shape_cast %122 : vector<1x1x512xf32> to vector<1x512xf32>
    %124 = vector.broadcast %123 : vector<1x512xf32> to vector<32x512xf32>
    %125 = arith.mulf %121, %124 : vector<32x512xf32>
    %126 = arith.addf %119, %125 : vector<32x512xf32>
    %c0_60 = arith.constant 0 : index
    %c0_61 = arith.constant 0 : index
    %127 = vector.load %arg6[%c0_60, %c0_61] : memref<32x1xf32, #tpu.memory_space<vmem>>, vector<32x1xf32>
    %128 = vector.broadcast %127 : vector<32x1xf32> to vector<32x512xf32>
    %129 = arith.addf %126, %128 : vector<32x512xf32>
    %c0_62 = arith.constant 0 : index
    %c0_63 = arith.constant 0 : index
    %130 = vector.load %arg11[%c0_62, %c0_63] : memref<32x512xf32, #tpu.memory_space<vmem>>, vector<32x512xf32>
    tpu.vector_store %arg11[%c0_62, %c0_63], %129 {strides = array<i32>} : memref<32x512xf32, #tpu.memory_space<vmem>>, vector<32x512xf32>,
    %c0_64 = arith.constant 0 : index
    %c0_65 = arith.constant 0 : index
    %131 = vector.load %arg7[%c0_64, %c0_65] : memref<32x2xf32, #tpu.memory_space<vmem>>, vector<32x2xf32>
    %c0_66 = arith.constant 0 : index
    %c0_67 = arith.constant 0 : index
    %132 = vector.load %arg8[%c0_66, %c0_67] : memref<32x2xf32, #tpu.memory_space<vmem>>, vector<32x2xf32>
    %c0_68 = arith.constant 0 : index
    %c0_69 = arith.constant 0 : index
    %133 = vector.load %arg11[%c0_68, %c0_69] : memref<32x512xf32, #tpu.memory_space<vmem>>, vector<32x256xf32>
    %cst_70 = arith.constant dense<0.000000e+00> : vector<32xf32>
    %134 = vector.multi_reduction <add>, %133, %cst_70 [1] : vector<32x256xf32> to vector<32xf32>
    %135 = vector.shape_cast %134 : vector<32xf32> to vector<32x1xf32>
    %cst_71 = arith.constant 2.560000e+02 : f32
    %136 = vector.broadcast %cst_71 : f32 to vector<32x1xf32>
    %137 = arith.divf %135, %136 : vector<32x1xf32>
    %138 = vector.broadcast %137 : vector<32x1xf32> to vector<32x2xf32>
    %139 = arith.mulf %131, %138 : vector<32x2xf32>
    %cst_72 = arith.constant dense<0.000000e+00> : vector<2xf32>
    %140 = vector.multi_reduction <add>, %139, %cst_72 [0] : vector<32x2xf32> to vector<2xf32>
    %141 = vector.shape_cast %140 : vector<2xf32> to vector<1x2xf32>
    %cst_73 = arith.constant 0.000000e+00 : f32
    %142 = vector.broadcast %cst_73 : f32 to vector<1x2xf32>
    %143 = arith.maximumf %141, %142 : vector<1x2xf32>
    %144 = vector.broadcast %143 : vector<1x2xf32> to vector<32x2xf32>
    %145 = arith.mulf %132, %144 : vector<32x2xf32>
    %cst_74 = arith.constant dense<0.000000e+00> : vector<32xf32>
    %146 = vector.multi_reduction <add>, %145, %cst_74 [1] : vector<32x2xf32> to vector<32xf32>
    %147 = vector.shape_cast %146 : vector<32xf32> to vector<32x1xf32>
    %cst_75 = arith.constant 0.000000e+00 : f32
    %148 = vector.broadcast %cst_75 : f32 to vector<32x1xf32>
    %149 = arith.subf %148, %147 : vector<32x1xf32>
    %150 = math.exp %149 : vector<32x1xf32>
    %cst_76 = arith.constant 1.000000e+00 : f32
    %151 = vector.broadcast %cst_76 : f32 to vector<32x1xf32>
    %152 = arith.addf %151, %150 : vector<32x1xf32>
    %cst_77 = arith.constant 1.000000e+00 : f32
    %153 = vector.broadcast %cst_77 : f32 to vector<32x1xf32>
    %154 = arith.divf %153, %152 : vector<32x1xf32>
    %155 = vector.broadcast %154 : vector<32x1xf32> to vector<32x256xf32>
    %156 = arith.mulf %133, %155 : vector<32x256xf32>
    %c0_78 = arith.constant 0 : index
    %c0_79 = arith.constant 0 : index
    %157 = vector.load %arg11[%c0_78, %c0_79] : memref<32x512xf32, #tpu.memory_space<vmem>>, vector<32x256xf32>
    tpu.vector_store %arg11[%c0_78, %c0_79], %156 {strides = array<i32>} : memref<32x512xf32, #tpu.memory_space<vmem>>, vector<32x256xf32>,
    %c0_80 = arith.constant 0 : index
    %c256 = arith.constant 256 : index
    %158 = vector.load %arg11[%c0_80, %c256] : memref<32x512xf32, #tpu.memory_space<vmem>>, vector<32x256xf32>
    %cst_81 = arith.constant dense<0.000000e+00> : vector<32xf32>
    %159 = vector.multi_reduction <add>, %158, %cst_81 [1] : vector<32x256xf32> to vector<32xf32>
    %160 = vector.shape_cast %159 : vector<32xf32> to vector<32x1xf32>
    %cst_82 = arith.constant 2.560000e+02 : f32
    %161 = vector.broadcast %cst_82 : f32 to vector<32x1xf32>
    %162 = arith.divf %160, %161 : vector<32x1xf32>
    %163 = vector.broadcast %162 : vector<32x1xf32> to vector<32x2xf32>
    %164 = arith.mulf %131, %163 : vector<32x2xf32>
    %cst_83 = arith.constant dense<0.000000e+00> : vector<2xf32>
    %165 = vector.multi_reduction <add>, %164, %cst_83 [0] : vector<32x2xf32> to vector<2xf32>
    %166 = vector.shape_cast %165 : vector<2xf32> to vector<1x2xf32>
    %cst_84 = arith.constant 0.000000e+00 : f32
    %167 = vector.broadcast %cst_84 : f32 to vector<1x2xf32>
    %168 = arith.maximumf %166, %167 : vector<1x2xf32>
    %169 = vector.broadcast %168 : vector<1x2xf32> to vector<32x2xf32>
    %170 = arith.mulf %132, %169 : vector<32x2xf32>
    %cst_85 = arith.constant dense<0.000000e+00> : vector<32xf32>
    %171 = vector.multi_reduction <add>, %170, %cst_85 [1] : vector<32x2xf32> to vector<32xf32>
    %172 = vector.shape_cast %171 : vector<32xf32> to vector<32x1xf32>
    %cst_86 = arith.constant 0.000000e+00 : f32
    %173 = vector.broadcast %cst_86 : f32 to vector<32x1xf32>
    %174 = arith.subf %173, %172 : vector<32x1xf32>
    %175 = math.exp %174 : vector<32x1xf32>
    %cst_87 = arith.constant 1.000000e+00 : f32
    %176 = vector.broadcast %cst_87 : f32 to vector<32x1xf32>
    %177 = arith.addf %176, %175 : vector<32x1xf32>
    %cst_88 = arith.constant 1.000000e+00 : f32
    %178 = vector.broadcast %cst_88 : f32 to vector<32x1xf32>
    %179 = arith.divf %178, %177 : vector<32x1xf32>
    %180 = vector.broadcast %179 : vector<32x1xf32> to vector<32x256xf32>
    %181 = arith.mulf %158, %180 : vector<32x256xf32>
    %c0_89 = arith.constant 0 : index
    %c256_90 = arith.constant 256 : index
    %182 = vector.load %arg11[%c0_89, %c256_90] : memref<32x512xf32, #tpu.memory_space<vmem>>, vector<32x256xf32>
    tpu.vector_store %arg11[%c0_89, %c256_90], %181 {strides = array<i32>} : memref<32x512xf32, #tpu.memory_space<vmem>>, vector<32x256xf32>,
    %c0_91 = arith.constant 0 : index
    %c0_92 = arith.constant 0 : index
    %183 = vector.load %arg11[%c0_91, %c0_92] : memref<32x512xf32, #tpu.memory_space<vmem>>, vector<32x512xf32>
    %cst_93 = arith.constant dense<0xFF800000> : vector<512xf32>
    %184 = vector.multi_reduction <maximumf>, %183, %cst_93 [0] : vector<32x512xf32> to vector<512xf32>
    %185 = vector.shape_cast %184 : vector<512xf32> to vector<1x512xf32>
    %cst_94 = arith.constant dense<0.000000e+00> : vector<512xf32>
    %186 = vector.multi_reduction <add>, %183, %cst_94 [0] : vector<32x512xf32> to vector<512xf32>
    %187 = vector.shape_cast %186 : vector<512xf32> to vector<1x512xf32>
    %cst_95 = arith.constant 3.200000e+01 : f32
    %188 = vector.broadcast %cst_95 : f32 to vector<1x512xf32>
    %189 = arith.divf %187, %188 : vector<1x512xf32>
    %c8_96 = arith.constant 8 : index
    %190 = memref.load %arg9[%c8_96] : memref<18xf32, #tpu.memory_space<smem>>
    %191 = vector.broadcast %190 : f32 to vector<1x512xf32>
    %192 = arith.mulf %191, %185 : vector<1x512xf32>
    %c9 = arith.constant 9 : index
    %193 = memref.load %arg9[%c9] : memref<18xf32, #tpu.memory_space<smem>>
    %194 = vector.broadcast %193 : f32 to vector<1x512xf32>
    %195 = arith.mulf %194, %189 : vector<1x512xf32>
    %196 = arith.addf %192, %195 : vector<1x512xf32>
    %c0_97 = arith.constant 0 : index
    %197 = memref.load %arg9[%c0_97] : memref<18xf32, #tpu.memory_space<smem>>
    %198 = vector.broadcast %197 : f32 to vector<1x512xf32>
    %199 = arith.mulf %198, %185 : vector<1x512xf32>
    %c1_98 = arith.constant 1 : index
    %200 = memref.load %arg9[%c1_98] : memref<18xf32, #tpu.memory_space<smem>>
    %201 = vector.broadcast %200 : f32 to vector<1x512xf32>
    %202 = arith.mulf %201, %189 : vector<1x512xf32>
    %203 = arith.addf %199, %202 : vector<1x512xf32>
    %c17_i32_99 = arith.constant 17 : i32
    %204 = tpu.dynamic_rotate %203 by %c17_i32_99 dim 1 : vector<1x512xf32>, i32 -> vector<1x512xf32>
    %c0_100 = arith.constant 0 : index
    %c0_101 = arith.constant 0 : index
    %c0_102 = arith.constant 0 : index
    %205 = vector.load %arg2[%c0_100, %c0_101, %c0_102] : memref<9x1x512xf32, #tpu.memory_space<vmem>>, vector<1x1x512xf32>
    %206 = vector.shape_cast %205 : vector<1x1x512xf32> to vector<1x512xf32>
    %207 = arith.mulf %204, %206 : vector<1x512xf32>
    %208 = arith.addf %196, %207 : vector<1x512xf32>
    %c2_103 = arith.constant 2 : index
    %209 = memref.load %arg9[%c2_103] : memref<18xf32, #tpu.memory_space<smem>>
    %210 = vector.broadcast %209 : f32 to vector<1x512xf32>
    %211 = arith.mulf %210, %185 : vector<1x512xf32>
    %c3_104 = arith.constant 3 : index
    %212 = memref.load %arg9[%c3_104] : memref<18xf32, #tpu.memory_space<smem>>
    %213 = vector.broadcast %212 : f32 to vector<1x512xf32>
    %214 = arith.mulf %213, %189 : vector<1x512xf32>
    %215 = arith.addf %211, %214 : vector<1x512xf32>
    %c16_i32_105 = arith.constant 16 : i32
    %216 = tpu.dynamic_rotate %215 by %c16_i32_105 dim 1 : vector<1x512xf32>, i32 -> vector<1x512xf32>
    %c1_106 = arith.constant 1 : index
    %c0_107 = arith.constant 0 : index
    %c0_108 = arith.constant 0 : index
    %217 = vector.load %arg2[%c1_106, %c0_107, %c0_108] : memref<9x1x512xf32, #tpu.memory_space<vmem>>, vector<1x1x512xf32>
    %218 = vector.shape_cast %217 : vector<1x1x512xf32> to vector<1x512xf32>
    %219 = arith.mulf %216, %218 : vector<1x512xf32>
    %220 = arith.addf %208, %219 : vector<1x512xf32>
    %c4 = arith.constant 4 : index
    %221 = memref.load %arg9[%c4] : memref<18xf32, #tpu.memory_space<smem>>
    %222 = vector.broadcast %221 : f32 to vector<1x512xf32>
    %223 = arith.mulf %222, %185 : vector<1x512xf32>
    %c5_109 = arith.constant 5 : index
    %224 = memref.load %arg9[%c5_109] : memref<18xf32, #tpu.memory_space<smem>>
    %225 = vector.broadcast %224 : f32 to vector<1x512xf32>
    %226 = arith.mulf %225, %189 : vector<1x512xf32>
    %227 = arith.addf %223, %226 : vector<1x512xf32>
    %c15_i32_110 = arith.constant 15 : i32
    %228 = tpu.dynamic_rotate %227 by %c15_i32_110 dim 1 : vector<1x512xf32>, i32 -> vector<1x512xf32>
    %c2_111 = arith.constant 2 : index
    %c0_112 = arith.constant 0 : index
    %c0_113 = arith.constant 0 : index
    %229 = vector.load %arg2[%c2_111, %c0_112, %c0_113] : memref<9x1x512xf32, #tpu.memory_space<vmem>>, vector<1x1x512xf32>
    %230 = vector.shape_cast %229 : vector<1x1x512xf32> to vector<1x512xf32>
    %231 = arith.mulf %228, %230 : vector<1x512xf32>
    %232 = arith.addf %220, %231 : vector<1x512xf32>
    %c6_114 = arith.constant 6 : index
    %233 = memref.load %arg9[%c6_114] : memref<18xf32, #tpu.memory_space<smem>>
    %234 = vector.broadcast %233 : f32 to vector<1x512xf32>
    %235 = arith.mulf %234, %185 : vector<1x512xf32>
    %c7_115 = arith.constant 7 : index
    %236 = memref.load %arg9[%c7_115] : memref<18xf32, #tpu.memory_space<smem>>
    %237 = vector.broadcast %236 : f32 to vector<1x512xf32>
    %238 = arith.mulf %237, %189 : vector<1x512xf32>
    %239 = arith.addf %235, %238 : vector<1x512xf32>
    %c1_i32_116 = arith.constant 1 : i32
    %240 = tpu.dynamic_rotate %239 by %c1_i32_116 dim 1 : vector<1x512xf32>, i32 -> vector<1x512xf32>
    %c3_117 = arith.constant 3 : index
    %c0_118 = arith.constant 0 : index
    %c0_119 = arith.constant 0 : index
    %241 = vector.load %arg2[%c3_117, %c0_118, %c0_119] : memref<9x1x512xf32, #tpu.memory_space<vmem>>, vector<1x1x512xf32>
    %242 = vector.shape_cast %241 : vector<1x1x512xf32> to vector<1x512xf32>
    %243 = arith.mulf %240, %242 : vector<1x512xf32>
    %244 = arith.addf %232, %243 : vector<1x512xf32>
    %c10 = arith.constant 10 : index
    %245 = memref.load %arg9[%c10] : memref<18xf32, #tpu.memory_space<smem>>
    %246 = vector.broadcast %245 : f32 to vector<1x512xf32>
    %247 = arith.mulf %246, %185 : vector<1x512xf32>
    %c11 = arith.constant 11 : index
    %248 = memref.load %arg9[%c11] : memref<18xf32, #tpu.memory_space<smem>>
    %249 = vector.broadcast %248 : f32 to vector<1x512xf32>
    %250 = arith.mulf %249, %189 : vector<1x512xf32>
    %251 = arith.addf %247, %250 : vector<1x512xf32>
    %c511_i32_120 = arith.constant 511 : i32
    %252 = tpu.dynamic_rotate %251 by %c511_i32_120 dim 1 : vector<1x512xf32>, i32 -> vector<1x512xf32>
    %c5_121 = arith.constant 5 : index
    %c0_122 = arith.constant 0 : index
    %c0_123 = arith.constant 0 : index
    %253 = vector.load %arg2[%c5_121, %c0_122, %c0_123] : memref<9x1x512xf32, #tpu.memory_space<vmem>>, vector<1x1x512xf32>
    %254 = vector.shape_cast %253 : vector<1x1x512xf32> to vector<1x512xf32>
    %255 = arith.mulf %252, %254 : vector<1x512xf32>
    %256 = arith.addf %244, %255 : vector<1x512xf32>
    %c12 = arith.constant 12 : index
    %257 = memref.load %arg9[%c12] : memref<18xf32, #tpu.memory_space<smem>>
    %258 = vector.broadcast %257 : f32 to vector<1x512xf32>
    %259 = arith.mulf %258, %185 : vector<1x512xf32>
    %c13 = arith.constant 13 : index
    %260 = memref.load %arg9[%c13] : memref<18xf32, #tpu.memory_space<smem>>
    %261 = vector.broadcast %260 : f32 to vector<1x512xf32>
    %262 = arith.mulf %261, %189 : vector<1x512xf32>
    %263 = arith.addf %259, %262 : vector<1x512xf32>
    %c497_i32_124 = arith.constant 497 : i32
    %264 = tpu.dynamic_rotate %263 by %c497_i32_124 dim 1 : vector<1x512xf32>, i32 -> vector<1x512xf32>
    %c6_125 = arith.constant 6 : index
    %c0_126 = arith.constant 0 : index
    %c0_127 = arith.constant 0 : index
    %265 = vector.load %arg2[%c6_125, %c0_126, %c0_127] : memref<9x1x512xf32, #tpu.memory_space<vmem>>, vector<1x1x512xf32>
    %266 = vector.shape_cast %265 : vector<1x1x512xf32> to vector<1x512xf32>
    %267 = arith.mulf %264, %266 : vector<1x512xf32>
    %268 = arith.addf %256, %267 : vector<1x512xf32>
    %c14 = arith.constant 14 : index
    %269 = memref.load %arg9[%c14] : memref<18xf32, #tpu.memory_space<smem>>
    %270 = vector.broadcast %269 : f32 to vector<1x512xf32>
    %271 = arith.mulf %270, %185 : vector<1x512xf32>
    %c15 = arith.constant 15 : index
    %272 = memref.load %arg9[%c15] : memref<18xf32, #tpu.memory_space<smem>>
    %273 = vector.broadcast %272 : f32 to vector<1x512xf32>
    %274 = arith.mulf %273, %189 : vector<1x512xf32>
    %275 = arith.addf %271, %274 : vector<1x512xf32>
    %c496_i32_128 = arith.constant 496 : i32
    %276 = tpu.dynamic_rotate %275 by %c496_i32_128 dim 1 : vector<1x512xf32>, i32 -> vector<1x512xf32>
    %c7_129 = arith.constant 7 : index
    %c0_130 = arith.constant 0 : index
    %c0_131 = arith.constant 0 : index
    %277 = vector.load %arg2[%c7_129, %c0_130, %c0_131] : memref<9x1x512xf32, #tpu.memory_space<vmem>>, vector<1x1x512xf32>
    %278 = vector.shape_cast %277 : vector<1x1x512xf32> to vector<1x512xf32>
    %279 = arith.mulf %276, %278 : vector<1x512xf32>
    %280 = arith.addf %268, %279 : vector<1x512xf32>
    %c16 = arith.constant 16 : index
    %281 = memref.load %arg9[%c16] : memref<18xf32, #tpu.memory_space<smem>>
    %282 = vector.broadcast %281 : f32 to vector<1x512xf32>
    %283 = arith.mulf %282, %185 : vector<1x512xf32>
    %c17 = arith.constant 17 : index
    %284 = memref.load %arg9[%c17] : memref<18xf32, #tpu.memory_space<smem>>
    %285 = vector.broadcast %284 : f32 to vector<1x512xf32>
    %286 = arith.mulf %285, %189 : vector<1x512xf32>
    %287 = arith.addf %283, %286 : vector<1x512xf32>
    %c495_i32_132 = arith.constant 495 : i32
    %288 = tpu.dynamic_rotate %287 by %c495_i32_132 dim 1 : vector<1x512xf32>, i32 -> vector<1x512xf32>
    %c8_133 = arith.constant 8 : index
    %c0_134 = arith.constant 0 : index
    %c0_135 = arith.constant 0 : index
    %289 = vector.load %arg2[%c8_133, %c0_134, %c0_135] : memref<9x1x512xf32, #tpu.memory_space<vmem>>, vector<1x1x512xf32>
    %290 = vector.shape_cast %289 : vector<1x1x512xf32> to vector<1x512xf32>
    %291 = arith.mulf %288, %290 : vector<1x512xf32>
    %292 = arith.addf %280, %291 : vector<1x512xf32>
    %cst_136 = arith.constant 0.000000e+00 : f32
    %293 = vector.broadcast %cst_136 : f32 to vector<1x512xf32>
    %294 = arith.subf %293, %292 : vector<1x512xf32>
    %295 = math.exp %294 : vector<1x512xf32>
    %cst_137 = arith.constant 1.000000e+00 : f32
    %296 = vector.broadcast %cst_137 : f32 to vector<1x512xf32>
    %297 = arith.addf %296, %295 : vector<1x512xf32>
    %cst_138 = arith.constant 1.000000e+00 : f32
    %298 = vector.broadcast %cst_138 : f32 to vector<1x512xf32>
    %299 = arith.divf %298, %297 : vector<1x512xf32>
    %300 = vector.broadcast %299 : vector<1x512xf32> to vector<32x512xf32>
    %301 = arith.mulf %183, %300 : vector<32x512xf32>
    %302 = arith.addf %301, %0 : vector<32x512xf32>
    %c0_139 = arith.constant 0 : index
    %c0_140 = arith.constant 0 : index
    %303 = vector.load %arg10[%c0_139, %c0_140] : memref<32x512xf32, #tpu.memory_space<vmem>>, vector<32x512xf32>
    tpu.vector_store %arg10[%c0_139, %c0_140], %302 {strides = array<i32>} : memref<32x512xf32, #tpu.memory_space<vmem>>, vector<32x512xf32>,
    return
  }
  func.func @transform_0(%arg0: i32) -> (i32, i32) {
    %c0_i32 = arith.constant 0 : i32
    %c0_i32_0 = arith.constant 0 : i32
    return %c0_i32, %arg0 : i32, i32
  }
  func.func @transform_1(%arg0: i32) -> (i32, i32, i32) {
    %c0_i32 = arith.constant 0 : i32
    %c0_i32_0 = arith.constant 0 : i32
    %c0_i32_1 = arith.constant 0 : i32
    %c0_i32_2 = arith.constant 0 : i32
    return %c0_i32, %c0_i32_0, %c0_i32_1 : i32, i32, i32
  }
  func.func @transform_2(%arg0: i32) -> (i32, i32) {
    %c0_i32 = arith.constant 0 : i32
    %c0_i32_0 = arith.constant 0 : i32
    %c0_i32_1 = arith.constant 0 : i32
    return %c0_i32, %c0_i32_0 : i32, i32
  }
  func.func @transform_3(%arg0: i32) -> (i32, i32) {
    %c0_i32 = arith.constant 0 : i32
    %c0_i32_0 = arith.constant 0 : i32
    %c0_i32_1 = arith.constant 0 : i32
    return %c0_i32, %c0_i32_0 : i32, i32
  }
  func.func @transform_4(%arg0: i32) -> (i32, i32) {
    %c0_i32 = arith.constant 0 : i32
    %c0_i32_0 = arith.constant 0 : i32
    %c0_i32_1 = arith.constant 0 : i32
    return %c0_i32, %c0_i32_0 : i32, i32
  }
  func.func @transform_5(%arg0: i32) -> (i32, i32) {
    %c0_i32 = arith.constant 0 : i32
    %c0_i32_0 = arith.constant 0 : i32
    %c0_i32_1 = arith.constant 0 : i32
    return %c0_i32, %c0_i32_0 : i32, i32
  }
  func.func @transform_6(%arg0: i32) -> (i32, i32) {
    %c0_i32 = arith.constant 0 : i32
    %c0_i32_0 = arith.constant 0 : i32
    %c0_i32_1 = arith.constant 0 : i32
    return %c0_i32, %c0_i32_0 : i32, i32
  }
  func.func @transform_7(%arg0: i32) -> (i32, i32) {
    %c0_i32 = arith.constant 0 : i32
    %c0_i32_0 = arith.constant 0 : i32
    %c0_i32_1 = arith.constant 0 : i32
    return %c0_i32, %c0_i32_0 : i32, i32
  }
  func.func @transform_8(%arg0: i32) -> i32 {
    %c0_i32 = arith.constant 0 : i32
    %c0_i32_0 = arith.constant 0 : i32
    return %c0_i32 : i32
  }
  func.func @transform_9(%arg0: i32) -> (i32, i32) {
    %c0_i32 = arith.constant 0 : i32
    %c0_i32_0 = arith.constant 0 : i32
    return %c0_i32, %arg0 : i32, i32
  }
}

</mosaic_0001>

<bundles_post_ra>
// kernel: sdab_forward.1
= control target key start
LH: loop header
LB: loop body
LE: loop exit
PB: predicated region body
PF: predicated region fallthrough
CT: control target
= control target key end

     0   :  { %14 = vsyncpa [#allocation4], 0  ;;  %s7897_s0 = inlined_call_operand.vmem [shape: f32[32,512], index: 0, kind: input, shape index: {}]   ;;  %s7898_s1 = inlined_call_operand.vmem [shape: f32[9,1,512], index: 1, kind: input, shape index: {}]   ;;  %s7899_s2 = inlined_call_operand.vmem [shape: bf16[288,32], index: 2, kind: input, shape index: {}]   ;;  %s7900_s3 = inlined_call_operand.vmem [shape: f32[32,1], index: 3, kind: input, shape index: {}]   ;;  %s7901_s4 = inlined_call_operand.vmem [shape: bf16[288,32], index: 4, kind: input, shape index: {}]   ;;  %s7902_s5 = inlined_call_operand.vmem [shape: f32[32,1], index: 5, kind: input, shape index: {}]   ;;  %s7903_s6 = inlined_call_operand.vmem [shape: f32[32,2], index: 6, kind: input, shape index: {}]   ;;  %s7904_s7 = inlined_call_operand.vmem [shape: f32[32,2], index: 7, kind: input, shape index: {}]   ;;  %s7905_s8 = inlined_call_operand.vmem [shape: f32[18], index: 8, kind: input, shape index: {}]   ;;  %s7906_s9 = inlined_call_operand.vmem [shape: f32[32,512], index: 9, kind: output, shape index: {}]  }
   0x1   :  { %s37_s11 = sshll.u32 %s7905_s8, 4  ;;  %s38_s11 = int_to_ptr.vmem [resolvable:$true] %s37_s11 }
   0x2   :  { %s3999_s12 = scalar_lea.vmem %s38_s11, 16  ;;  %p4004_p1 = scmp.lt.s32.totalorder %s38_s11, %s38_s11 }
   0x3   :  { %p4000_p0 = scmp.ne.s32.totalorder %s38_s11, %s3999_s12  ;;  %p4005_p2 = scmp.lt.s32.totalorder %s3999_s12, %s3999_s12 }
   0x5   :  { %p4006_p3 = por %p4005_p2, %p4004_p1 }
   0x7   :  { %p4007_p4 = pnand %p4006_p3, %p4000_p0 }
   0x9   :  { %4010 = shalt.err (!%p4007_p4)
}
   0xa   :  { %s4013_s13 = smov [#allocation3]  }
   0xb   :  { %40 = dma.vmem_to_smem %s38_s11, 16, %s4013_s13, [#allocation4]  }
   0xc   :  { %4011 = dma.done.wait [#allocation4], 16  }
   0xd   :  { %4012 = vsyncadd [#allocation4], 4294967280 }
   0xe   :  { %44 = sfence }
   0xf   :  { %v47_v0 = vld [vmem:[%s7897_s0 + $0x8] sm:$0xff]  ;;  %v49_v2 = vld [vmem:[%s7897_s0 + $0x18] sm:$0xff]  ;;  %v46_v5 = vld [vmem:[%s7897_s0] sm:$0xff]  ;;  %v7907_v7 = vmov 0   ;;  %vm196_vm0 = vcmask 261120   ;;  %s4015_s21 = smov 17  }
  0x10   :  { %v51_v1 = vld [vmem:[%s7897_s0 + $0x28] sm:$0xff]  ;;  %v53_v4 = vld [vmem:[%s7897_s0 + $0x38] sm:$0xff]  ;;  %v50_v6 = vld [vmem:[%s7897_s0 + $0x20] sm:$0xff]  ;;  %283 = vmatprep.mubr.bf16.mxu0 %v7907_v7  ;;  %496 = vmatprep.mubr.bf16.mxu1 %v7907_v7  ;;  %s4017_s22 = smov 15   ;;  %s4018_s23 = smov 1   ;;  %vm2913_vm9 = vcmask 15360  }
  0x11   :  { %v63_v3 = vpack.c.bf16 %v51_v1, %v47_v0  ;;  %v65_v8 = vpack.c.bf16 %v53_v4, %v49_v2  ;;  %v62_v9 = vpack.c.bf16 %v50_v6, %v46_v5  ;;  %v48_v10 = vld [vmem:[%s7897_s0 + $0x10] sm:$0xff]  ;;  %v55_v12 = vld [vmem:[%s7897_s0 + $0x48] sm:$0xff]  ;;  %3898 = vset.pattern.permute.xlu1 %v7907_v7  ;;  %3897 = vset.pattern.permute.xlu0 %v7907_v7  ;;  %v57_v15 = vld [vmem:[%s7897_s0 + $0x58] sm:$0xff]  ;;  %s4019_s24 = smov 127   ;;  %s4020_s25 = smov 113  }
  0x12   :  { %v52_v11 = vld [vmem:[%s7897_s0 + $0x30] sm:$0xff]  ;;  %v59_v14 = vld [vmem:[%s7897_s0 + $0x68] sm:$0xff]  ;;  %v61_v16 = vld [vmem:[%s7897_s0 + $0x78] sm:$0xff]  ;;  %s4021_s26 = smov 112   ;;  %s4022_s27 = smov 111  }
  0x13   :  { %251 = vmatprep.subr.bf16.mxu0 %v63_v3  ;;  %v64_v13 = vpack.c.bf16 %v52_v11, %v48_v10  ;;  %464 = vmatprep.subr.bf16.mxu1 %v65_v8  ;;  %v67_v17 = vpack.c.bf16 %v59_v14, %v55_v12  ;;  %v69_v18 = vpack.c.bf16 %v61_v16, %v57_v15  ;;  %v54_v19 = vld [vmem:[%s7897_s0 + $0x40] sm:$0xff]  ;;  %v56_v21 = vld [vmem:[%s7897_s0 + $0x50] sm:$0xff]  ;;  %v3900_v26 = vld [vmem:[%s7899_s2 + $0x8] sm:$0xff]   ;;  %s3865_s13 = sld [smem:[#allocation3 + $0x1]]  ;;  %s3867_s14 = sld [smem:[#allocation3 + $0x3]] }
  0x14   :  { %252 = vmatpush1.bf16.msra.mxu0 %v62_v9  ;;  %v58_v20 = vld [vmem:[%s7897_s0 + $0x60] sm:$0xff]  ;;  %v60_v23 = vld [vmem:[%s7897_s0 + $0x70] sm:$0xff]  ;;  %v1511_v27 = vld [vmem:[%s7900_s3 + $0x8] sm:$0xff]  ;;  %s3866_s15 = sld [smem:[#allocation3 + $0x2]]  ;;  %s3869_s16 = sld [smem:[#allocation3 + $0x4]] }
  0x15   :  { %465 = vmatpush1.bf16.msra.mxu1 %v64_v13  ;;  %v66_v22 = vpack.c.bf16 %v58_v20, %v54_v19  ;;  %253 = vmatprep.subr.bf16.mxu0 %v67_v17  ;;  %v68_v24 = vpack.c.bf16 %v60_v23, %v56_v21  ;;  %v3899_v25 = vld [vmem:[%s7899_s2] sm:$0xff]   ;;  %v3901_v29 = vld [vmem:[%s7899_s2 + $0x10] sm:$0xff]   ;;  %v1513_v31 = vld [vmem:[%s7900_s3 + $0x18] sm:$0xff]  ;;  %s3872_s17 = sld [smem:[#allocation3 + $0x6]]  ;;  %s3864_s8 = sld [smem:[#allocation3 + $0x9]] }
  0x16   :  { %466 = vmatprep.subr.bf16.mxu1 %v69_v18  ;;  %v1510_v28 = vld [vmem:[%s7900_s3] sm:$0xff]  ;;  %1521 = vperm.xlu1 %3898, %v1511_v27   ;;  %v1512_v30 = vld [vmem:[%s7900_s3 + $0x10] sm:$0xff]  ;;  %v3902_v32 = vld [vmem:[%s7899_s2 + $0x18] sm:$0xff]   ;;  %s3873_s3 = sld [smem:[#allocation3 + $0x7]]  ;;  %s3878_s18 = sld [smem:[#allocation3 + $0xc]] }
  0x17   :  { %1516 = vperm.xlu0 %3897, %v1510_v28   ;;  %v3903_v33 = vld [vmem:[%s7899_s2 + $0x20] sm:$0xff]   ;;  %v3904_v34 = vld [vmem:[%s7899_s2 + $0x28] sm:$0xff]   ;;  %v3905_v35 = vld [vmem:[%s7899_s2 + $0x30] sm:$0xff]   ;;  %s3882_s19 = sld [smem:[#allocation3 + $0xf]] }
  0x18   :  { %254 = vmatpush1.bf16.msra.mxu0 %v66_v22  ;;  %v3906_v36 = vld [vmem:[%s7899_s2 + $0x38] sm:$0xff]   ;;  %v3907_v37 = vld [vmem:[%s7899_s2 + $0x40] sm:$0xff]   ;;  %v3908_v38 = vld [vmem:[%s7899_s2 + $0x48] sm:$0xff]  }
  0x19   :  { %467 = vmatpush1.bf16.msra.mxu1 %v68_v24  ;;  %v3909_v39 = vld [vmem:[%s7899_s2 + $0x50] sm:$0xff]   ;;  %v3910_v40 = vld [vmem:[%s7899_s2 + $0x58] sm:$0xff]   ;;  %v3911_v41 = vld [vmem:[%s7899_s2 + $0x60] sm:$0xff]  }
  0x1a   :  { %1526 = vperm.xlu1 %3898, %v1512_v30   ;;  %v3912_v42 = vld [vmem:[%s7899_s2 + $0x68] sm:$0xff]   ;;  %v3913_v43 = vld [vmem:[%s7899_s2 + $0x70] sm:$0xff]   ;;  %v3914_v44 = vld [vmem:[%s7899_s2 + $0x78] sm:$0xff]  }
  0x1b   :  { %3766 = vmatmul.mubr.msk.bf16.vlgmr.msra.gmra.mrb[0].mxu0 %vm196_vm0, %v3899_v25  ;;  %1531 = vperm.xlu0 %3897, %v1513_v31   ;;  %v3915_v45 = vld [vmem:[%s7899_s2 + $0x80] sm:$0xff]   ;;  %v3916_v46 = vld [vmem:[%s7899_s2 + $0x88] sm:$0xff]   ;;  %s4016_s2 = smov 16  }
  0x1c   :  { %3784 = vmatmul.mubr.msk.bf16.vlgmr.msra.gmra.mrb[0].mxu1 %vm196_vm0, %v3899_v25  ;;  %293 = vmatprep.mubr.bf16.mxu0 %v7907_v7 }
  0x1d   :  { %506 = vmatprep.mubr.bf16.mxu1 %v7907_v7 }
  0x23   :  { %3767 = vmatmul.mubr.msk.bf16.gmra.mrb[4].mxu0 %vm196_vm0, %v3900_v26 }
  0x24   :  { %3785 = vmatmul.mubr.msk.bf16.gmra.mrb[4].mxu1 %vm196_vm0, %v3900_v26  ;;  %303 = vmatprep.mubr.bf16.mxu0 %v7907_v7 }
  0x25   :  { %516 = vmatprep.mubr.bf16.mxu1 %v7907_v7 }
  0x2b   :  { %3768 = vmatmul.mubr.msk.bf16.gmra.mrb[8].mxu0 %vm196_vm0, %v3901_v29 }
  0x2c   :  { %3786 = vmatmul.mubr.msk.bf16.gmra.mrb[8].mxu1 %vm196_vm0, %v3901_v29  ;;  %313 = vmatprep.mubr.bf16.mxu0 %v7907_v7 }
  0x2d   :  { %526 = vmatprep.mubr.bf16.mxu1 %v7907_v7 }
  0x33   :  { %3769 = vmatmul.mubr.msk.bf16.gmra.mrb[12].mxu0 %vm196_vm0, %v3902_v32 }
  0x34   :  { %3787 = vmatmul.mubr.msk.bf16.gmra.mrb[12].mxu1 %vm196_vm0, %v3902_v32  ;;  %323 = vmatprep.mubr.bf16.mxu0 %v7907_v7 }
  0x35   :  { %536 = vmatprep.mubr.bf16.mxu1 %v7907_v7 }
  0x3b   :  { %3770 = vmatmul.mubr.msk.bf16.gmra.mrb[16].mxu0 %vm196_vm0, %v3903_v33 }
  0x3c   :  { %3788 = vmatmul.mubr.msk.bf16.gmra.mrb[16].mxu1 %vm196_vm0, %v3903_v33  ;;  %333 = vmatprep.mubr.bf16.mxu0 %v7907_v7 }
  0x3d   :  { %546 = vmatprep.mubr.bf16.mxu1 %v7907_v7 }
  0x43   :  { %3771 = vmatmul.mubr.msk.bf16.gmra.mrb[20].mxu0 %vm196_vm0, %v3904_v34 }
  0x44   :  { %3789 = vmatmul.mubr.msk.bf16.gmra.mrb[20].mxu1 %vm196_vm0, %v3904_v34  ;;  %343 = vmatprep.mubr.bf16.mxu0 %v7907_v7 }
  0x45   :  { %556 = vmatprep.mubr.bf16.mxu1 %v7907_v7 }
  0x4b   :  { %3772 = vmatmul.mubr.msk.bf16.gmra.mrb[24].mxu0 %vm196_vm0, %v3905_v35 }
  0x4c   :  { %3790 = vmatmul.mubr.msk.bf16.gmra.mrb[24].mxu1 %vm196_vm0, %v3905_v35  ;;  %353 = vmatprep.mubr.bf16.mxu0 %v7907_v7 }
  0x4d   :  { %566 = vmatprep.mubr.bf16.mxu1 %v7907_v7 }
  0x53   :  { %3773 = vmatmul.mubr.msk.bf16.gmra.mrb[28].mxu0 %vm196_vm0, %v3906_v36 }
  0x54   :  { %3791 = vmatmul.mubr.msk.bf16.gmra.mrb[28].mxu1 %vm196_vm0, %v3906_v36  ;;  %363 = vmatprep.mubr.bf16.mxu0 %v7907_v7 }
  0x55   :  { %576 = vmatprep.mubr.bf16.mxu1 %v7907_v7 }
  0x5b   :  { %3774 = vmatmul.mubr.msk.bf16.gmra.mrb[32].mxu0 %vm196_vm0, %v3907_v37 }
  0x5c   :  { %3792 = vmatmul.mubr.msk.bf16.gmra.mrb[32].mxu1 %vm196_vm0, %v3907_v37  ;;  %373 = vmatprep.mubr.bf16.mxu0 %v7907_v7 }
  0x5d   :  { %586 = vmatprep.mubr.bf16.mxu1 %v7907_v7 }
  0x63   :  { %3775 = vmatmul.mubr.msk.bf16.gmra.mrb[36].mxu0 %vm196_vm0, %v3908_v38 }
  0x64   :  { %3793 = vmatmul.mubr.msk.bf16.gmra.mrb[36].mxu1 %vm196_vm0, %v3908_v38  ;;  %383 = vmatprep.mubr.bf16.mxu0 %v7907_v7 }
  0x65   :  { %596 = vmatprep.mubr.bf16.mxu1 %v7907_v7 }
  0x6b   :  { %3776 = vmatmul.mubr.msk.bf16.gmra.mrb[40].mxu0 %vm196_vm0, %v3909_v39 }
  0x6c   :  { %3794 = vmatmul.mubr.msk.bf16.gmra.mrb[40].mxu1 %vm196_vm0, %v3909_v39  ;;  %393 = vmatprep.mubr.bf16.mxu0 %v7907_v7 }
  0x6d   :  { %606 = vmatprep.mubr.bf16.mxu1 %v7907_v7 }
  0x73   :  { %3777 = vmatmul.mubr.msk.bf16.gmra.mrb[44].mxu0 %vm196_vm0, %v3910_v40 }
  0x74   :  { %3795 = vmatmul.mubr.msk.bf16.gmra.mrb[44].mxu1 %vm196_vm0, %v3910_v40  ;;  %403 = vmatprep.mubr.bf16.mxu0 %v7907_v7 }
  0x75   :  { %616 = vmatprep.mubr.bf16.mxu1 %v7907_v7 }
  0x7b   :  { %3778 = vmatmul.mubr.msk.bf16.gmra.mrb[48].mxu0 %vm196_vm0, %v3911_v41 }
  0x7c   :  { %3796 = vmatmul.mubr.msk.bf16.gmra.mrb[48].mxu1 %vm196_vm0, %v3911_v41  ;;  %413 = vmatprep.mubr.bf16.mxu0 %v7907_v7 }
  0x7d   :  { %626 = vmatprep.mubr.bf16.mxu1 %v7907_v7 }
  0x83   :  { %3779 = vmatmul.mubr.msk.bf16.gmra.mrb[52].mxu0 %vm196_vm0, %v3912_v42 }
  0x84   :  { %3797 = vmatmul.mubr.msk.bf16.gmra.mrb[52].mxu1 %vm196_vm0, %v3912_v42  ;;  %423 = vmatprep.mubr.bf16.mxu0 %v7907_v7 }
  0x85   :  { %636 = vmatprep.mubr.bf16.mxu1 %v7907_v7 }
  0x8b   :  { %3780 = vmatmul.mubr.msk.bf16.gmra.mrb[56].mxu0 %vm196_vm0, %v3913_v43 }
  0x8c   :  { %3798 = vmatmul.mubr.msk.bf16.gmra.mrb[56].mxu1 %vm196_vm0, %v3913_v43  ;;  %433 = vmatprep.mubr.bf16.mxu0 %v7907_v7 }
  0x8d   :  { %646 = vmatprep.mubr.bf16.mxu1 %v7907_v7 }
  0x93   :  { %3781 = vmatmul.mubr.msk.bf16.gmra.mrb[60].mxu0 %vm196_vm0, %v3914_v44 }
  0x94   :  { %3799 = vmatmul.mubr.msk.bf16.gmra.mrb[60].mxu1 %vm196_vm0, %v3914_v44  ;;  %443 = vmatprep.mubr.bf16.mxu0 %v7907_v7 }
  0x95   :  { %656 = vmatprep.mubr.bf16.mxu1 %v7907_v7 }
  0x9b   :  { %3782 = vmatmul.mubr.msk.bf16.gmra.mrb[64].mxu0 %vm196_vm0, %v3915_v45 }
  0x9c   :  { %3800 = vmatmul.mubr.msk.bf16.gmra.mrb[64].mxu1 %vm196_vm0, %v3915_v45  ;;  %453 = vmatprep.mubr.bf16.mxu0 %v7907_v7 }
  0x9d   :  { %666 = vmatprep.mubr.bf16.mxu1 %v7907_v7 }
  0xa3   :  { %3783 = vmatmul.mubr.msk.bf16.gmra.mrb[68].mxu0 %vm196_vm0, %v3916_v46 }
  0xa4   :  { %3801 = vmatmul.mubr.msk.bf16.gmra.mrb[68].mxu1 %vm196_vm0, %v3916_v46  ;;  %1786 = vmatprep.mubr.bf16.mxu0 %v7907_v7 }
  0xa5   :  { %1999 = vmatprep.mubr.bf16.mxu1 %v7907_v7 }
  0xee   :  { %v285_v47 = vpop.f32.mrb[0].mxu0 }
  0xef   :  { %v498_v48 = vpop.f32.mrb[0].mxu1  ;;  %677 = vrot.lane.b32.xlu0 %v285_v47, %s4015_s21  ;;  %v287_v49 = vpop.f32.mrb[1].mxu0 }
  0xf0   :  { %v500_v50 = vpop.f32.mrb[1].mxu1  ;;  %685 = vrot.lane.b32.xlu1 %v287_v49, %s4015_s21  ;;  %v289_v51 = vpop.f32.mrb[2].mxu0 }
  0xf1   :  { %v502_v52 = vpop.f32.mrb[2].mxu1  ;;  %v291_v53 = vpop.f32.mrb[3].mxu0 }
  0xf2   :  { %v504_v54 = vpop.f32.mrb[3].mxu1 }
  0xf3   :  { %693 = vrot.lane.b32.xlu0 %v498_v48, %s4015_s21 }
  0xf4   :  { %695 = vrot.lane.b32.xlu1 %v502_v52, %s4015_s21 }
  0xf6   :  { %v295_v55 = vpop.f32.mrb[4].mxu0 }
  0xf7   :  { %701 = vrot.lane.b32.xlu0 %v500_v50, %s4015_s21  ;;  %v297_v56 = vpop.f32.mrb[5].mxu0  ;;  %v508_v57 = vpop.f32.mrb[4].mxu1 }
  0xf8   :  { %687 = vrot.lane.b32.xlu1 %v291_v53, %s4015_s21  ;;  %v299_v58 = vpop.f32.mrb[6].mxu0  ;;  %v510_v59 = vpop.f32.mrb[5].mxu1 }
  0xf9   :  { %v301_v60 = vpop.f32.mrb[7].mxu0  ;;  %v512_v61 = vpop.f32.mrb[6].mxu1 }
  0xfa   :  { %v514_v62 = vpop.f32.mrb[7].mxu1 }
  0xfb   :  { %679 = vrot.lane.b32.xlu0 %v289_v51, %s4015_s21 }
  0xfc   :  { %703 = vrot.lane.b32.xlu1 %v504_v54, %s4015_s21 }
  0xfe   :  { %v305_v63 = vpop.f32.mrb[8].mxu0 }
  0xff   :  { %681 = vrot.lane.b32.xlu0 %v295_v55, %s4015_s21  ;;  %v307_v0 = vpop.f32.mrb[9].mxu0  ;;  %v518_v1 = vpop.f32.mrb[8].mxu1 }
 0x100   :  { %683 = vrot.lane.b32.xlu1 %v299_v58, %s4015_s21  ;;  %v309_v2 = vpop.f32.mrb[10].mxu0  ;;  %v520_v3 = vpop.f32.mrb[9].mxu1 }
 0x101   :  { %v311_v4 = vpop.f32.mrb[11].mxu0  ;;  %v522_v5 = vpop.f32.mrb[10].mxu1 }
 0x102   :  { %v524_v6 = vpop.f32.mrb[11].mxu1 }
 0x103   :  { %697 = vrot.lane.b32.xlu0 %v508_v57, %s4015_s21 }
 0x104   :  { %699 = vrot.lane.b32.xlu1 %v512_v61, %s4015_s21 }
 0x106   :  { %v315_v8 = vpop.f32.mrb[12].mxu0 }
 0x107   :  { %689 = vrot.lane.b32.xlu0 %v297_v56, %s4015_s21  ;;  %v317_v9 = vpop.f32.mrb[13].mxu0  ;;  %v528_v10 = vpop.f32.mrb[12].mxu1 }
 0x108   :  { %691 = vrot.lane.b32.xlu1 %v301_v60, %s4015_s21  ;;  %v319_v11 = vpop.f32.mrb[14].mxu0  ;;  %v530_v12 = vpop.f32.mrb[13].mxu1 }
 0x109   :  { %v321_v13 = vpop.f32.mrb[15].mxu0  ;;  %v532_v14 = vpop.f32.mrb[14].mxu1 }
 0x10a   :  { %v534_v15 = vpop.f32.mrb[15].mxu1 }
 0x10b   :  { %705 = vrot.lane.b32.xlu0 %v510_v59, %s4015_s21 }
 0x10c   :  { %707 = vrot.lane.b32.xlu1 %v514_v62, %s4015_s21 }
 0x10e   :  { %v325_v16 = vpop.f32.mrb[16].mxu0 }
 0x10f   :  { %782 = vrot.lane.b32.xlu0 %v305_v63, %s4016_s2  ;;  %v327_v17 = vpop.f32.mrb[17].mxu0  ;;  %v538_v18 = vpop.f32.mrb[16].mxu1 }
 0x110   :  { %784 = vrot.lane.b32.xlu1 %v309_v2, %s4016_s2  ;;  %v329_v19 = vpop.f32.mrb[18].mxu0  ;;  %v4284_v20 = vpop.f32.mrb[17].mxu1 }
 0x111   :  { %v331_v21 = vpop.f32.mrb[19].mxu0  ;;  %v542_v22 = vpop.f32.mrb[18].mxu1 }
 0x112   :  { %v544_v23 = vpop.f32.mrb[19].mxu1 }
 0x113   :  { %798 = vrot.lane.b32.xlu0 %v518_v1, %s4016_s2 }
 0x114   :  { %800 = vrot.lane.b32.xlu1 %v522_v5, %s4016_s2 }
 0x116   :  { %v335_v24 = vpop.f32.mrb[20].mxu0 }
 0x117   :  { %790 = vrot.lane.b32.xlu0 %v307_v0, %s4016_s2  ;;  %v4289_v25 = vpop.f32.mrb[21].mxu0  ;;  %v4291_v26 = vpop.f32.mrb[20].mxu1 }
 0x118   :  { %792 = vrot.lane.b32.xlu1 %v311_v4, %s4016_s2  ;;  %v339_v27 = vpop.f32.mrb[22].mxu0  ;;  %v4294_v28 = vpop.f32.mrb[21].mxu1 }
 0x119   :  { %v4296_v29 = vpop.f32.mrb[23].mxu0  ;;  %v4298_v30 = vpop.f32.mrb[22].mxu1 }
 0x11a   :  { %v4300_v31 = vpop.f32.mrb[23].mxu1 }
 0x11b   :  { %806 = vrot.lane.b32.xlu0 %v520_v3, %s4016_s2 }
 0x11c   :  { %808 = vrot.lane.b32.xlu1 %v524_v6, %s4016_s2 }
 0x11e   :  { %v4304_v32 = vpop.f32.mrb[24].mxu0 }
 0x11f   :  { %786 = vrot.lane.b32.xlu0 %v315_v8, %s4016_s2  ;;  %v4307_v33 = vpop.f32.mrb[25].mxu0  ;;  %v4309_v34 = vpop.f32.mrb[24].mxu1 }
 0x120   :  { %788 = vrot.lane.b32.xlu1 %v319_v11, %s4016_s2  ;;  %v4312_v35 = vpop.f32.mrb[26].mxu0  ;;  %v4314_v36 = vpop.f32.mrb[25].mxu1 }
 0x121   :  { %v4316_v37 = vpop.f32.mrb[27].mxu0  ;;  %v4318_v38 = vpop.f32.mrb[26].mxu1 }
 0x122   :  { %v4320_v39 = vpop.f32.mrb[27].mxu1 }
 0x123   :  { %802 = vrot.lane.b32.xlu0 %v528_v10, %s4016_s2 }
 0x124   :  { %804 = vrot.lane.b32.xlu1 %v532_v14, %s4016_s2 }
 0x126   :  { %v4324_v40 = vpop.f32.mrb[28].mxu0 }
 0x127   :  { %794 = vrot.lane.b32.xlu0 %v317_v9, %s4016_s2  ;;  %v4327_v41 = vpop.f32.mrb[29].mxu0  ;;  %v4329_v42 = vpop.f32.mrb[28].mxu1 }
 0x128   :  { %796 = vrot.lane.b32.xlu1 %v321_v13, %s4016_s2  ;;  %v4332_v43 = vpop.f32.mrb[30].mxu0  ;;  %v4334_v44 = vpop.f32.mrb[29].mxu1 }
 0x129   :  { %v4336_v45 = vpop.f32.mrb[31].mxu0  ;;  %v4338_v46 = vpop.f32.mrb[30].mxu1 }
 0x12a   :  { %v4340_v47 = vpop.f32.mrb[31].mxu1 }
 0x12b   :  { %810 = vrot.lane.b32.xlu0 %v530_v12, %s4016_s2 }
 0x12c   :  { %812 = vrot.lane.b32.xlu1 %v534_v15, %s4016_s2 }
 0x12e   :  { %v4344_v48 = vpop.f32.mrb[32].mxu0 }
 0x12f   :  { %8097 = vst [vmem:[#allocation6_spill] sm:$0xff] %v4344_v48  ;;  %886 = vrot.lane.b32.xlu0 %v325_v16, %s4017_s22  ;;  %v4347_v49 = vpop.f32.mrb[33].mxu0  ;;  %v4349_v50 = vpop.f32.mrb[32].mxu1 }
 0x130   :  { %8098 = vst [vmem:[#allocation7_spill] sm:$0xff] %v4347_v49  ;;  %8099 = vst [vmem:[#allocation8_spill] sm:$0xff] %v4349_v50  ;;  %888 = vrot.lane.b32.xlu1 %v329_v19, %s4017_s22  ;;  %v4352_v51 = vpop.f32.mrb[34].mxu0  ;;  %v4354_v52 = vpop.f32.mrb[33].mxu1 }
 0x131   :  { %8100 = vst [vmem:[#allocation9_spill] sm:$0xff] %v4352_v51  ;;  %8101 = vst [vmem:[#allocation10_spill] sm:$0xff] %v4354_v52  ;;  %v4356_v53 = vpop.f32.mrb[35].mxu0  ;;  %v4358_v54 = vpop.f32.mrb[34].mxu1 }
 0x132   :  { %8102 = vst [vmem:[#allocation11_spill] sm:$0xff] %v4356_v53  ;;  %8103 = vst [vmem:[#allocation12_spill] sm:$0xff] %v4358_v54  ;;  %v4360_v55 = vpop.f32.mrb[35].mxu1 }
 0x133   :  { %8104 = vst [vmem:[#allocation13_spill] sm:$0xff] %v4360_v55  ;;  %902 = vrot.lane.b32.xlu0 %v538_v18, %s4017_s22 }
 0x134   :  { %904 = vrot.lane.b32.xlu1 %v542_v22, %s4017_s22 }
 0x136   :  { %v4364_v56 = vpop.f32.mrb[36].mxu0 }
 0x137   :  { %8105 = vst [vmem:[#allocation14_spill] sm:$0xff] %v4364_v56  ;;  %894 = vrot.lane.b32.xlu0 %v327_v17, %s4017_s22  ;;  %v4367_v57 = vpop.f32.mrb[37].mxu0  ;;  %v4369_v58 = vpop.f32.mrb[36].mxu1 }
 0x138   :  { %8106 = vst [vmem:[#allocation15_spill] sm:$0xff] %v4367_v57  ;;  %8107 = vst [vmem:[#allocation16_spill] sm:$0xff] %v4369_v58  ;;  %896 = vrot.lane.b32.xlu1 %v331_v21, %s4017_s22  ;;  %v4372_v59 = vpop.f32.mrb[38].mxu0  ;;  %v4374_v60 = vpop.f32.mrb[37].mxu1 }
 0x139   :  { %8108 = vst [vmem:[#allocation17_spill] sm:$0xff] %v4372_v59  ;;  %8109 = vst [vmem:[#allocation18_spill] sm:$0xff] %v4374_v60  ;;  %v4376_v61 = vpop.f32.mrb[39].mxu0  ;;  %v4378_v62 = vpop.f32.mrb[38].mxu1 }
 0x13a   :  { %8110 = vst [vmem:[#allocation19_spill] sm:$0xff] %v4376_v61  ;;  %8111 = vst [vmem:[#allocation20_spill] sm:$0xff] %v4378_v62  ;;  %v4380_v63 = vpop.f32.mrb[39].mxu1 }
 0x13b   :  { %8112 = vst [vmem:[#allocation21_spill] sm:$0xff] %v4380_v63  ;;  %910 = vrot.lane.b32.xlu0 %v4284_v20, %s4017_s22 }
 0x13c   :  { %912 = vrot.lane.b32.xlu1 %v544_v23, %s4017_s22 }
 0x13e   :  { %v4385_v0 = vpop.f32.mrb[40].mxu0 }
 0x13f   :  { %890 = vrot.lane.b32.xlu0 %v335_v24, %s4017_s22  ;;  %v4388_v1 = vpop.f32.mrb[41].mxu0  ;;  %v4390_v2 = vpop.f32.mrb[40].mxu1 }
 0x140   :  { %892 = vrot.lane.b32.xlu1 %v339_v27, %s4017_s22  ;;  %v4393_v3 = vpop.f32.mrb[42].mxu0  ;;  %v4395_v4 = vpop.f32.mrb[41].mxu1 }
 0x141   :  { %v4397_v5 = vpop.f32.mrb[43].mxu0  ;;  %v4399_v6 = vpop.f32.mrb[42].mxu1 }
 0x142   :  { %v4401_v8 = vpop.f32.mrb[43].mxu1 }
 0x143   :  { %906 = vrot.lane.b32.xlu0 %v4291_v26, %s4017_s22  ;;  %v4457_v26 = vpop.permute.xlu0 %1516 }
 0x144   :  { %908 = vrot.lane.b32.xlu1 %v4298_v30, %s4017_s22  ;;  %8114 = vst [vmem:[#allocation23_spill] sm:$0xff] %v4457_v26 }
 0x146   :  { %v4407_v9 = vpop.f32.mrb[44].mxu0 }
 0x147   :  { %898 = vrot.lane.b32.xlu0 %v4289_v25, %s4017_s22  ;;  %v4411_v10 = vpop.f32.mrb[45].mxu0  ;;  %v4413_v11 = vpop.f32.mrb[44].mxu1 }
 0x148   :  { %900 = vrot.lane.b32.xlu1 %v4296_v29, %s4017_s22  ;;  %v4417_v12 = vpop.f32.mrb[46].mxu0  ;;  %v4419_v13 = vpop.f32.mrb[45].mxu1 }
 0x149   :  { %v4421_v14 = vpop.f32.mrb[47].mxu0  ;;  %v4423_v15 = vpop.f32.mrb[46].mxu1 }
 0x14a   :  { %v4425_v16 = vpop.f32.mrb[47].mxu1  ;;  %v4455_v25 = vpop.permute.xlu1 %1521 }
 0x14b   :  { %914 = vrot.lane.b32.xlu0 %v4294_v28, %s4017_s22  ;;  %8113 = vst [vmem:[#allocation22_spill] sm:$0xff] %v4455_v25 }
 0x14c   :  { %916 = vrot.lane.b32.xlu1 %v4300_v31, %s4017_s22 }
 0x14e   :  { %v4431_v17 = vpop.f32.mrb[48].mxu0 }
 0x14f   :  { %990 = vrot.lane.b32.xlu0 %v4304_v32, %s4018_s23  ;;  %v4435_v18 = vpop.f32.mrb[49].mxu0  ;;  %v4437_v19 = vpop.f32.mrb[48].mxu1 }
 0x150   :  { %992 = vrot.lane.b32.xlu1 %v4312_v35, %s4018_s23  ;;  %v4441_v20 = vpop.f32.mrb[50].mxu0  ;;  %v4443_v21 = vpop.f32.mrb[49].mxu1 }
 0x151   :  { %v4445_v22 = vpop.f32.mrb[51].mxu0  ;;  %v4447_v23 = vpop.f32.mrb[50].mxu1 }
 0x152   :  { %v4449_v24 = vpop.f32.mrb[51].mxu1 }
 0x153   :  { %1006 = vrot.lane.b32.xlu0 %v4309_v34, %s4018_s23 }
 0x154   :  { %1008 = vrot.lane.b32.xlu1 %v4318_v38, %s4018_s23  ;;  %v4485_v38 = vpop.permute.xlu1 %1526 }
 0x155   :  { %8116 = vst [vmem:[#allocation25_spill] sm:$0xff] %v4485_v38 }
 0x156   :  { %v4459_v27 = vpop.f32.mrb[52].mxu0 }
 0x157   :  { %998 = vrot.lane.b32.xlu0 %v4307_v33, %s4018_s23  ;;  %v4463_v28 = vpop.f32.mrb[53].mxu0  ;;  %v4465_v29 = vpop.f32.mrb[52].mxu1 }
 0x158   :  { %1000 = vrot.lane.b32.xlu1 %v4316_v37, %s4018_s23  ;;  %v4469_v30 = vpop.f32.mrb[54].mxu0  ;;  %v4471_v31 = vpop.f32.mrb[53].mxu1 }
 0x159   :  { %v4473_v32 = vpop.f32.mrb[55].mxu0  ;;  %v4475_v34 = vpop.f32.mrb[54].mxu1 }
 0x15a   :  { %v4477_v35 = vpop.f32.mrb[55].mxu1  ;;  %v4483_v33 = vpop.permute.xlu0 %1531 }
 0x15b   :  { %1014 = vrot.lane.b32.xlu0 %v4314_v36, %s4018_s23  ;;  %8115 = vst [vmem:[#allocation24_spill] sm:$0xff] %v4483_v33 }
 0x15c   :  { %1016 = vrot.lane.b32.xlu1 %v4320_v39, %s4018_s23 }
 0x15e   :  { %v4487_v37 = vpop.f32.mrb[56].mxu0 }
 0x15f   :  { %994 = vrot.lane.b32.xlu0 %v4324_v40, %s4018_s23  ;;  %v4491_v7 = vpop.f32.mrb[57].mxu0  ;;  %v4493_v26 = vpop.f32.mrb[56].mxu1 }
 0x160   :  { %996 = vrot.lane.b32.xlu1 %v4332_v43, %s4018_s23  ;;  %v4497_v36 = vpop.f32.mrb[58].mxu0  ;;  %v4499_v25 = vpop.f32.mrb[57].mxu1 }
 0x161   :  { %v4501_v39 = vpop.permute.xlu0 %677  ;;  %v4503_v33 = vpop.f32.mrb[59].mxu0 }
 0x162   :  { %v4505_v38 = vpop.permute.xlu1 %685  ;;  %v4507_v63 = vpop.f32.mrb[58].mxu1 }
 0x163   :  { %1010 = vrot.lane.b32.xlu0 %v4329_v42, %s4018_s23  ;;  %v4511_v40 = vpop.f32.mrb[59].mxu1 }
 0x164   :  { %1012 = vrot.lane.b32.xlu1 %v4338_v46, %s4018_s23 }
 0x165   :  { %v4515_v43 = vpop.permute.xlu0 %693 }
 0x166   :  { %8117 = vst [vmem:[#allocation26_spill] sm:$0xff] %v4515_v43  ;;  %v4517_v59 = vpop.permute.xlu1 %695  ;;  %v4519_v60 = vpop.f32.mrb[60].mxu0 }
 0x167   :  { %8118 = vst [vmem:[#allocation27_spill] sm:$0xff] %v4517_v59  ;;  %1002 = vrot.lane.b32.xlu0 %v4327_v41, %s4018_s23  ;;  %v4523_v56 = vpop.f32.mrb[61].mxu0  ;;  %v4525_v62 = vpop.f32.mrb[60].mxu1 }
 0x168   :  { %1004 = vrot.lane.b32.xlu1 %v4336_v45, %s4018_s23  ;;  %v4529_v42 = vpop.f32.mrb[62].mxu0  ;;  %v4531_v61 = vpop.f32.mrb[61].mxu1 }
 0x169   :  { %v4533_v46 = vpop.permute.xlu0 %701  ;;  %v4535_v58 = vpop.f32.mrb[63].mxu0 }
 0x16a   :  { %8119 = vst [vmem:[#allocation28_spill] sm:$0xff] %v4533_v46  ;;  %v4537_v57 = vpop.permute.xlu1 %687  ;;  %v4539_v55 = vpop.f32.mrb[62].mxu1 }
 0x16b   :  { %8120 = vst [vmem:[#allocation29_spill] sm:$0xff] %v4537_v57  ;;  %1018 = vrot.lane.b32.xlu0 %v4334_v44, %s4018_s23  ;;  %v4543_v41 = vpop.f32.mrb[63].mxu1 }
 0x16c   :  { %1020 = vrot.lane.b32.xlu1 %v4340_v47, %s4018_s23 }
 0x16d   :  { %v4547_v45 = vpop.permute.xlu0 %679 }
 0x16e   :  { %8121 = vst [vmem:[#allocation30_spill] sm:$0xff] %v4547_v45  ;;  %v4549_v51 = vpop.permute.xlu1 %703  ;;  %v4551_v53 = vpop.f32.mrb[64].mxu0 }
 0x16f   :  { %8122 = vst [vmem:[#allocation31_spill] sm:$0xff] %v4549_v51  ;;  %1094 = vrot.lane.b32.xlu0 %v4385_v0, %s4019_s24  ;;  %v4555_v54 = vpop.f32.mrb[65].mxu0  ;;  %v4557_v52 = vpop.f32.mrb[64].mxu1 }
 0x170   :  { %1096 = vrot.lane.b32.xlu1 %v4393_v3, %s4019_s24  ;;  %v4561_v44 = vpop.f32.mrb[66].mxu0  ;;  %v4563_v47 = vpop.f32.mrb[65].mxu1 }
 0x171   :  { %v4565_v48 = vpop.permute.xlu0 %681  ;;  %v4567_v51 = vpop.f32.mrb[67].mxu0 }
 0x172   :  { %8123 = vst [vmem:[#allocation32_spill] sm:$0xff] %v4565_v48  ;;  %v4569_v45 = vpop.permute.xlu1 %683  ;;  %v4571_v50 = vpop.f32.mrb[66].mxu1 }
 0x173   :  { %8124 = vst [vmem:[#allocation33_spill] sm:$0xff] %v4569_v45  ;;  %1110 = vrot.lane.b32.xlu0 %v4390_v2, %s4019_s24  ;;  %v4575_v0 = vpop.f32.mrb[67].mxu1 }
 0x174   :  { %1112 = vrot.lane.b32.xlu1 %v4399_v6, %s4019_s24 }
 0x175   :  { %v4579_v3 = vpop.permute.xlu0 %697 }
 0x176   :  { %8125 = vst [vmem:[#allocation34_spill] sm:$0xff] %v4579_v3  ;;  %v4581_v49 = vpop.permute.xlu1 %699  ;;  %v4583_v57 = vpop.f32.mrb[68].mxu0 }
 0x177   :  { %8126 = vst [vmem:[#allocation35_spill] sm:$0xff] %v4581_v49  ;;  %1102 = vrot.lane.b32.xlu0 %v4388_v1, %s4019_s24  ;;  %v4587_v45 = vpop.f32.mrb[69].mxu0  ;;  %v4589_v48 = vpop.f32.mrb[68].mxu1 }
 0x178   :  { %1104 = vrot.lane.b32.xlu1 %v4397_v5, %s4019_s24  ;;  %v4593_v2 = vpop.f32.mrb[70].mxu0  ;;  %v4595_v59 = vpop.f32.mrb[69].mxu1 }
 0x179   :  { %v4597_v6 = vpop.permute.xlu0 %689  ;;  %v4599_v3 = vpop.f32.mrb[70].mxu1 }
 0x17a   :  { %8127 = vst [vmem:[#allocation36_spill] sm:$0xff] %v4597_v6  ;;  %v4601_v49 = vpop.permute.xlu1 %691  ;;  %v4603_v46 = vpop.f32.mrb[71].mxu0 }
 0x17b   :  { %8128 = vst [vmem:[#allocation37_spill] sm:$0xff] %v4601_v49  ;;  %1118 = vrot.lane.b32.xlu0 %v4395_v4, %s4019_s24  ;;  %v4607_v1 = vpop.f32.mrb[71].mxu1 }
 0x17c   :  { %1120 = vrot.lane.b32.xlu1 %v4401_v8, %s4019_s24 }
 0x17d   :  { %v4611_v5 = vpop.permute.xlu0 %705 }
 0x17e   :  { %v4613_v43 = vpop.permute.xlu1 %707 }
 0x17f   :  { %1098 = vrot.lane.b32.xlu0 %v4407_v9, %s4019_s24 }
 0x180   :  { %1100 = vrot.lane.b32.xlu1 %v4417_v12, %s4019_s24 }
 0x181   :  { %v4619_v49 = vpop.permute.xlu0 %782 }
 0x182   :  { %v4621_v6 = vpop.permute.xlu1 %784 }
 0x183   :  { %1114 = vrot.lane.b32.xlu0 %v4413_v11, %s4019_s24 }
 0x184   :  { %1116 = vrot.lane.b32.xlu1 %v4423_v15, %s4019_s24 }
 0x185   :  { %v4627_v4 = vpop.permute.xlu0 %798 }
 0x186   :  { %v4629_v8 = vpop.permute.xlu1 %800 }
 0x187   :  { %1106 = vrot.lane.b32.xlu0 %v4411_v10, %s4019_s24 }
 0x188   :  { %1108 = vrot.lane.b32.xlu1 %v4421_v14, %s4019_s24 }
 0x189   :  { %v4635_v9 = vpop.permute.xlu0 %790 }
 0x18a   :  { %v4637_v12 = vpop.permute.xlu1 %792 }
 0x18b   :  { %1122 = vrot.lane.b32.xlu0 %v4419_v13, %s4019_s24 }
 0x18c   :  { %1124 = vrot.lane.b32.xlu1 %v4425_v16, %s4019_s24 }
 0x18d   :  { %v4643_v11 = vpop.permute.xlu0 %806 }
 0x18e   :  { %v4645_v15 = vpop.permute.xlu1 %808 }
 0x18f   :  { %1198 = vrot.lane.b32.xlu0 %v4431_v17, %s4020_s25 }
 0x190   :  { %1200 = vrot.lane.b32.xlu1 %v4441_v20, %s4020_s25 }
 0x191   :  { %v4651_v10 = vpop.permute.xlu0 %786 }
 0x192   :  { %v4653_v14 = vpop.permute.xlu1 %788 }
 0x193   :  { %1214 = vrot.lane.b32.xlu0 %v4437_v19, %s4020_s25 }
 0x194   :  { %1216 = vrot.lane.b32.xlu1 %v4447_v23, %s4020_s25 }
 0x195   :  { %v4659_v13 = vpop.permute.xlu0 %802 }
 0x196   :  { %v4661_v16 = vpop.permute.xlu1 %804 }
 0x197   :  { %1206 = vrot.lane.b32.xlu0 %v4435_v18, %s4020_s25 }
 0x198   :  { %1208 = vrot.lane.b32.xlu1 %v4445_v22, %s4020_s25 }
 0x199   :  { %v4667_v17 = vpop.permute.xlu0 %794 }
 0x19a   :  { %v4669_v20 = vpop.permute.xlu1 %796 }
 0x19b   :  { %1222 = vrot.lane.b32.xlu0 %v4443_v21, %s4020_s25 }
 0x19c   :  { %1224 = vrot.lane.b32.xlu1 %v4449_v24, %s4020_s25 }
 0x19d   :  { %v4675_v19 = vpop.permute.xlu0 %810 }
 0x19e   :  { %v4677_v23 = vpop.permute.xlu1 %812 }
 0x19f   :  { %1204 = vrot.lane.b32.xlu0 %v4469_v30, %s4020_s25 }
 0x1a0   :  { %1202 = vrot.lane.b32.xlu1 %v4459_v27, %s4020_s25 }
 0x1a1   :  { %v4683_v18 = vpop.permute.xlu0 %886 }
 0x1a2   :  { %v4685_v22 = vpop.permute.xlu1 %888 }
 0x1a3   :  { %8129 = vst [vmem:[#allocation38_spill] sm:$0xff] %v4685_v22  ;;  %1220 = vrot.lane.b32.xlu0 %v4475_v34, %s4020_s25 }
 0x1a4   :  { %1218 = vrot.lane.b32.xlu1 %v4465_v29, %s4020_s25 }
 0x1a5   :  { %v4691_v21 = vpop.permute.xlu0 %902 }
 0x1a6   :  { %v4693_v24 = vpop.permute.xlu1 %904 }
 0x1a7   :  { %8130 = vst [vmem:[#allocation39_spill] sm:$0xff] %v4693_v24  ;;  %1212 = vrot.lane.b32.xlu0 %v4473_v32, %s4020_s25 }
 0x1a8   :  { %1210 = vrot.lane.b32.xlu1 %v4463_v28, %s4020_s25 }
 0x1a9   :  { %v4699_v27 = vpop.permute.xlu0 %894 }
 0x1aa   :  { %v4701_v30 = vpop.permute.xlu1 %896 }
 0x1ab   :  { %8131 = vst [vmem:[#allocation40_spill] sm:$0xff] %v4701_v30  ;;  %1228 = vrot.lane.b32.xlu0 %v4477_v35, %s4020_s25 }
 0x1ac   :  { %1226 = vrot.lane.b32.xlu1 %v4471_v31, %s4020_s25 }
 0x1ad   :  { %v4707_v29 = vpop.permute.xlu0 %910 }
 0x1ae   :  { %8132 = vst [vmem:[#allocation41_spill] sm:$0xff] %v4707_v29  ;;  %v4709_v34 = vpop.permute.xlu1 %912  ;;  %v8219_v29 = vld [vmem:[#allocation13_spill] sm:$0xff] }
 0x1af   :  { %8133 = vst [vmem:[#allocation42_spill] sm:$0xff] %v4709_v34  ;;  %1302 = vrot.lane.b32.xlu0 %v4487_v37, %s4021_s26 }
 0x1b0   :  { %1304 = vrot.lane.b32.xlu1 %v4497_v36, %s4021_s26 }
 0x1b1   :  { %v4715_v28 = vpop.permute.xlu0 %890 }
 0x1b2   :  { %8134 = vst [vmem:[#allocation43_spill] sm:$0xff] %v4715_v28  ;;  %v4717_v32 = vpop.permute.xlu1 %892 }
 0x1b3   :  { %8135 = vst [vmem:[#allocation44_spill] sm:$0xff] %v4717_v32  ;;  %1318 = vrot.lane.b32.xlu0 %v4493_v26, %s4021_s26 }
 0x1b4   :  { %1320 = vrot.lane.b32.xlu1 %v4507_v63, %s4021_s26 }
 0x1b5   :  { %v4723_v31 = vpop.permute.xlu0 %906 }
 0x1b6   :  { %8136 = vst [vmem:[#allocation45_spill] sm:$0xff] %v4723_v31  ;;  %v4725_v35 = vpop.permute.xlu1 %908 }
 0x1b7   :  { %8137 = vst [vmem:[#allocation46_spill] sm:$0xff] %v4725_v35  ;;  %1310 = vrot.lane.b32.xlu0 %v4491_v7, %s4021_s26 }
 0x1b8   :  { %1312 = vrot.lane.b32.xlu1 %v4503_v33, %s4021_s26 }
 0x1b9   :  { %v4731_v37 = vpop.permute.xlu0 %898 }
 0x1ba   :  { %8138 = vst [vmem:[#allocation47_spill] sm:$0xff] %v4731_v37  ;;  %v4733_v36 = vpop.permute.xlu1 %900 }
 0x1bb   :  { %8139 = vst [vmem:[#allocation48_spill] sm:$0xff] %v4733_v36  ;;  %1326 = vrot.lane.b32.xlu0 %v4499_v25, %s4021_s26  ;;  %v8196_v36 = vld [vmem:[#allocation7_spill] sm:$0xff] }
 0x1bc   :  { %1328 = vrot.lane.b32.xlu1 %v4511_v40, %s4021_s26 }
 0x1bd   :  { %v4739_v63 = vpop.permute.xlu0 %914 }
 0x1be   :  { %8140 = vst [vmem:[#allocation49_spill] sm:$0xff] %v4739_v63  ;;  %v4741_v26 = vpop.permute.xlu1 %916 }
 0x1bf   :  { %8141 = vst [vmem:[#allocation50_spill] sm:$0xff] %v4741_v26  ;;  %1308 = vrot.lane.b32.xlu0 %v4529_v42, %s4021_s26 }
 0x1c0   :  { %1306 = vrot.lane.b32.xlu1 %v4519_v60, %s4021_s26 }
 0x1c1   :  { %v4747_v7 = vpop.permute.xlu0 %990 }
 0x1c2   :  { %8142 = vst [vmem:[#allocation51_spill] sm:$0xff] %v4747_v7  ;;  %v4749_v33 = vpop.permute.xlu1 %992 }
 0x1c3   :  { %8143 = vst [vmem:[#allocation52_spill] sm:$0xff] %v4749_v33  ;;  %1324 = vrot.lane.b32.xlu0 %v4539_v55, %s4021_s26 }
 0x1c4   :  { %1322 = vrot.lane.b32.xlu1 %v4525_v62, %s4021_s26 }
 0x1c5   :  { %v4755_v25 = vpop.permute.xlu0 %1006 }
 0x1c6   :  { %8144 = vst [vmem:[#allocation53_spill] sm:$0xff] %v4755_v25  ;;  %v4757_v40 = vpop.permute.xlu1 %1008 }
 0x1c7   :  { %8145 = vst [vmem:[#allocation54_spill] sm:$0xff] %v4757_v40  ;;  %1316 = vrot.lane.b32.xlu0 %v4535_v58, %s4021_s26 }
 0x1c8   :  { %1314 = vrot.lane.b32.xlu1 %v4523_v56, %s4021_s26 }
 0x1c9   :  { %v4763_v60 = vpop.permute.xlu0 %998 }
 0x1ca   :  { %8146 = vst [vmem:[#allocation55_spill] sm:$0xff] %v4763_v60  ;;  %v4765_v42 = vpop.permute.xlu1 %1000 }
 0x1cb   :  { %8147 = vst [vmem:[#allocation56_spill] sm:$0xff] %v4765_v42  ;;  %1332 = vrot.lane.b32.xlu0 %v4543_v41, %s4021_s26 }
 0x1cc   :  { %1330 = vrot.lane.b32.xlu1 %v4531_v61, %s4021_s26 }
 0x1cd   :  { %v4771_v55 = vpop.permute.xlu0 %1014 }
 0x1ce   :  { %8148 = vst [vmem:[#allocation57_spill] sm:$0xff] %v4771_v55  ;;  %v4773_v62 = vpop.permute.xlu1 %1016 }
 0x1cf   :  { %8149 = vst [vmem:[#allocation58_spill] sm:$0xff] %v4773_v62  ;;  %1408 = vrot.lane.b32.xlu0 %v4561_v44, %s4022_s27 }
 0x1d0   :  { %1406 = vrot.lane.b32.xlu1 %v4551_v53, %s4022_s27 }
 0x1d1   :  { %v4779_v56 = vpop.permute.xlu0 %994 }
 0x1d2   :  { %8150 = vst [vmem:[#allocation59_spill] sm:$0xff] %v4779_v56  ;;  %v4781_v58 = vpop.permute.xlu1 %996 }
 0x1d3   :  { %8151 = vst [vmem:[#allocation60_spill] sm:$0xff] %v4781_v58  ;;  %1424 = vrot.lane.b32.xlu0 %v4571_v50, %s4022_s27 }
 0x1d4   :  { %1422 = vrot.lane.b32.xlu1 %v4557_v52, %s4022_s27 }
 0x1d5   :  { %v4787_v61 = vpop.permute.xlu0 %1010 }
 0x1d6   :  { %8152 = vst [vmem:[#allocation61_spill] sm:$0xff] %v4787_v61  ;;  %v4789_v41 = vpop.permute.xlu1 %1012  ;;  %v3803_v61 = vld [vmem:[%s7898_s1 + $0x8] sm:$0xf] }
 0x1d7   :  { %8153 = vst [vmem:[#allocation62_spill] sm:$0xff] %v4789_v41  ;;  %1416 = vrot.lane.b32.xlu0 %v4567_v51, %s4022_s27 }
 0x1d8   :  { %1414 = vrot.lane.b32.xlu1 %v4555_v54, %s4022_s27 }
 0x1d9   :  { %v4795_v53 = vpop.permute.xlu0 %1002 }
 0x1da   :  { %8154 = vst [vmem:[#allocation63_spill] sm:$0xff] %v4795_v53  ;;  %v4797_v44 = vpop.permute.xlu1 %1004  ;;  %v8180_v53 = vld [vmem:[#allocation29_spill] sm:$0xff] }
 0x1db   :  { %8155 = vst [vmem:[#allocation64_spill] sm:$0xff] %v4797_v44  ;;  %1432 = vrot.lane.b32.xlu0 %v4575_v0, %s4022_s27  ;;  %v8177_v44 = vld [vmem:[#allocation28_spill] sm:$0xff] }
 0x1dc   :  { %1430 = vrot.lane.b32.xlu1 %v4563_v47, %s4022_s27 }
 0x1dd   :  { %v4803_v50 = vpop.permute.xlu0 %1018 }
 0x1de   :  { %8156 = vst [vmem:[#allocation65_spill] sm:$0xff] %v4803_v50  ;;  %v4805_v52 = vpop.permute.xlu1 %1020  ;;  %v3802_v50 = vld [vmem:[%s7898_s1 + $0x4] sm:$0xf] }
 0x1df   :  { %8157 = vst [vmem:[#allocation66_spill] sm:$0xff] %v4805_v52  ;;  %1412 = vrot.lane.b32.xlu0 %v4593_v2, %s4022_s27  ;;  %v709_v52 = vlaneseq }
 0x1e0   :  { %1410 = vrot.lane.b32.xlu1 %v4583_v57, %s4022_s27 }
 0x1e1   :  { %v4811_v51 = vpop.permute.xlu0 %1094 }
 0x1e2   :  { %8158 = vst [vmem:[#allocation67_spill] sm:$0xff] %v4811_v51  ;;  %v4813_v54 = vpop.permute.xlu1 %1096 }
 0x1e3   :  { %8159 = vst [vmem:[#allocation68_spill] sm:$0xff] %v4813_v54  ;;  %1428 = vrot.lane.b32.xlu0 %v4599_v3, %s4022_s27  ;;  %v731_v54 = vshrl.u32 %v709_v52, 7  ;;  %v4838_v3 = vand.u32 127, %v709_v52  ;;  %v2823_v52 = vld [vmem:[%s7902_s5 + $0x18] sm:$0xff] }
 0x1e4   :  { %1426 = vrot.lane.b32.xlu1 %v4589_v48, %s4022_s27  ;;  %v2821_v48 = vld [vmem:[%s7902_s5 + $0x8] sm:$0xff] }
 0x1e5   :  { %v4819_v47 = vpop.permute.xlu0 %1110  ;;  %vm711_vm1 = vcmp.lt.s32.totalorder %v4838_v3, 17  ;;  %vm814_vm2 = vcmp.lt.s32.totalorder %v4838_v3, 16  ;;  %vm918_vm3 = vcmp.lt.s32.totalorder %v4838_v3, 15  ;;  %vm1022_vm4 = vcmp.lt.s32.totalorder %v4838_v3, 1 }
 0x1e6   :  { %8160 = vst [vmem:[#allocation69_spill] sm:$0xff] %v4819_v47  ;;  %v4821_v0 = vpop.permute.xlu1 %1112  ;;  %v4854_v47 = vsub.s32 0, %v731_v54  ;;  %vm1126_vm5 = vcmp.lt.s32.totalorder %v4838_v3, 127  ;;  %vm1230_vm6 = vcmp.lt.s32.totalorder %v4838_v3, 113  ;;  %vm1334_vm7 = vcmp.lt.s32.totalorder %v4838_v3, 112 }
 0x1e7   :  { %8161 = vst [vmem:[#allocation70_spill] sm:$0xff] %v4821_v0  ;;  %1420 = vrot.lane.b32.xlu0 %v4603_v46, %s4022_s27  ;;  %v4847_v0 = vsub.s32 1, %v731_v54  ;;  %vm1438_vm8 = vcmp.lt.s32.totalorder %v4838_v3, 111 }
 0x1e8   :  { %1418 = vrot.lane.b32.xlu1 %v4587_v45, %s4022_s27  ;;  %v2820_v45 = vld [vmem:[%s7902_s5] sm:$0xff]  ;;  %8168 = vst [vmem:[#allocation77_spill] sm:$0xff] %v4854_v47  ;;  %v4942_v25 = vrot.slane %v3803_v61, %v4854_v47 }
 0x1e9   :  { %v4827_v57 = vpop.permute.xlu0 %1102  ;;  %8166 = vst [vmem:[#allocation75_spill] sm:$0xff] %v4847_v0 }
 0x1ea   :  { %8162 = vst [vmem:[#allocation71_spill] sm:$0xff] %v4827_v57  ;;  %v4829_v2 = vpop.permute.xlu1 %1104  ;;  %8188 = vst [vmem:[#allocation89_spill] sm:$0xff] %v4942_v25 }
 0x1eb   :  { %8163 = vst [vmem:[#allocation72_spill] sm:$0xff] %v4829_v2  ;;  %1436 = vrot.lane.b32.xlu0 %v4607_v1, %s4022_s27  ;;  %v4849_v1 = vsub.s32 2, %v731_v54 }
 0x1ec   :  { %1434 = vrot.lane.b32.xlu1 %v4595_v59, %s4022_s27  ;;  %v728_v59 = vld [vmem:[%s7898_s1] sm:$0xf] }
 0x1ed   :  { %v4840_v46 = vpop.permute.xlu0 %1118  ;;  %8167 = vst [vmem:[#allocation76_spill] sm:$0xff] %v4849_v1  ;;  %v4870_v57 = vrot.slane %v728_v59, %v4847_v0  ;;  %v4887_v41 = vrot.slane %v728_v59, %v4854_v47  ;;  %v4918_v33 = vrot.slane %v3802_v50, %v4849_v1 }
 0x1ee   :  { %8164 = vst [vmem:[#allocation73_spill] sm:$0xff] %v4840_v46  ;;  %v4845_v2 = vpop.permute.xlu1 %1120  ;;  %v4860_v46 = vsub.s32 3, %v731_v54  ;;  %v720_v54 = vsel %vm711_vm1, %v4501_v39, %v4505_v38 }
 0x1ef   :  { %8165 = vst [vmem:[#allocation74_spill] sm:$0xff] %v4845_v2  ;;  %2831 = vperm.xlu0 %3897, %v2821_v48   ;;  %v2822_v48 = vld [vmem:[%s7902_s5 + $0x10] sm:$0xff]  ;;  %8172 = vst [vmem:[#allocation81_spill] sm:$0xff] %v4870_v57  ;;  %v751_v55 = vmul.f32 %v4870_v57, %v720_v54  ;;  %s3863_s5 = sld [smem:[#allocation3 + $0x8]] }
 0x1f0   :  { %2826 = vperm.xlu1 %3898, %v2820_v45   ;;  %8169 = vst [vmem:[#allocation78_spill] sm:$0xff] %v4860_v46  ;;  %v4873_v45 = vrot.slane %v728_v59, %v4849_v1  ;;  %v4890_v58 = vrot.slane %v728_v59, %v4860_v46  ;;  %8183 = vst [vmem:[#allocation84_spill] sm:$0xff] %v4918_v33  ;;  %v4928_v40 = vrot.slane %v3802_v50, %v4860_v46  ;;  %v3805_v54 = vld [vmem:[%s7898_s1 + $0x14] sm:$0xf] }
 0x1f1   :  { %v4862_v2 = vpop.permute.xlu0 %1098  ;;  %v767_v35 = vadd.f32 %v751_v55, %v8196_v36  ;;  %v4970_v25 = vrot.slane %v3805_v54, %v4854_v47  ;;  %v4984_v55 = vrot.slane %v3805_v54, %v4847_v0 }
 0x1f2   :  { %8170 = vst [vmem:[#allocation79_spill] sm:$0xff] %v4862_v2  ;;  %v4867_v51 = vpop.permute.xlu1 %1100  ;;  %8173 = vst [vmem:[#allocation82_spill] sm:$0xff] %v4873_v45  ;;  %v8174_v2 = vld [vmem:[#allocation26_spill] sm:$0xff] }
 0x1f3   :  { %8171 = vst [vmem:[#allocation80_spill] sm:$0xff] %v4867_v51  ;;  %2841 = vperm.xlu0 %3897, %v2823_v52   ;;  %v716_v51 = vsel %vm711_vm1, %v4505_v38, %v8174_v2  ;;  %8175 = vst [vmem:[#allocation26_spill] sm:$0xff] %v4887_v41  ;;  %v724_v52 = vsel %vm711_vm1, %v8177_v44, %v4501_v39  ;;  %v712_v38 = vsel %vm711_vm1, %v8174_v2, %v8177_v44  ;;  %v3804_v2 = vld [vmem:[%s7898_s1 + $0xc] sm:$0xf] }
 0x1f4   :  { %2836 = vperm.xlu1 %3898, %v2822_v48   ;;  %8176 = vst [vmem:[#allocation83_spill] sm:$0xff] %v4890_v58  ;;  %v8179_v48 = vld [vmem:[#allocation27_spill] sm:$0xff]  ;;  %v4911_v39 = vrot.slane %v3802_v50, %v4847_v0  ;;  %v4921_v44 = vrot.slane %v3802_v50, %v4854_v47  ;;  %v750_v42 = vmul.f32 %v4887_v41, %v724_v52  ;;  %8185 = vst [vmem:[#allocation86_spill] sm:$0xff] %v4928_v40 }
 0x1f5   :  { %v4899_v56 = vpop.permute.xlu0 %1114  ;;  %v717_v59 = vsel %vm711_vm1, %v8180_v53, %v8179_v48  ;;  %v753_v7 = vmul.f32 %v4890_v58, %v712_v38  ;;  %v4945_v50 = vrot.slane %v3803_v61, %v4860_v46  ;;  %v4950_v26 = vrot.slane %v3804_v2, %v4847_v0  ;;  %8199 = vst [vmem:[#allocation7_spill] sm:$0xff] %v4970_v25 }
 0x1f6   :  { %8178 = vst [vmem:[#allocation28_spill] sm:$0xff] %v4899_v56  ;;  %8181 = vst [vmem:[#allocation27_spill] sm:$0xff] %v4911_v39  ;;  %v4913_v62 = vpop.permute.xlu1 %1116  ;;  %v752_v56 = vmul.f32 %v4873_v45, %v716_v51  ;;  %v4934_v51 = vrot.slane %v3803_v61, %v4849_v1  ;;  %v756_v60 = vmul.f32 %v4873_v45, %v717_v59 }
 0x1f7   :  { %8182 = vst [vmem:[#allocation29_spill] sm:$0xff] %v4913_v62  ;;  %8184 = vst [vmem:[#allocation85_spill] sm:$0xff] %v4921_v44  ;;  %v4931_v62 = vrot.slane %v3803_v61, %v4847_v0  ;;  %v4953_v63 = vrot.slane %v3804_v2, %v4849_v1  ;;  %v4956_v32 = vrot.slane %v3804_v2, %v4854_v47  ;;  %v8197_v61 = vld [vmem:[#allocation8_spill] sm:$0xff] }
 0x1f8   :  { %8187 = vst [vmem:[#allocation88_spill] sm:$0xff] %v4934_v51  ;;  %8189 = vst [vmem:[#allocation90_spill] sm:$0xff] %v4945_v50  ;;  %v4959_v38 = vrot.slane %v3804_v2, %v4860_v46  ;;  %v768_v50 = vadd.f32 %v752_v56, %v8197_v61  ;;  %v8203_v56 = vld [vmem:[#allocation10_spill] sm:$0xff]  ;;  %v8204_v61 = vld [vmem:[#allocation12_spill] sm:$0xff] }
 0x1f9   :  { %8186 = vst [vmem:[#allocation87_spill] sm:$0xff] %v4931_v62  ;;  %v4947_v52 = vpop.permute.xlu0 %1106  ;;  %8191 = vst [vmem:[#allocation92_spill] sm:$0xff] %v4950_v26  ;;  %v8226_v62 = vld [vmem:[#allocation17_spill] sm:$0xff] }
 0x1fa   :  { %8190 = vst [vmem:[#allocation91_spill] sm:$0xff] %v4947_v52  ;;  %8192 = vst [vmem:[#allocation93_spill] sm:$0xff] %v4953_v63  ;;  %v4961_v59 = vpop.permute.xlu1 %1108  ;;  %v8198_v52 = vld [vmem:[#allocation30_spill] sm:$0xff] }
 0x1fb   :  { %8193 = vst [vmem:[#allocation94_spill] sm:$0xff] %v4956_v32  ;;  %8194 = vst [vmem:[#allocation95_spill] sm:$0xff] %v4959_v38  ;;  %v721_v26 = vsel %vm711_vm1, %v8198_v52, %v8180_v53  ;;  %v8200_v63 = vld [vmem:[#allocation6_spill] sm:$0xff]  ;;  %v8201_v32 = vld [vmem:[#allocation31_spill] sm:$0xff]  ;;  %v4987_v53 = vadd.f32 %v753_v7, %v8203_v56 }
 0x1fc   :  { %8195 = vst [vmem:[#allocation96_spill] sm:$0xff] %v4961_v59  ;;  %v4973_v28 = vadd.f32 %v750_v42, %v8200_v63  ;;  %v713_v2 = vsel %vm711_vm1, %v8179_v48, %v8201_v32  ;;  %v725_v36 = vsel %vm711_vm1, %v8201_v32, %v8198_v52  ;;  %8202 = vst [vmem:[#allocation8_spill] sm:$0xff] %v4984_v55  ;;  %v8205_v63 = vld [vmem:[#allocation34_spill] sm:$0xff]  ;;  %v8206_v42 = vld [vmem:[#allocation36_spill] sm:$0xff] }
 0x1fd   :  { %v772_v59 = vadd.f32 %v756_v60, %v8204_v61  ;;  %v718_v25 = vsel %vm711_vm1, %v8206_v42, %v8205_v63  ;;  %v8207_v48 = vld [vmem:[#allocation32_spill] sm:$0xff]  ;;  %v4998_v37 = vpop.permute.xlu0 %1122  ;;  %v755_v32 = vmul.f32 %v4870_v57, %v721_v26  ;;  %v8209_v52 = vld [vmem:[#allocation35_spill] sm:$0xff]  ;;  %v8210_v55 = vld [vmem:[#allocation37_spill] sm:$0xff]  ;;  %v5010_v61 = vrot.slane %v3805_v54, %v4849_v1 }
 0x1fe   :  { %v722_v38 = vsel %vm711_vm1, %v8207_v48, %v8206_v42  ;;  %8208 = vst [vmem:[#allocation30_spill] sm:$0xff] %v4998_v37  ;;  %v719_v7 = vsel %vm711_vm1, %v8210_v55, %v8209_v52  ;;  %v8211_v60 = vld [vmem:[#allocation33_spill] sm:$0xff]  ;;  %v5012_v31 = vpop.permute.xlu1 %1124  ;;  %v754_v42 = vmul.f32 %v4887_v41, %v725_v36  ;;  %v757_v37 = vmul.f32 %v4890_v58, %v713_v2 }
 0x1ff   :  { %v723_v56 = vsel %vm711_vm1, %v8211_v60, %v8210_v55  ;;  %8212 = vst [vmem:[#allocation6_spill] sm:$0xff] %v5010_v61  ;;  %8213 = vst [vmem:[#allocation31_spill] sm:$0xff] %v5012_v31  ;;  %v714_v26 = vsel %vm711_vm1, %v8205_v63, %v4611_v5  ;;  %v726_v34 = vsel %vm711_vm1, %v4611_v5, %v8207_v48 }
 0x200   :  { %v759_v55 = vmul.f32 %v4870_v57, %v722_v38  ;;  %v760_v61 = vmul.f32 %v4873_v45, %v718_v25  ;;  %v715_v36 = vsel %vm711_vm1, %v8209_v52, %v4613_v43  ;;  %v727_v2 = vsel %vm711_vm1, %v4613_v43, %v8211_v60 }
 0x201   :  { %v763_v63 = vmul.f32 %v4870_v57, %v723_v56  ;;  %v764_v31 = vmul.f32 %v4873_v45, %v719_v7  ;;  %v819_v5 = vsel %vm814_vm2, %v4635_v9, %v4627_v4  ;;  %v823_v25 = vsel %vm814_vm2, %v4619_v49, %v4635_v9  ;;  %v5044_v38 = vpop.permute.xlu0 %1198  ;;  %v8216_v56 = vld [vmem:[#allocation11_spill] sm:$0xff]  ;;  %v8218_v57 = vld [vmem:[#allocation9_spill] sm:$0xff] }
 0x202   :  { %8214 = vst [vmem:[#allocation10_spill] sm:$0xff] %v5044_v38  ;;  %v758_v48 = vmul.f32 %v4887_v41, %v726_v34  ;;  %v761_v43 = vmul.f32 %v4890_v58, %v714_v26  ;;  %v820_v52 = vsel %vm814_vm2, %v4637_v12, %v4629_v8  ;;  %v824_v7 = vsel %vm814_vm2, %v4621_v6, %v4637_v12  ;;  %v5056_v60 = vpop.permute.xlu1 %1200  ;;  %v3806_v12 = vld [vmem:[%s7898_s1 + $0x18] sm:$0xf] }
 0x203   :  { %8215 = vst [vmem:[#allocation12_spill] sm:$0xff] %v5056_v60  ;;  %v771_v9 = vadd.f32 %v755_v32, %v8216_v56  ;;  %v762_v45 = vmul.f32 %v4887_v41, %v727_v2  ;;  %v765_v34 = vmul.f32 %v4890_v58, %v715_v36  ;;  %v5062_v26 = vrot.slane %v3805_v54, %v4860_v46  ;;  %v8220_v32 = vld [vmem:[#allocation15_spill] sm:$0xff]  ;;  %v8221_v36 = vld [vmem:[#allocation16_spill] sm:$0xff]  ;;  %v8224_v58 = vld [vmem:[#allocation14_spill] sm:$0xff] }
 0x204   :  { %v770_v38 = vadd.f32 %v754_v42, %v8218_v57  ;;  %v773_v22 = vadd.f32 %v757_v37, %v8219_v29  ;;  %v855_v30 = vmul.f32 %v4911_v39, %v823_v25  ;;  %v856_v24 = vmul.f32 %v4918_v33, %v819_v5  ;;  %v8222_v29 = vld [vmem:[#allocation19_spill] sm:$0xff]  ;;  %v8223_v25 = vld [vmem:[#allocation20_spill] sm:$0xff]  ;;  %v8225_v60 = vld [vmem:[#allocation18_spill] sm:$0xff] }
 0x205   :  { %8217 = vst [vmem:[#allocation34_spill] sm:$0xff] %v5062_v26  ;;  %v775_v2 = vadd.f32 %v759_v55, %v8220_v32  ;;  %v776_v56 = vadd.f32 %v760_v61, %v8221_v36  ;;  %v859_v54 = vmul.f32 %v4911_v39, %v824_v7  ;;  %v860_v57 = vmul.f32 %v4918_v33, %v820_v52  ;;  %v5076_v42 = vpop.permute.xlu0 %1214  ;;  %v8227_v32 = vld [vmem:[#allocation21_spill] sm:$0xff] }
 0x206   :  { %v779_v37 = vadd.f32 %v763_v63, %v8222_v29  ;;  %v780_v5 = vadd.f32 %v764_v31, %v8223_v25  ;;  %v774_v41 = vadd.f32 %v758_v48, %v8224_v58  ;;  %v777_v26 = vadd.f32 %v761_v43, %v8225_v60  ;;  %v5082_v51 = vpop.permute.xlu1 %1216 }
 0x207   :  { %v778_v55 = vadd.f32 %v762_v45, %v8226_v62  ;;  %v781_v61 = vadd.f32 %v765_v34, %v8227_v32  ;;  %v5087_v7 = vrot.slane %v3806_v12, %v4854_v47  ;;  %v5090_v52 = vrot.slane %v3806_v12, %v4847_v0 }
 0x208   :  { %v5092_v36 = vadd.f32 %v855_v30, %v767_v35  ;;  %v5094_v63 = vadd.f32 %v856_v24, %v768_v50  ;;  %v815_v31 = vsel %vm814_vm2, %v4627_v4, %v4643_v11  ;;  %v827_v62 = vsel %vm814_vm2, %v4643_v11, %v4619_v49 }
 0x209   :  { %8228 = vst [vmem:[#allocation36_spill] sm:$0xff] %v5087_v7  ;;  %8229 = vst [vmem:[#allocation32_spill] sm:$0xff] %v5090_v52  ;;  %v5104_v58 = vadd.f32 %v859_v54, %v771_v9  ;;  %v5106_v45 = vadd.f32 %v860_v57, %v772_v59  ;;  %v816_v24 = vsel %vm814_vm2, %v4629_v8, %v4645_v15  ;;  %v5116_v4 = vpop.permute.xlu0 %1206 }
 0x20a   :  { %v828_v30 = vsel %vm814_vm2, %v4645_v15, %v4621_v6  ;;  %v821_v49 = vsel %vm814_vm2, %v4667_v17, %v4659_v13  ;;  %v825_v11 = vsel %vm814_vm2, %v4651_v10, %v4667_v17  ;;  %v822_v8 = vsel %vm814_vm2, %v4669_v20, %v4661_v16  ;;  %v5134_v15 = vpop.permute.xlu1 %1208 }
 0x20b   :  { %v826_v6 = vsel %vm814_vm2, %v4653_v14, %v4669_v20  ;;  %v854_v35 = vmul.f32 %v4921_v44, %v827_v62  ;;  %v857_v50 = vmul.f32 %v4928_v40, %v815_v31  ;;  %v817_v17 = vsel %vm814_vm2, %v4659_v13, %v4675_v19 }
 0x20c   :  { %v829_v59 = vsel %vm814_vm2, %v4675_v19, %v4651_v10  ;;  %v858_v48 = vmul.f32 %v4921_v44, %v828_v30  ;;  %v861_v20 = vmul.f32 %v4928_v40, %v816_v24  ;;  %v818_v43 = vsel %vm814_vm2, %v4661_v16, %v4677_v23 }
 0x20d   :  { %v830_v60 = vsel %vm814_vm2, %v4677_v23, %v4653_v14  ;;  %v863_v13 = vmul.f32 %v4911_v39, %v825_v11  ;;  %v864_v9 = vmul.f32 %v4918_v33, %v821_v49  ;;  %v867_v10 = vmul.f32 %v4911_v39, %v826_v6  ;;  %v5160_v34 = vpop.permute.xlu0 %1222 }
 0x20e   :  { %v868_v19 = vmul.f32 %v4918_v33, %v822_v8  ;;  %v862_v54 = vmul.f32 %v4921_v44, %v829_v59  ;;  %v865_v57 = vmul.f32 %v4928_v40, %v817_v17  ;;  %v5165_v16 = vrot.slane %v3806_v12, %v4849_v1  ;;  %v5170_v14 = vpop.permute.xlu1 %1224  ;;  %v3807_v59 = vld [vmem:[%s7898_s1 + $0x1c] sm:$0xf] }
 0x20f   :  { %v5168_v29 = vrot.slane %v3806_v12, %v4860_v46  ;;  %v866_v23 = vmul.f32 %v4921_v44, %v830_v60  ;;  %v869_v25 = vmul.f32 %v4928_v40, %v818_v43  ;;  %v923_v32 = vsel %vm918_vm3, %v4699_v27, %v4691_v21  ;;  %v8232_v43 = vld [vmem:[#allocation87_spill] sm:$0xff]  ;;  %v8233_v60 = vld [vmem:[#allocation88_spill] sm:$0xff]  ;;  %v8250_v44 = vld [vmem:[#allocation49_spill] sm:$0xff] }
 0x210   :  { %8230 = vst [vmem:[#allocation35_spill] sm:$0xff] %v5165_v16  ;;  %v927_v31 = vsel %vm918_vm3, %v4683_v18, %v4699_v27  ;;  %v870_v62 = vadd.f32 %v854_v35, %v4973_v28  ;;  %v873_v12 = vadd.f32 %v857_v50, %v4987_v53  ;;  %v874_v24 = vadd.f32 %v858_v48, %v770_v38  ;;  %v8234_v35 = vld [vmem:[#allocation39_spill] sm:$0xff]  ;;  %v8235_v53 = vld [vmem:[#allocation40_spill] sm:$0xff]  ;;  %v8236_v38 = vld [vmem:[#allocation38_spill] sm:$0xff] }
 0x211   :  { %8231 = vst [vmem:[#allocation37_spill] sm:$0xff] %v5168_v29  ;;  %v877_v30 = vadd.f32 %v861_v20, %v773_v22  ;;  %v879_v49 = vadd.f32 %v863_v13, %v775_v2  ;;  %v880_v11 = vadd.f32 %v864_v9, %v776_v56  ;;  %v5184_v8 = vadd.f32 %v867_v10, %v779_v37  ;;  %v5188_v17 = vpop.permute.xlu0 %1204  ;;  %v8238_v20 = vld [vmem:[#allocation41_spill] sm:$0xff] }
 0x212   :  { %v5186_v6 = vadd.f32 %v868_v19, %v780_v5  ;;  %v959_v27 = vmul.f32 %v8232_v43, %v927_v31  ;;  %v960_v28 = vmul.f32 %v8233_v60, %v923_v32  ;;  %v924_v22 = vsel %vm918_vm3, %v8235_v53, %v8234_v35  ;;  %v5204_v56 = vpop.permute.xlu1 %1202  ;;  %v8244_v31 = vld [vmem:[#allocation43_spill] sm:$0xff] }
 0x213   :  { %v928_v2 = vsel %vm918_vm3, %v8236_v38, %v8235_v53  ;;  %8237 = vst [vmem:[#allocation33_spill] sm:$0xff] %v5204_v56  ;;  %v878_v37 = vadd.f32 %v862_v54, %v774_v41  ;;  %v881_v5 = vadd.f32 %v865_v57, %v777_v26  ;;  %v5206_v50 = vadd.f32 %v866_v23, %v778_v55  ;;  %v8242_v23 = vld [vmem:[#allocation45_spill] sm:$0xff] }
 0x214   :  { %v5208_v48 = vadd.f32 %v869_v25, %v781_v61  ;;  %v919_v13 = vsel %vm918_vm3, %v4691_v21, %v8238_v20  ;;  %v931_v9 = vsel %vm918_vm3, %v8238_v20, %v4683_v18  ;;  %v5219_v10 = vrot.slane %v3807_v59, %v4854_v47  ;;  %v8241_v61 = vld [vmem:[#allocation42_spill] sm:$0xff]  ;;  %v8243_v25 = vld [vmem:[#allocation47_spill] sm:$0xff]  ;;  %v8248_v20 = vld [vmem:[#allocation48_spill] sm:$0xff] }
 0x215   :  { %v5222_v41 = vrot.slane %v3807_v59, %v4847_v0  ;;  %v963_v26 = vmul.f32 %v8232_v43, %v928_v2  ;;  %v964_v55 = vmul.f32 %v8233_v60, %v924_v22  ;;  %v920_v21 = vsel %vm918_vm3, %v8234_v35, %v8241_v61  ;;  %v5234_v19 = vpop.permute.xlu0 %1220  ;;  %v8245_v22 = vld [vmem:[#allocation89_spill] sm:$0xff]  ;;  %v8246_v2 = vld [vmem:[#allocation90_spill] sm:$0xff] }
 0x216   :  { %8239 = vst [vmem:[#allocation11_spill] sm:$0xff] %v5219_v10  ;;  %v932_v18 = vsel %vm918_vm3, %v8241_v61, %v8236_v38  ;;  %v5237_v54 = vadd.f32 %v959_v27, %v5092_v36  ;;  %v5240_v57 = vadd.f32 %v960_v28, %v5094_v63  ;;  %v925_v32 = vsel %vm918_vm3, %v8243_v25, %v8242_v23  ;;  %v5250_v53 = vpop.permute.xlu1 %1218  ;;  %v8247_v27 = vld [vmem:[#allocation46_spill] sm:$0xff]  ;;  %v8249_v28 = vld [vmem:[#allocation44_spill] sm:$0xff] }
 0x217   :  { %8240 = vst [vmem:[#allocation9_spill] sm:$0xff] %v5222_v41  ;;  %v929_v35 = vsel %vm918_vm3, %v8244_v31, %v8243_v25  ;;  %v958_v38 = vmul.f32 %v8245_v22, %v931_v9  ;;  %v961_v36 = vmul.f32 %v8246_v2, %v919_v13  ;;  %v926_v63 = vsel %vm918_vm3, %v8248_v20, %v8247_v27 }
 0x218   :  { %v930_v61 = vsel %vm918_vm3, %v8249_v28, %v8248_v20  ;;  %v962_v40 = vmul.f32 %v8245_v22, %v932_v18  ;;  %v965_v25 = vmul.f32 %v8246_v2, %v920_v21  ;;  %v921_v9 = vsel %vm918_vm3, %v8242_v23, %v8250_v44 }
 0x219   :  { %v933_v13 = vsel %vm918_vm3, %v8250_v44, %v8244_v31  ;;  %v979_v33 = vadd.f32 %v963_v26, %v5104_v58  ;;  %v980_v39 = vadd.f32 %v964_v55, %v5106_v45  ;;  %v967_v20 = vmul.f32 %v8232_v43, %v929_v35  ;;  %v5276_v41 = vpop.permute.xlu0 %1212  ;;  %v8253_v26 = vld [vmem:[#allocation50_spill] sm:$0xff] }
 0x21a   :  { %v968_v18 = vmul.f32 %v8233_v60, %v925_v32  ;;  %v971_v21 = vmul.f32 %v8232_v43, %v930_v61  ;;  %v972_v10 = vmul.f32 %v8233_v60, %v926_v63  ;;  %v5280_v23 = vpop.permute.xlu1 %1210  ;;  %v5283_v56 = vrot.slane %v3807_v59, %v4849_v1  ;;  %v8254_v43 = vld [vmem:[#allocation53_spill] sm:$0xff] }
 0x21b   :  { %v5286_v44 = vrot.slane %v3807_v59, %v4860_v46  ;;  %v966_v58 = vmul.f32 %v8245_v22, %v933_v13  ;;  %v969_v45 = vmul.f32 %v8246_v2, %v921_v9  ;;  %v922_v55 = vsel %vm918_vm3, %v8247_v27, %v8253_v26  ;;  %v8255_v13 = vld [vmem:[#allocation55_spill] sm:$0xff] }
 0x21c   :  { %8251 = vst [vmem:[#allocation13_spill] sm:$0xff] %v5283_v56  ;;  %v934_v32 = vsel %vm918_vm3, %v8253_v26, %v8249_v28  ;;  %v974_v31 = vadd.f32 %v958_v38, %v870_v62  ;;  %v977_v35 = vadd.f32 %v961_v36, %v873_v12  ;;  %v978_v63 = vadd.f32 %v962_v40, %v874_v24  ;;  %v8257_v40 = vld [vmem:[#allocation54_spill] sm:$0xff]  ;;  %v8258_v12 = vld [vmem:[#allocation56_spill] sm:$0xff] }
 0x21d   :  { %8252 = vst [vmem:[#allocation15_spill] sm:$0xff] %v5286_v44  ;;  %v981_v61 = vadd.f32 %v965_v25, %v877_v30  ;;  %v983_v59 = vadd.f32 %v967_v20, %v879_v49  ;;  %v984_v60 = vadd.f32 %v968_v18, %v880_v11  ;;  %v1027_v9 = vsel %vm1022_vm4, %v8255_v13, %v8254_v43  ;;  %v8256_v44 = vld [vmem:[#allocation51_spill] sm:$0xff]  ;;  %v5306_v56 = vpop.permute.xlu0 %1228  ;;  %v8259_v30 = vld [vmem:[#allocation52_spill] sm:$0xff]  ;;  %v3808_v18 = vld [vmem:[%s7898_s1 + $0x20] sm:$0xf] }
 0x21e   :  { %v1031_v27 = vsel %vm1022_vm4, %v8256_v44, %v8255_v13  ;;  %v970_v28 = vmul.f32 %v8245_v22, %v934_v32  ;;  %v973_v62 = vmul.f32 %v8246_v2, %v922_v55  ;;  %v1028_v24 = vsel %vm1022_vm4, %v8258_v12, %v8257_v40  ;;  %v5319_v11 = vpop.permute.xlu1 %1226  ;;  %v8261_v26 = vld [vmem:[#allocation92_spill] sm:$0xff]  ;;  %v8262_v32 = vld [vmem:[#allocation93_spill] sm:$0xff] }
 0x21f   :  { %v1032_v49 = vsel %vm1022_vm4, %v8259_v30, %v8258_v12  ;;  %8260 = vst [vmem:[#allocation16_spill] sm:$0xff] %v5319_v11  ;;  %v987_v38 = vadd.f32 %v971_v21, %v5184_v8  ;;  %v5323_v36 = vadd.f32 %v972_v10, %v5186_v6  ;;  %v5325_v25 = vadd.f32 %v966_v58, %v878_v37  ;;  %v8263_v12 = vld [vmem:[#allocation57_spill] sm:$0xff]  ;;  %v8264_v10 = vld [vmem:[#allocation58_spill] sm:$0xff] }
 0x220   :  { %v5327_v20 = vadd.f32 %v969_v45, %v881_v5  ;;  %v1063_v55 = vmul.f32 %v8261_v26, %v1031_v27  ;;  %v1064_v13 = vmul.f32 %v8262_v32, %v1027_v9  ;;  %v1023_v8 = vsel %vm1022_vm4, %v8254_v43, %v8263_v12  ;;  %v8266_v9 = vld [vmem:[#allocation63_spill] sm:$0xff]  ;;  %v8272_v22 = vld [vmem:[#allocation61_spill] sm:$0xff] }
 0x221   :  { %v1035_v6 = vsel %vm1022_vm4, %v8263_v12, %v8256_v44  ;;  %v1067_v37 = vmul.f32 %v8261_v26, %v1032_v49  ;;  %v1068_v5 = vmul.f32 %v8262_v32, %v1028_v24  ;;  %v1024_v21 = vsel %vm1022_vm4, %v8257_v40, %v8264_v10  ;;  %v5352_v43 = vpop.permute.xlu0 %1302  ;;  %v8267_v27 = vld [vmem:[#allocation59_spill] sm:$0xff]  ;;  %v8270_v12 = vld [vmem:[#allocation94_spill] sm:$0xff] }
 0x222   :  { %v1036_v58 = vsel %vm1022_vm4, %v8264_v10, %v8259_v30  ;;  %8265 = vst [vmem:[#allocation19_spill] sm:$0xff] %v5352_v43  ;;  %v986_v45 = vadd.f32 %v970_v28, %v5206_v50  ;;  %v5356_v44 = vadd.f32 %v973_v62, %v5208_v48  ;;  %v1033_v24 = vsel %vm1022_vm4, %v8267_v27, %v8266_v9  ;;  %v5362_v49 = vpop.permute.xlu1 %1304  ;;  %v8271_v30 = vld [vmem:[#allocation95_spill] sm:$0xff]  ;;  %v8275_v43 = vld [vmem:[#allocation60_spill] sm:$0xff] }
 0x223   :  { %8268 = vst [vmem:[#allocation20_spill] sm:$0xff] %v5362_v49  ;;  %v5365_v40 = vrot.slane %v3808_v18, %v4854_v47  ;;  %v1062_v2 = vmul.f32 %v8270_v12, %v1035_v6  ;;  %v1065_v10 = vmul.f32 %v8271_v30, %v1023_v8  ;;  %v1029_v50 = vsel %vm1022_vm4, %v8266_v9, %v8272_v22  ;;  %v8274_v49 = vld [vmem:[#allocation64_spill] sm:$0xff] }
 0x224   :  { %v5374_v48 = vrot.slane %v3808_v18, %v4847_v0  ;;  %v1079_v28 = vadd.f32 %v1063_v55, %v5237_v54  ;;  %v5378_v62 = vadd.f32 %v1064_v13, %v5240_v57  ;;  %v1066_v47 = vmul.f32 %v8270_v12, %v1036_v58  ;;  %v8277_v57 = vld [vmem:[#allocation62_spill] sm:$0xff] }
 0x225   :  { %8269 = vst [vmem:[#allocation14_spill] sm:$0xff] %v5365_v40  ;;  %v1069_v40 = vmul.f32 %v8271_v30, %v1024_v21  ;;  %v1083_v6 = vadd.f32 %v1067_v37, %v979_v33  ;;  %v5382_v11 = vadd.f32 %v1068_v5, %v980_v39  ;;  %v1071_v8 = vmul.f32 %v8261_v26, %v1033_v24  ;;  %v5389_v0 = vpop.permute.xlu0 %1318  ;;  %v8281_v21 = vld [vmem:[#allocation65_spill] sm:$0xff] }
 0x226   :  { %8273 = vst [vmem:[#allocation18_spill] sm:$0xff] %v5374_v48  ;;  %v1034_v9 = vsel %vm1022_vm4, %v8275_v43, %v8274_v49  ;;  %8276 = vst [vmem:[#allocation17_spill] sm:$0xff] %v5389_v0  ;;  %v1072_v54 = vmul.f32 %v8262_v32, %v1029_v50  ;;  %v1030_v55 = vsel %vm1022_vm4, %v8274_v49, %v8277_v57  ;;  %v5396_v13 = vpop.permute.xlu1 %1320  ;;  %v8300_v0 = vld [vmem:[#allocation28_spill] sm:$0xff] }
 0x227   :  { %8278 = vst [vmem:[#allocation21_spill] sm:$0xff] %v5396_v13  ;;  %v5399_v33 = vrot.slane %v3808_v18, %v4849_v1  ;;  %v5402_v39 = vrot.slane %v3808_v18, %v4860_v46  ;;  %v1078_v37 = vadd.f32 %v1062_v2, %v974_v31  ;;  %v1081_v5 = vadd.f32 %v1065_v10, %v977_v35  ;;  %v8283_v18 = vld [vmem:[#allocation71_spill] sm:$0xff] }
 0x228   :  { %v1025_v58 = vsel %vm1022_vm4, %v8272_v22, %v8281_v21  ;;  %v1037_v24 = vsel %vm1022_vm4, %v8281_v21, %v8267_v27  ;;  %v1082_v49 = vadd.f32 %v1066_v47, %v978_v63  ;;  %v1085_v50 = vadd.f32 %v1069_v40, %v981_v61  ;;  %v8284_v27 = vld [vmem:[#allocation67_spill] sm:$0xff]  ;;  %v8285_v40 = vld [vmem:[#allocation69_spill] sm:$0xff] }
 0x229   :  { %8279 = vst [vmem:[#allocation39_spill] sm:$0xff] %v5399_v33  ;;  %8280 = vst [vmem:[#allocation40_spill] sm:$0xff] %v5402_v39  ;;  %v1075_v1 = vmul.f32 %v8261_v26, %v1034_v9  ;;  %v8282_v33 = vld [vmem:[#allocation66_spill] sm:$0xff]  ;;  %v5417_v31 = vadd.f32 %v1071_v8, %v983_v59  ;;  %v1076_v35 = vmul.f32 %v8262_v32, %v1030_v55  ;;  %v5428_v63 = vpop.permute.xlu0 %1310  ;;  %v8288_v55 = vld [vmem:[#allocation72_spill] sm:$0xff] }
 0x22a   :  { %v1038_v2 = vsel %vm1022_vm4, %v8282_v33, %v8275_v43  ;;  %v1026_v22 = vsel %vm1022_vm4, %v8277_v57, %v8282_v33  ;;  %v1135_v47 = vsel %vm1126_vm5, %v8284_v27, %v8283_v18  ;;  %v5430_v61 = vadd.f32 %v1072_v54, %v984_v60  ;;  %v5439_v8 = vpop.permute.xlu1 %1312  ;;  %v8287_v57 = vld [vmem:[#allocation70_spill] sm:$0xff]  ;;  %v8289_v54 = vld [vmem:[#allocation68_spill] sm:$0xff]  ;;  %v8290_v21 = vld [vmem:[#allocation73_spill] sm:$0xff] }
 0x22b   :  { %v1070_v43 = vmul.f32 %v8270_v12, %v1037_v24  ;;  %v1073_v59 = vmul.f32 %v8271_v30, %v1025_v58  ;;  %v1131_v10 = vsel %vm1126_vm5, %v8283_v18, %v8285_v40  ;;  %8286 = vst [vmem:[#allocation38_spill] sm:$0xff] %v5439_v8  ;;  %v1074_v9 = vmul.f32 %v8270_v12, %v1038_v2  ;;  %v8291_v46 = vld [vmem:[#allocation7_spill] sm:$0xff]  ;;  %v8292_v26 = vld [vmem:[#allocation8_spill] sm:$0xff]  ;;  %v8293_v39 = vld [vmem:[#allocation74_spill] sm:$0xff] }
 0x22c   :  { %v1132_v60 = vsel %vm1126_vm5, %v8288_v55, %v8287_v57  ;;  %v1136_v33 = vsel %vm1126_vm5, %v8289_v54, %v8288_v55  ;;  %v1127_v58 = vsel %vm1126_vm5, %v8285_v40, %v8290_v21  ;;  %v1091_v24 = vadd.f32 %v1075_v1, %v987_v38 }
 0x22d   :  { %v1077_v18 = vmul.f32 %v8271_v30, %v1026_v22  ;;  %v1166_v2 = vmul.f32 %v8291_v46, %v1135_v47  ;;  %v1139_v12 = vsel %vm1126_vm5, %v8290_v21, %v8284_v27  ;;  %v5461_v32 = vadd.f32 %v1076_v35, %v5323_v36  ;;  %v5472_v38 = vpop.permute.xlu0 %1326  ;;  %v8295_v36 = vld [vmem:[#allocation6_spill] sm:$0xff]  ;;  %v8296_v47 = vld [vmem:[#allocation91_spill] sm:$0xff] }
 0x22e   :  { %v1167_v55 = vmul.f32 %v8292_v26, %v1131_v10  ;;  %v1128_v40 = vsel %vm1126_vm5, %v8287_v57, %v8293_v39  ;;  %v1140_v1 = vsel %vm1126_vm5, %v8293_v39, %v8289_v54  ;;  %8294 = vst [vmem:[#allocation41_spill] sm:$0xff] %v5472_v38  ;;  %v1170_v22 = vmul.f32 %v8291_v46, %v1136_v33  ;;  %v8297_v10 = vld [vmem:[#allocation79_spill] sm:$0xff]  ;;  %v5481_v30 = vpop.permute.xlu1 %1328  ;;  %v8299_v54 = vld [vmem:[#allocation34_spill] sm:$0xff] }
 0x22f   :  { %v1171_v27 = vmul.f32 %v8292_v26, %v1132_v60  ;;  %v1168_v35 = vmul.f32 %v8295_v36, %v1127_v58  ;;  %v1137_v21 = vsel %vm1126_vm5, %v8297_v10, %v8296_v47  ;;  %8298 = vst [vmem:[#allocation42_spill] sm:$0xff] %v5481_v30  ;;  %v1086_v57 = vadd.f32 %v1070_v43, %v5325_v25  ;;  %v8301_v43 = vld [vmem:[#allocation96_spill] sm:$0xff] }
 0x230   :  { %v1089_v48 = vadd.f32 %v1073_v59, %v5327_v20  ;;  %v1090_v39 = vadd.f32 %v1074_v9, %v986_v45  ;;  %v1169_v38 = vmul.f32 %v8299_v54, %v1139_v12  ;;  %v1093_v33 = vadd.f32 %v1077_v18, %v5356_v44  ;;  %v8302_v20 = vld [vmem:[#allocation80_spill] sm:$0xff]  ;;  %v8303_v9 = vld [vmem:[#allocation29_spill] sm:$0xff] }
 0x231   :  { %v1182_v8 = vadd.f32 %v1166_v2, %v1078_v37  ;;  %v1172_v60 = vmul.f32 %v8295_v36, %v1128_v40  ;;  %v1173_v58 = vmul.f32 %v8299_v54, %v1140_v1  ;;  %v1183_v13 = vadd.f32 %v1167_v55, %v1079_v28  ;;  %v5498_v12 = vpop.permute.xlu0 %1308  ;;  %v8304_v55 = vld [vmem:[#allocation30_spill] sm:$0xff] }
 0x232   :  { %v1133_v30 = vsel %vm1126_vm5, %v8296_v47, %v8300_v0  ;;  %v1174_v25 = vmul.f32 %v8291_v46, %v1137_v21  ;;  %v1138_v45 = vsel %vm1126_vm5, %v8302_v20, %v8301_v43  ;;  %v1186_v44 = vadd.f32 %v1170_v22, %v1082_v49  ;;  %v5505_v18 = vpop.permute.xlu1 %1306  ;;  %v8305_v49 = vld [vmem:[#allocation31_spill] sm:$0xff]  ;;  %v8306_v47 = vld [vmem:[#allocation10_spill] sm:$0xff] }
 0x233   :  { %v1187_v37 = vadd.f32 %v1171_v27, %v1083_v6  ;;  %v1184_v59 = vadd.f32 %v1168_v35, %v5378_v62  ;;  %v1134_v28 = vsel %vm1126_vm5, %v8301_v43, %v8303_v9  ;;  %v1185_v2 = vadd.f32 %v1169_v38, %v1081_v5 }
 0x234   :  { %v1129_v40 = vsel %vm1126_vm5, %v8300_v0, %v8304_v55  ;;  %v1141_v6 = vsel %vm1126_vm5, %v8304_v55, %v8297_v10  ;;  %v1130_v62 = vsel %vm1126_vm5, %v8303_v9, %v8305_v49  ;;  %v1188_v1 = vadd.f32 %v1172_v60, %v5382_v11 }
 0x235   :  { %v1189_v22 = vadd.f32 %v1173_v58, %v1085_v50  ;;  %v1175_v5 = vmul.f32 %v8292_v26, %v1133_v30  ;;  %v1178_v38 = vmul.f32 %v8291_v46, %v1138_v45  ;;  %v5522_v27 = vadd.f32 %v1174_v25, %v1086_v57  ;;  %v5534_v50 = vpop.permute.xlu0 %1324  ;;  %v8307_v25 = vld [vmem:[#allocation12_spill] sm:$0xff] }
 0x236   :  { %v1179_v0 = vmul.f32 %v8292_v26, %v1134_v28  ;;  %v1142_v35 = vsel %vm1126_vm5, %v8305_v49, %v8302_v20  ;;  %v1239_v11 = vsel %vm1230_vm6, %v8306_v47, %v5116_v4  ;;  %v1176_v30 = vmul.f32 %v8295_v36, %v1129_v40  ;;  %v5543_v60 = vpop.permute.xlu1 %1322 }
 0x237   :  { %v1177_v10 = vmul.f32 %v8299_v54, %v1141_v6  ;;  %v1180_v21 = vmul.f32 %v8295_v36, %v1130_v62  ;;  %v1235_v57 = vsel %vm1230_vm6, %v5116_v4, %v5076_v42  ;;  %v1236_v58 = vsel %vm1230_vm6, %v5134_v15, %v5082_v51 }
 0x238   :  { %v1240_v43 = vsel %vm1230_vm6, %v8307_v25, %v5134_v15  ;;  %v1231_v20 = vsel %vm1230_vm6, %v5076_v42, %v5160_v34  ;;  %v1243_v4 = vsel %vm1230_vm6, %v5160_v34, %v8306_v47  ;;  %v1181_v45 = vmul.f32 %v8299_v54, %v1142_v35 }
 0x239   :  { %v1270_v9 = vmul.f32 %v5087_v7, %v1239_v11  ;;  %v1232_v28 = vsel %vm1230_vm6, %v5082_v51, %v5170_v14  ;;  %v1244_v15 = vsel %vm1230_vm6, %v5170_v14, %v8307_v25  ;;  %v1191_v42 = vadd.f32 %v1175_v5, %v5417_v31  ;;  %v5573_v6 = vpop.permute.xlu0 %1316 }
 0x23a   :  { %v1194_v55 = vadd.f32 %v1178_v38, %v1090_v39  ;;  %v1195_v40 = vadd.f32 %v1179_v0, %v1091_v24  ;;  %v1271_v34 = vmul.f32 %v5090_v52, %v1235_v57  ;;  %v1274_v49 = vmul.f32 %v5087_v7, %v1240_v43  ;;  %v5579_v47 = vpop.permute.xlu1 %1314 }
 0x23b   :  { %v1275_v62 = vmul.f32 %v5090_v52, %v1236_v58  ;;  %v1272_v35 = vmul.f32 %v5165_v16, %v1231_v20  ;;  %v1273_v51 = vmul.f32 %v5168_v29, %v1243_v4  ;;  %v5582_v14 = vadd.f32 %v1176_v30, %v5430_v61  ;;  %v8311_v4 = vld [vmem:[#allocation21_spill] sm:$0xff] }
 0x23c   :  { %v5584_v31 = vadd.f32 %v1177_v10, %v1089_v48  ;;  %v1276_v24 = vmul.f32 %v5165_v16, %v1232_v28  ;;  %v1277_v39 = vmul.f32 %v5168_v29, %v1244_v15  ;;  %v1196_v5 = vadd.f32 %v1180_v21, %v5461_v32  ;;  %v8308_v32 = vld [vmem:[#allocation33_spill] sm:$0xff] }
 0x23d   :  { %v5589_v38 = vadd.f32 %v1181_v45, %v1093_v33  ;;  %v1286_v0 = vadd.f32 %v1270_v9, %v1182_v8  ;;  %v1242_v11 = vsel %vm1230_vm6, %v5188_v17, %v5276_v41  ;;  %v1287_v57 = vadd.f32 %v1271_v34, %v1183_v13  ;;  %v5607_v33 = vpop.permute.xlu0 %1332  ;;  %v8312_v45 = vld [vmem:[#allocation38_spill] sm:$0xff]  ;;  %v8313_v9 = vld [vmem:[#allocation20_spill] sm:$0xff]  ;;  %v8314_v15 = vld [vmem:[#allocation41_spill] sm:$0xff] }
 0x23e   :  { %v1238_v48 = vsel %vm1230_vm6, %v5276_v41, %v5234_v19  ;;  %v1237_v61 = vsel %vm1230_vm6, %v5280_v23, %v5250_v53  ;;  %v1241_v8 = vsel %vm1230_vm6, %v8308_v32, %v5280_v23  ;;  %v1290_v30 = vadd.f32 %v1274_v49, %v1186_v44  ;;  %v5609_v58 = vpop.permute.xlu1 %1330 }
 0x23f   :  { %v1291_v10 = vadd.f32 %v1275_v62, %v1187_v37  ;;  %v1288_v13 = vadd.f32 %v1272_v35, %v1184_v59  ;;  %v1289_v21 = vadd.f32 %v1273_v51, %v1185_v2  ;;  %v1292_v41 = vadd.f32 %v1276_v24, %v1188_v1  ;;  %v8309_v59 = vld [vmem:[#allocation19_spill] sm:$0xff]  ;;  %v8310_v1 = vld [vmem:[#allocation17_spill] sm:$0xff]  ;;  %v8315_v51 = vld [vmem:[#allocation42_spill] sm:$0xff] }
 0x240   :  { %v1293_v25 = vadd.f32 %v1277_v39, %v1189_v22  ;;  %v1282_v43 = vmul.f32 %v5087_v7, %v1242_v11  ;;  %v1234_v20 = vsel %vm1230_vm6, %v5234_v19, %v5306_v56  ;;  %v1283_v23 = vmul.f32 %v5090_v52, %v1238_v48  ;;  %v8316_v11 = vld [vmem:[#allocation16_spill] sm:$0xff] }
 0x241   :  { %v1278_v44 = vmul.f32 %v5087_v7, %v1241_v8  ;;  %v1279_v37 = vmul.f32 %v5090_v52, %v1237_v61  ;;  %v1343_v2 = vsel %vm1334_vm7, %v8309_v59, %v5428_v63  ;;  %v1339_v22 = vsel %vm1334_vm7, %v5428_v63, %v8310_v1  ;;  %v1409_v49 = vpop.permute.xlu0 %1408 }
 0x242   :  { %v1340_v19 = vsel %vm1334_vm7, %v8312_v45, %v8311_v4  ;;  %v1344_v28 = vsel %vm1334_vm7, %v8313_v9, %v8312_v45  ;;  %v1335_v34 = vsel %vm1334_vm7, %v8310_v1, %v8314_v15  ;;  %v1246_v63 = vsel %vm1230_vm6, %v5306_v56, %v5188_v17  ;;  %v1407_v39 = vpop.permute.xlu1 %1406  ;;  %v8317_v56 = vld [vmem:[#allocation11_spill] sm:$0xff]  ;;  %v8319_v45 = vld [vmem:[#allocation13_spill] sm:$0xff] }
 0x243   :  { %v1284_v62 = vmul.f32 %v5165_v16, %v1234_v20  ;;  %v1347_v35 = vsel %vm1334_vm7, %v8314_v15, %v8309_v59  ;;  %v1336_v24 = vsel %vm1334_vm7, %v8311_v4, %v8315_v51  ;;  %v1233_v48 = vsel %vm1230_vm6, %v5250_v53, %v8316_v11  ;;  %v8318_v20 = vld [vmem:[#allocation9_spill] sm:$0xff] }
 0x244   :  { %v1245_v17 = vsel %vm1230_vm6, %v8316_v11, %v8308_v32  ;;  %v1374_v61 = vmul.f32 %v8317_v56, %v1343_v2  ;;  %v1348_v8 = vsel %vm1334_vm7, %v8315_v51, %v8313_v9  ;;  %v1375_v59 = vmul.f32 %v8318_v20, %v1339_v22  ;;  %v8320_v32 = vld [vmem:[#allocation15_spill] sm:$0xff] }
 0x245   :  { %v1378_v1 = vmul.f32 %v8317_v56, %v1344_v28  ;;  %v1379_v4 = vmul.f32 %v8318_v20, %v1340_v19  ;;  %v1376_v53 = vmul.f32 %v8319_v45, %v1335_v34  ;;  %v5670_v15 = vadd.f32 %v1282_v43, %v1194_v55  ;;  %v1425_v7 = vpop.permute.xlu0 %1424 }
 0x246   :  { %v5672_v52 = vadd.f32 %v1283_v23, %v1195_v40  ;;  %v1377_v11 = vmul.f32 %v8320_v32, %v1347_v35  ;;  %v1380_v2 = vmul.f32 %v8319_v45, %v1336_v24  ;;  %v5677_v46 = vadd.f32 %v1278_v44, %v5522_v27  ;;  %v1423_v28 = vpop.permute.xlu1 %1422 }
 0x247   :  { %v5679_v9 = vadd.f32 %v1279_v37, %v1191_v42  ;;  %v5682_v22 = vmul.f32 %v5168_v29, %v1246_v63  ;;  %v1381_v19 = vmul.f32 %v8320_v32, %v1348_v8  ;;  %v5685_v55 = vadd.f32 %v1284_v62, %v1196_v5 }
 0x248   :  { %v5688_v40 = vmul.f32 %v5165_v16, %v1233_v48  ;;  %v5691_v43 = vmul.f32 %v5168_v29, %v1245_v17  ;;  %v1390_v23 = vadd.f32 %v1374_v61, %v1286_v0  ;;  %v1391_v34 = vadd.f32 %v1375_v59, %v1287_v57 }
 0x249   :  { %v1394_v27 = vadd.f32 %v1378_v1, %v1290_v30  ;;  %v1395_v44 = vadd.f32 %v1379_v4, %v1291_v10  ;;  %v1392_v42 = vadd.f32 %v1376_v53, %v1288_v13  ;;  %v1393_v37 = vadd.f32 %v1377_v11, %v1289_v21  ;;  %v1417_v62 = vpop.permute.xlu0 %1416  ;;  %v8321_v13 = vld [vmem:[#allocation14_spill] sm:$0xff] }
 0x24a   :  { %v1396_v35 = vadd.f32 %v1380_v2, %v1292_v41  ;;  %v1342_v63 = vsel %vm1334_vm7, %v5573_v6, %v5534_v50  ;;  %v1346_v5 = vsel %vm1334_vm7, %v5498_v12, %v5573_v6  ;;  %v1397_v51 = vadd.f32 %v1381_v19, %v1293_v25  ;;  %v1415_v10 = vpop.permute.xlu1 %1414  ;;  %v8322_v41 = vld [vmem:[#allocation18_spill] sm:$0xff] }
 0x24b   :  { %v1345_v0 = vsel %vm1334_vm7, %v5505_v18, %v5579_v47  ;;  %v1444_v57 = vsel %vm1438_vm8, %v1417_v62, %v1425_v7  ;;  %v1448_v30 = vsel %vm1438_vm8, %v1409_v49, %v1417_v62  ;;  %v1443_v6 = vsel %vm1438_vm8, %v1415_v10, %v1423_v28 }
 0x24c   :  { %v1482_v21 = vmul.f32 %v8321_v13, %v1448_v30  ;;  %v1483_v24 = vmul.f32 %v8322_v41, %v1444_v57  ;;  %v1447_v25 = vsel %vm1438_vm8, %v1407_v39, %v1415_v10  ;;  %v1386_v48 = vmul.f32 %v8317_v56, %v1346_v5  ;;  %v8323_v57 = vld [vmem:[#allocation22_spill] sm:$0xff]  ;;  %v8324_v10 = vld [vmem:[#allocation39_spill] sm:$0xff] }
 0x24d   :  { %v1387_v17 = vmul.f32 %v8318_v20, %v1342_v63  ;;  %v1478_v61 = vmul.f32 %v8321_v13, %v1447_v25  ;;  %v1479_v8 = vmul.f32 %v8322_v41, %v1443_v6  ;;  %v1341_v59 = vsel %vm1334_vm7, %v5579_v47, %v5543_v60  ;;  %v1433_v11 = vpop.permute.xlu0 %1432  ;;  %v8325_v25 = vld [vmem:[#allocation40_spill] sm:$0xff] }
 0x24e   :  { %v1382_v1 = vmul.f32 %v8317_v56, %v1345_v0  ;;  %v1498_v4 = vadd.f32 %v1482_v21, %v1394_v27  ;;  %v1499_v53 = vadd.f32 %v1483_v24, %v1395_v44  ;;  %v1440_v5 = vsel %vm1438_vm8, %v1425_v7, %v1433_v11  ;;  %v1431_v62 = vpop.permute.xlu1 %1430  ;;  %v8326_v44 = vld [vmem:[#allocation23_spill] sm:$0xff] }
 0x24f   :  { %v1494_v2 = vadd.f32 %v1478_v61, %v1390_v23  ;;  %v1495_v19 = vadd.f32 %v1479_v8, %v1391_v34  ;;  %v1452_v63 = vsel %vm1438_vm8, %v1433_v11, %v1409_v49  ;;  %v1484_v6 = vmul.f32 %v8324_v10, %v1440_v5 }
 0x250   :  { %v1538_v30 = vadd.f32 %v8323_v57, %v1498_v4  ;;  %v1485_v47 = vmul.f32 %v8325_v25, %v1452_v63  ;;  %v1439_v27 = vsel %vm1438_vm8, %v1423_v28, %v1431_v62  ;;  %v1451_v23 = vsel %vm1438_vm8, %v1431_v62, %v1407_v39 }
 0x251   :  { %v1534_v0 = vadd.f32 %v8326_v44, %v1494_v2  ;;  %v1480_v7 = vmul.f32 %v8324_v10, %v1439_v27  ;;  %v1535_v34 = vadd.f32 %v8326_v44, %v1495_v19  ;;  %v1500_v21 = vadd.f32 %v1484_v6, %v1396_v35  ;;  %v5739_v8 = vpop.permute.xlu0 %1412 }
 0x252   :  { %v1554_v49 = vmax.f32 %v1538_v30, 0.0  ;;  %v1501_v24 = vadd.f32 %v1485_v47, %v1397_v51  ;;  %v1481_v61 = vmul.f32 %v8325_v25, %v1451_v23  ;;  %v5741_v5 = vpop.permute.xlu1 %1410  ;;  %v1539_v28 = vadd.f32 %v8323_v57, %v1499_v53 }
 0x253   :  { %v1550_v4 = vmax.f32 %v1534_v0, 0.0  ;;  %v1496_v11 = vadd.f32 %v1480_v7, %v1392_v42  ;;  %v1551_v2 = vmax.f32 %v1535_v34, 0.0  ;;  %v1383_v39 = vmul.f32 %v8318_v20, %v1341_v59 }
 0x254   :  { %v1540_v63 = vadd.f32 %v8323_v57, %v1500_v21  ;;  %v1497_v62 = vadd.f32 %v1481_v61, %v1393_v37  ;;  %v1541_v19 = vadd.f32 %v8323_v57, %v1501_v24  ;;  %v1338_v35 = vsel %vm1334_vm7, %v5534_v50, %v5607_v33 }
 0x255   :  { %v1536_v51 = vadd.f32 %v8326_v44, %v1496_v11  ;;  %v1555_v42 = vmax.f32 %v1539_v28, 0.0  ;;  %v1566_v30 = vpack.c.bf16 %v1554_v49, %v1550_v4  ;;  %v1350_v53 = vsel %vm1334_vm7, %v5607_v33, %v5498_v12  ;;  %v1429_v6 = vpop.permute.xlu0 %1428 }
 0x256   :  { %v1556_v59 = vmax.f32 %v1540_v63, 0.0  ;;  %v1537_v37 = vadd.f32 %v8326_v44, %v1497_v62  ;;  %v1557_v47 = vmax.f32 %v1541_v19, 0.0  ;;  %v1337_v57 = vsel %vm1334_vm7, %v5543_v60, %v5609_v58  ;;  %v1427_v23 = vpop.permute.xlu1 %1426 }
 0x257   :  { %v1349_v50 = vsel %vm1334_vm7, %v5609_v58, %v5505_v18  ;;  %v1552_v27 = vmax.f32 %v1536_v51, 0.0  ;;  %v1567_v0 = vpack.c.bf16 %v1555_v42, %v1551_v2  ;;  %v1301_v12 = vadd.f32 %v5682_v22, %v5589_v38  ;;  %v8327_v42 = vld [vmem:[#allocation24_spill] sm:$0xff] }
 0x258   :  { %v1296_v33 = vadd.f32 %v5688_v40, %v5582_v14  ;;  %v1297_v44 = vadd.f32 %v5691_v43, %v5584_v31  ;;  %v1553_v7 = vmax.f32 %v1537_v37, 0.0  ;;  %v1402_v60 = vadd.f32 %v1386_v48, %v5670_v15 }
 0x259   :  { %v1388_v34 = vmul.f32 %v8319_v45, %v1338_v35  ;;  %v1389_v49 = vmul.f32 %v8320_v32, %v1350_v53  ;;  %1754 = vmatprep.subr.bf16.mxu0 %v1567_v0  ;;  %v1568_v18 = vpack.c.bf16 %v1556_v59, %v1552_v27  ;;  %v1403_v58 = vadd.f32 %v1387_v17, %v5672_v52  ;;  %v1421_v14 = vpop.permute.xlu0 %1420 }
 0x25a   :  { %v1384_v21 = vmul.f32 %v8319_v45, %v1337_v57  ;;  %v1385_v38 = vmul.f32 %v8320_v32, %v1349_v50  ;;  %1755 = vmatpush1.bf16.msra.mxu0 %v1566_v30  ;;  %v1569_v22 = vpack.c.bf16 %v1557_v47, %v1553_v7  ;;  %v1398_v31 = vadd.f32 %v1382_v1, %v5677_v46  ;;  %v1419_v48 = vpop.permute.xlu1 %1418  ;;  %v8328_v47 = vld [vmem:[#allocation25_spill] sm:$0xff] }
 0x25b   :  { %v1399_v40 = vadd.f32 %v1383_v39, %v5679_v9  ;;  %v1446_v15 = vsel %vm1438_vm8, %v1421_v14, %v1429_v6  ;;  %v1450_v43 = vsel %vm1438_vm8, %v5739_v8, %v1421_v14  ;;  %v1445_v24 = vsel %vm1438_vm8, %v1419_v48, %v1427_v23 }
 0x25c   :  { %v1490_v52 = vmul.f32 %v8321_v13, %v1450_v43  ;;  %v1491_v17 = vmul.f32 %v8322_v41, %v1446_v15  ;;  %1967 = vmatprep.subr.bf16.mxu1 %v1569_v22  ;;  %v1449_v46 = vsel %vm1438_vm8, %v5741_v5, %v1419_v48  ;;  %v1404_v9 = vadd.f32 %v1388_v34, %v5685_v55  ;;  %v3917_v43 = vld [vmem:[%s7901_s4] sm:$0xff]  }
 0x25d   :  { %v1405_v1 = vadd.f32 %v1389_v49, %v1301_v12  ;;  %v1486_v61 = vmul.f32 %v8321_v13, %v1449_v46  ;;  %v1487_v4 = vmul.f32 %v8322_v41, %v1445_v24  ;;  %1968 = vmatpush1.bf16.msra.mxu1 %v1568_v18  ;;  %v1400_v11 = vadd.f32 %v1384_v21, %v1296_v33  ;;  %v1437_v63 = vpop.permute.xlu0 %1436  ;;  %v3918_v24 = vld [vmem:[%s7901_s4 + $0x8] sm:$0xff]   ;;  %v3919_v46 = vld [vmem:[%s7901_s4 + $0x10] sm:$0xff]  }
 0x25e   :  { %v1401_v28 = vadd.f32 %v1385_v38, %v1297_v44  ;;  %v1506_v2 = vadd.f32 %v1490_v52, %v1402_v60  ;;  %v1507_v39 = vadd.f32 %v1491_v17, %v1403_v58  ;;  %v1442_v35 = vsel %vm1438_vm8, %v1429_v6, %v1437_v63  ;;  %v1435_v51 = vpop.permute.xlu1 %1434 }
 0x25f   :  { %v1502_v62 = vadd.f32 %v1486_v61, %v1398_v31  ;;  %v1503_v19 = vadd.f32 %v1487_v4, %v1399_v40  ;;  %v1454_v55 = vsel %vm1438_vm8, %v1437_v63, %v5739_v8  ;;  %v1492_v53 = vmul.f32 %v8324_v10, %v1442_v35  ;;  %v3922_v61 = vld [vmem:[%s7901_s4 + $0x28] sm:$0xff]   ;;  %v3923_v4 = vld [vmem:[%s7901_s4 + $0x30] sm:$0xff]   ;;  %v3928_v63 = vld [vmem:[%s7901_s4 + $0x58] sm:$0xff]  }
 0x260   :  { %v1546_v30 = vadd.f32 %v8327_v42, %v1506_v2  ;;  %v1493_v59 = vmul.f32 %v8325_v25, %v1454_v55  ;;  %v1441_v37 = vsel %vm1438_vm8, %v1427_v23, %v1435_v51  ;;  %v1453_v6 = vsel %vm1438_vm8, %v1435_v51, %v5741_v5  ;;  %v3926_v2 = vld [vmem:[%s7901_s4 + $0x48] sm:$0xff]   ;;  %v3931_v35 = vld [vmem:[%s7901_s4 + $0x70] sm:$0xff]   ;;  %v3932_v55 = vld [vmem:[%s7901_s4 + $0x78] sm:$0xff]  }
 0x261   :  { %v1542_v57 = vadd.f32 %v8328_v47, %v1502_v62  ;;  %v1488_v50 = vmul.f32 %v8324_v10, %v1441_v37  ;;  %v1543_v8 = vadd.f32 %v8328_v47, %v1503_v19  ;;  %v1508_v0 = vadd.f32 %v1492_v53, %v1404_v9  ;;  %v3920_v9 = vld [vmem:[%s7901_s4 + $0x18] sm:$0xff]   ;;  %v3929_v62 = vld [vmem:[%s7901_s4 + $0x60] sm:$0xff]   ;;  %v3930_v19 = vld [vmem:[%s7901_s4 + $0x68] sm:$0xff]  }
 0x262   :  { %v1562_v27 = vmax.f32 %v1546_v30, 0.0  ;;  %v1509_v12 = vadd.f32 %v1493_v59, %v1405_v1  ;;  %v1489_v33 = vmul.f32 %v8325_v25, %v1453_v6  ;;  %v1547_v60 = vadd.f32 %v8327_v42, %v1507_v39  ;;  %v3921_v1 = vld [vmem:[%s7901_s4 + $0x20] sm:$0xff]   ;;  %v3927_v39 = vld [vmem:[%s7901_s4 + $0x50] sm:$0xff]  }
 0x263   :  { %v1558_v44 = vmax.f32 %v1542_v57, 0.0  ;;  %v1504_v7 = vadd.f32 %v1488_v50, %v1400_v11  ;;  %v1559_v23 = vmax.f32 %v1543_v8, 0.0  ;;  %v1548_v34 = vadd.f32 %v8327_v42, %v1508_v0  ;;  %v3924_v11 = vld [vmem:[%s7901_s4 + $0x38] sm:$0xff]   ;;  %v3933_v51 = vld [vmem:[%s7901_s4 + $0x80] sm:$0xff]  }
 0x264   :  { %v1505_v49 = vadd.f32 %v1489_v33, %v1401_v28  ;;  %v1549_v18 = vadd.f32 %v8327_v42, %v1509_v12  ;;  %v1563_v58 = vmax.f32 %v1547_v60, 0.0  ;;  %v8329_v17 = vmov 0   ;;  %v3925_v28 = vld [vmem:[%s7901_s4 + $0x40] sm:$0xff]   ;;  %v3934_v42 = vld [vmem:[%s7901_s4 + $0x88] sm:$0xff]   ;;  %s3870_s4 = sld [smem:[#allocation3 + $0x5]] }
 0x265   :  { %v1544_v5 = vadd.f32 %v8328_v47, %v1504_v7  ;;  %v1570_v21 = vpack.c.bf16 %v1562_v27, %v1558_v44  ;;  %v1564_v38 = vmax.f32 %v1548_v34, 0.0 }
 0x266   :  { %v1545_v14 = vadd.f32 %v8328_v47, %v1505_v49  ;;  %v1565_v22 = vmax.f32 %v1549_v18, 0.0  ;;  %v1571_v40 = vpack.c.bf16 %v1563_v58, %v1559_v23 }
 0x267   :  { %v1560_v31 = vmax.f32 %v1544_v5, 0.0 }
 0x268   :  { %v1561_v15 = vmax.f32 %v1545_v14, 0.0  ;;  %1756 = vmatprep.subr.bf16.mxu0 %v1571_v40 }
 0x269   :  { %v1572_v48 = vpack.c.bf16 %v1564_v38, %v1560_v31  ;;  %1757 = vmatpush1.bf16.msra.mxu0 %v1570_v21 }
 0x26a   :  { %v1573_v52 = vpack.c.bf16 %v1565_v22, %v1561_v15 }
 0x26c   :  { %1969 = vmatprep.subr.bf16.mxu1 %v1573_v52  ;;  %3827 = vmatmul.mubr.msk.bf16.vlgmr.msra.gmra.mrb[72].mxu0 %vm196_vm0, %v3917_v43 }
 0x26d   :  { %1970 = vmatpush1.bf16.msra.mxu1 %v1572_v48  ;;  %1796 = vmatprep.mubr.bf16.mxu0 %v8329_v17 }
 0x26e   :  { %v6131_v56 = vpop.permute.xlu0 %2831 }
 0x26f   :  { %v6125_v20 = vpop.permute.xlu1 %2826  ;;  %8347 = vst [vmem:[#allocation59_spill] sm:$0xff] %v6131_v56 }
 0x270   :  { %3845 = vmatmul.mubr.msk.bf16.vlgmr.msra.gmra.mrb[72].mxu1 %vm196_vm0, %v3917_v43  ;;  %8346 = vst [vmem:[#allocation63_spill] sm:$0xff] %v6125_v20 }
 0x271   :  { %2009 = vmatprep.mubr.bf16.mxu1 %v8329_v17 }
 0x273   :  { %v6149_v16 = vpop.permute.xlu1 %2836 }
 0x274   :  { %3828 = vmatmul.mubr.msk.bf16.gmra.mrb[76].mxu0 %vm196_vm0, %v3918_v24  ;;  %8348 = vst [vmem:[#allocation61_spill] sm:$0xff] %v6149_v16 }
 0x275   :  { %1806 = vmatprep.mubr.bf16.mxu0 %v8329_v17 }
 0x278   :  { %3846 = vmatmul.mubr.msk.bf16.gmra.mrb[76].mxu1 %vm196_vm0, %v3918_v24 }
 0x279   :  { %2019 = vmatprep.mubr.bf16.mxu1 %v8329_v17 }
 0x27c   :  { %3829 = vmatmul.mubr.msk.bf16.gmra.mrb[80].mxu0 %vm196_vm0, %v3919_v46 }
 0x27d   :  { %1816 = vmatprep.mubr.bf16.mxu0 %v8329_v17 }
 0x280   :  { %3847 = vmatmul.mubr.msk.bf16.gmra.mrb[80].mxu1 %vm196_vm0, %v3919_v46 }
 0x281   :  { %2029 = vmatprep.mubr.bf16.mxu1 %v8329_v17 }
 0x284   :  { %3830 = vmatmul.mubr.msk.bf16.gmra.mrb[84].mxu0 %vm196_vm0, %v3920_v9 }
 0x285   :  { %1826 = vmatprep.mubr.bf16.mxu0 %v8329_v17 }
 0x288   :  { %3848 = vmatmul.mubr.msk.bf16.gmra.mrb[84].mxu1 %vm196_vm0, %v3920_v9 }
 0x289   :  { %2039 = vmatprep.mubr.bf16.mxu1 %v8329_v17 }
 0x28c   :  { %3831 = vmatmul.mubr.msk.bf16.gmra.mrb[88].mxu0 %vm196_vm0, %v3921_v1 }
 0x28d   :  { %1836 = vmatprep.mubr.bf16.mxu0 %v8329_v17 }
 0x290   :  { %3849 = vmatmul.mubr.msk.bf16.gmra.mrb[88].mxu1 %vm196_vm0, %v3921_v1 }
 0x291   :  { %2049 = vmatprep.mubr.bf16.mxu1 %v8329_v17 }
 0x294   :  { %3832 = vmatmul.mubr.msk.bf16.gmra.mrb[92].mxu0 %vm196_vm0, %v3922_v61 }
 0x295   :  { %1846 = vmatprep.mubr.bf16.mxu0 %v8329_v17 }
 0x298   :  { %3850 = vmatmul.mubr.msk.bf16.gmra.mrb[92].mxu1 %vm196_vm0, %v3922_v61 }
 0x299   :  { %2059 = vmatprep.mubr.bf16.mxu1 %v8329_v17 }
 0x29c   :  { %3833 = vmatmul.mubr.msk.bf16.gmra.mrb[96].mxu0 %vm196_vm0, %v3923_v4 }
 0x29d   :  { %1856 = vmatprep.mubr.bf16.mxu0 %v8329_v17 }
 0x2a0   :  { %3851 = vmatmul.mubr.msk.bf16.gmra.mrb[96].mxu1 %vm196_vm0, %v3923_v4 }
 0x2a1   :  { %2069 = vmatprep.mubr.bf16.mxu1 %v8329_v17 }
 0x2a4   :  { %3834 = vmatmul.mubr.msk.bf16.gmra.mrb[100].mxu0 %vm196_vm0, %v3924_v11 }
 0x2a5   :  { %1866 = vmatprep.mubr.bf16.mxu0 %v8329_v17 }
 0x2a8   :  { %3852 = vmatmul.mubr.msk.bf16.gmra.mrb[100].mxu1 %vm196_vm0, %v3924_v11 }
 0x2a9   :  { %2079 = vmatprep.mubr.bf16.mxu1 %v8329_v17 }
 0x2ac   :  { %3835 = vmatmul.mubr.msk.bf16.gmra.mrb[104].mxu0 %vm196_vm0, %v3925_v28 }
 0x2ad   :  { %1876 = vmatprep.mubr.bf16.mxu0 %v8329_v17 }
 0x2b0   :  { %3853 = vmatmul.mubr.msk.bf16.gmra.mrb[104].mxu1 %vm196_vm0, %v3925_v28 }
 0x2b1   :  { %2089 = vmatprep.mubr.bf16.mxu1 %v8329_v17 }
 0x2b4   :  { %3836 = vmatmul.mubr.msk.bf16.gmra.mrb[108].mxu0 %vm196_vm0, %v3926_v2 }
 0x2b5   :  { %1886 = vmatprep.mubr.bf16.mxu0 %v8329_v17 }
 0x2b8   :  { %3854 = vmatmul.mubr.msk.bf16.gmra.mrb[108].mxu1 %vm196_vm0, %v3926_v2 }
 0x2b9   :  { %2099 = vmatprep.mubr.bf16.mxu1 %v8329_v17 }
 0x2bc   :  { %3837 = vmatmul.mubr.msk.bf16.gmra.mrb[112].mxu0 %vm196_vm0, %v3927_v39 }
 0x2bd   :  { %1896 = vmatprep.mubr.bf16.mxu0 %v8329_v17 }
 0x2c0   :  { %3855 = vmatmul.mubr.msk.bf16.gmra.mrb[112].mxu1 %vm196_vm0, %v3927_v39 }
 0x2c1   :  { %2109 = vmatprep.mubr.bf16.mxu1 %v8329_v17 }
 0x2c4   :  { %3838 = vmatmul.mubr.msk.bf16.gmra.mrb[116].mxu0 %vm196_vm0, %v3928_v63 }
 0x2c5   :  { %1906 = vmatprep.mubr.bf16.mxu0 %v8329_v17 }
 0x2c8   :  { %3856 = vmatmul.mubr.msk.bf16.gmra.mrb[116].mxu1 %vm196_vm0, %v3928_v63 }
 0x2c9   :  { %2119 = vmatprep.mubr.bf16.mxu1 %v8329_v17 }
 0x2cc   :  { %3839 = vmatmul.mubr.msk.bf16.gmra.mrb[120].mxu0 %vm196_vm0, %v3929_v62 }
 0x2cd   :  { %1916 = vmatprep.mubr.bf16.mxu0 %v8329_v17 }
 0x2d0   :  { %3857 = vmatmul.mubr.msk.bf16.gmra.mrb[120].mxu1 %vm196_vm0, %v3929_v62 }
 0x2d1   :  { %2129 = vmatprep.mubr.bf16.mxu1 %v8329_v17 }
 0x2d4   :  { %3840 = vmatmul.mubr.msk.bf16.gmra.mrb[124].mxu0 %vm196_vm0, %v3930_v19 }
 0x2d5   :  { %1926 = vmatprep.mubr.bf16.mxu0 %v8329_v17 }
 0x2d8   :  { %3858 = vmatmul.mubr.msk.bf16.gmra.mrb[124].mxu1 %vm196_vm0, %v3930_v19 }
 0x2d9   :  { %2139 = vmatprep.mubr.bf16.mxu1 %v8329_v17 }
 0x2dc   :  { %3841 = vmatmul.mubr.msk.bf16.gmra.mrb[128].mxu0 %vm196_vm0, %v3931_v35 }
 0x2dd   :  { %1936 = vmatprep.mubr.bf16.mxu0 %v8329_v17 }
 0x2e0   :  { %3859 = vmatmul.mubr.msk.bf16.gmra.mrb[128].mxu1 %vm196_vm0, %v3931_v35 }
 0x2e1   :  { %2149 = vmatprep.mubr.bf16.mxu1 %v8329_v17 }
 0x2e4   :  { %3842 = vmatmul.mubr.msk.bf16.gmra.mrb[132].mxu0 %vm196_vm0, %v3932_v55 }
 0x2e5   :  { %1946 = vmatprep.mubr.bf16.mxu0 %v8329_v17 }
 0x2e8   :  { %3860 = vmatmul.mubr.msk.bf16.gmra.mrb[132].mxu1 %vm196_vm0, %v3932_v55 }
 0x2e9   :  { %2159 = vmatprep.mubr.bf16.mxu1 %v8329_v17 }
 0x2ec   :  { %3843 = vmatmul.mubr.msk.bf16.gmra.mrb[136].mxu0 %vm196_vm0, %v3933_v51 }
 0x2ed   :  { %1956 = vmatprep.mubr.bf16.mxu0 %v8329_v17 }
 0x2f0   :  { %3861 = vmatmul.mubr.msk.bf16.gmra.mrb[136].mxu1 %vm196_vm0, %v3933_v51 }
 0x2f1   :  { %2169 = vmatprep.mubr.bf16.mxu1 %v8329_v17 }
 0x2f4   :  { %3844 = vmatmul.mubr.msk.bf16.gmra.mrb[140].mxu0 %vm196_vm0, %v3934_v42 }
 0x2f8   :  { %3862 = vmatmul.mubr.msk.bf16.gmra.mrb[140].mxu1 %vm196_vm0, %v3934_v42 }
 0x33f   :  { %v1788_v30 = vpop.f32.mrb[72].mxu0 }
 0x340   :  { %2180 = vrot.lane.b32.xlu1 %v1788_v30, %s4015_s21  ;;  %v1790_v53 = vpop.f32.mrb[73].mxu0 }
 0x341   :  { %v1792_v59 = vpop.f32.mrb[74].mxu0 }
 0x342   :  { %2182 = vrot.lane.b32.xlu0 %v1792_v59, %s4015_s21  ;;  %v1794_v47 = vpop.f32.mrb[75].mxu0 }
 0x343   :  { %v2001_v37 = vpop.f32.mrb[72].mxu1 }
 0x344   :  { %v2003_v57 = vpop.f32.mrb[73].mxu1  ;;  %2196 = vrot.lane.b32.xlu1 %v2001_v37, %s4015_s21 }
 0x345   :  { %v2005_v6 = vpop.f32.mrb[74].mxu1 }
 0x346   :  { %v2007_v50 = vpop.f32.mrb[75].mxu1  ;;  %2198 = vrot.lane.b32.xlu0 %v2005_v6, %s4015_s21 }
 0x347   :  { %v1798_v8 = vpop.f32.mrb[76].mxu0 }
 0x348   :  { %2188 = vrot.lane.b32.xlu1 %v1790_v53, %s4015_s21  ;;  %v1800_v27 = vpop.f32.mrb[77].mxu0 }
 0x349   :  { %v1802_v0 = vpop.f32.mrb[78].mxu0 }
 0x34a   :  { %2190 = vrot.lane.b32.xlu0 %v1794_v47, %s4015_s21  ;;  %v1804_v33 = vpop.f32.mrb[79].mxu0 }
 0x34b   :  { %v2011_v12 = vpop.f32.mrb[76].mxu1 }
 0x34c   :  { %v2013_v44 = vpop.f32.mrb[77].mxu1  ;;  %2204 = vrot.lane.b32.xlu1 %v2003_v57, %s4015_s21 }
 0x34d   :  { %v2015_v7 = vpop.f32.mrb[78].mxu1 }
 0x34e   :  { %v2017_v60 = vpop.f32.mrb[79].mxu1  ;;  %2206 = vrot.lane.b32.xlu0 %v2007_v50, %s4015_s21 }
 0x34f   :  { %v1808_v23 = vpop.f32.mrb[80].mxu0 }
 0x350   :  { %2184 = vrot.lane.b32.xlu1 %v1798_v8, %s4015_s21  ;;  %v1810_v34 = vpop.f32.mrb[81].mxu0 }
 0x351   :  { %v1812_v49 = vpop.f32.mrb[82].mxu0 }
 0x352   :  { %2192 = vrot.lane.b32.xlu0 %v1800_v27, %s4015_s21  ;;  %v1814_v5 = vpop.f32.mrb[83].mxu0 }
 0x353   :  { %v2021_v18 = vpop.f32.mrb[80].mxu1 }
 0x354   :  { %v2023_v58 = vpop.f32.mrb[81].mxu1  ;;  %2200 = vrot.lane.b32.xlu1 %v2011_v12, %s4015_s21 }
 0x355   :  { %v2025_v21 = vpop.f32.mrb[82].mxu1 }
 0x356   :  { %v2027_v38 = vpop.f32.mrb[83].mxu1  ;;  %2208 = vrot.lane.b32.xlu0 %v2013_v44, %s4015_s21 }
 0x357   :  { %v1818_v14 = vpop.f32.mrb[84].mxu0 }
 0x358   :  { %2186 = vrot.lane.b32.xlu1 %v1802_v0, %s4015_s21  ;;  %v1820_v22 = vpop.f32.mrb[85].mxu0 }
 0x359   :  { %v1822_v31 = vpop.f32.mrb[86].mxu0 }
 0x35a   :  { %2194 = vrot.lane.b32.xlu0 %v1804_v33, %s4015_s21  ;;  %v1824_v15 = vpop.f32.mrb[87].mxu0 }
 0x35b   :  { %v2031_v40 = vpop.f32.mrb[84].mxu1 }
 0x35c   :  { %v2033_v43 = vpop.f32.mrb[85].mxu1  ;;  %2202 = vrot.lane.b32.xlu1 %v2015_v7, %s4015_s21 }
 0x35d   :  { %v2035_v48 = vpop.f32.mrb[86].mxu1 }
 0x35e   :  { %v2037_v52 = vpop.f32.mrb[87].mxu1  ;;  %2210 = vrot.lane.b32.xlu0 %v2017_v60, %s4015_s21 }
 0x35f   :  { %v1828_v17 = vpop.f32.mrb[88].mxu0 }
 0x360   :  { %2260 = vrot.lane.b32.xlu1 %v1808_v23, %s4016_s2  ;;  %v1830_v24 = vpop.f32.mrb[89].mxu0 }
 0x361   :  { %v1832_v46 = vpop.f32.mrb[90].mxu0 }
 0x362   :  { %2262 = vrot.lane.b32.xlu0 %v1812_v49, %s4016_s2  ;;  %v1834_v1 = vpop.f32.mrb[91].mxu0 }
 0x363   :  { %v2041_v9 = vpop.f32.mrb[88].mxu1 }
 0x364   :  { %v2043_v61 = vpop.f32.mrb[89].mxu1  ;;  %2276 = vrot.lane.b32.xlu1 %v2021_v18, %s4016_s2 }
 0x365   :  { %v2045_v4 = vpop.f32.mrb[90].mxu1 }
 0x366   :  { %v2047_v11 = vpop.f32.mrb[91].mxu1  ;;  %2278 = vrot.lane.b32.xlu0 %v2025_v21, %s4016_s2 }
 0x367   :  { %v1838_v28 = vpop.f32.mrb[92].mxu0 }
 0x368   :  { %2268 = vrot.lane.b32.xlu1 %v1810_v34, %s4016_s2  ;;  %v1840_v2 = vpop.f32.mrb[93].mxu0 }
 0x369   :  { %v5961_v39 = vpop.f32.mrb[94].mxu0 }
 0x36a   :  { %2270 = vrot.lane.b32.xlu0 %v1814_v5, %s4016_s2  ;;  %v5964_v62 = vpop.f32.mrb[95].mxu0 }
 0x36b   :  { %v2051_v63 = vpop.f32.mrb[92].mxu1 }
 0x36c   :  { %v5966_v19 = vpop.f32.mrb[93].mxu1  ;;  %2284 = vrot.lane.b32.xlu1 %v2023_v58, %s4016_s2 }
 0x36d   :  { %v5969_v35 = vpop.f32.mrb[94].mxu1 }
 0x36e   :  { %v5971_v55 = vpop.f32.mrb[95].mxu1  ;;  %2286 = vrot.lane.b32.xlu0 %v2027_v38, %s4016_s2 }
 0x36f   :  { %v5974_v51 = vpop.f32.mrb[96].mxu0 }
 0x370   :  { %2264 = vrot.lane.b32.xlu1 %v1818_v14, %s4016_s2  ;;  %v5977_v42 = vpop.f32.mrb[97].mxu0 }
 0x371   :  { %v5979_v30 = vpop.f32.mrb[98].mxu0 }
 0x372   :  { %2272 = vrot.lane.b32.xlu0 %v1820_v22, %s4016_s2  ;;  %v5984_v59 = vpop.f32.mrb[99].mxu0 }
 0x373   :  { %v5982_v53 = vpop.f32.mrb[96].mxu1 }
 0x374   :  { %v5986_v37 = vpop.f32.mrb[97].mxu1  ;;  %2280 = vrot.lane.b32.xlu1 %v2031_v40, %s4016_s2 }
 0x375   :  { %v5989_v47 = vpop.f32.mrb[98].mxu1 }
 0x376   :  { %v5991_v57 = vpop.f32.mrb[99].mxu1  ;;  %2288 = vrot.lane.b32.xlu0 %v2033_v43, %s4016_s2 }
 0x377   :  { %v5994_v6 = vpop.f32.mrb[100].mxu0 }
 0x378   :  { %2266 = vrot.lane.b32.xlu1 %v1822_v31, %s4016_s2  ;;  %v5997_v50 = vpop.f32.mrb[101].mxu0 }
 0x379   :  { %v5999_v8 = vpop.f32.mrb[102].mxu0 }
 0x37a   :  { %2274 = vrot.lane.b32.xlu0 %v1824_v15, %s4016_s2  ;;  %v6004_v0 = vpop.f32.mrb[103].mxu0 }
 0x37b   :  { %v6002_v27 = vpop.f32.mrb[100].mxu1 }
 0x37c   :  { %v6006_v12 = vpop.f32.mrb[101].mxu1  ;;  %2282 = vrot.lane.b32.xlu1 %v2035_v48, %s4016_s2 }
 0x37d   :  { %v6009_v33 = vpop.f32.mrb[102].mxu1 }
 0x37e   :  { %v6011_v44 = vpop.f32.mrb[103].mxu1  ;;  %2290 = vrot.lane.b32.xlu0 %v2037_v52, %s4016_s2 }
 0x37f   :  { %v6014_v7 = vpop.f32.mrb[104].mxu0 }
 0x380   :  { %8330 = vst [vmem:[#allocation45_spill] sm:$0xff] %v6014_v7  ;;  %2340 = vrot.lane.b32.xlu1 %v1828_v17, %s4017_s22  ;;  %v6017_v60 = vpop.f32.mrb[105].mxu0 }
 0x381   :  { %8331 = vst [vmem:[#allocation47_spill] sm:$0xff] %v6017_v60  ;;  %v6019_v23 = vpop.f32.mrb[106].mxu0 }
 0x382   :  { %8332 = vst [vmem:[#allocation43_spill] sm:$0xff] %v6019_v23  ;;  %2342 = vrot.lane.b32.xlu0 %v1832_v46, %s4017_s22  ;;  %v6022_v34 = vpop.f32.mrb[107].mxu0 }
 0x383   :  { %8333 = vst [vmem:[#allocation46_spill] sm:$0xff] %v6022_v34  ;;  %v6024_v49 = vpop.f32.mrb[104].mxu1 }
 0x384   :  { %8334 = vst [vmem:[#allocation48_spill] sm:$0xff] %v6024_v49  ;;  %v6026_v18 = vpop.f32.mrb[105].mxu1  ;;  %2356 = vrot.lane.b32.xlu1 %v2041_v9, %s4017_s22 }
 0x385   :  { %8335 = vst [vmem:[#allocation44_spill] sm:$0xff] %v6026_v18  ;;  %v6029_v5 = vpop.f32.mrb[106].mxu1 }
 0x386   :  { %8336 = vst [vmem:[#allocation49_spill] sm:$0xff] %v6029_v5  ;;  %v6031_v58 = vpop.f32.mrb[107].mxu1  ;;  %2358 = vrot.lane.b32.xlu0 %v2045_v4, %s4017_s22 }
 0x387   :  { %8337 = vst [vmem:[#allocation50_spill] sm:$0xff] %v6031_v58  ;;  %v6034_v21 = vpop.f32.mrb[108].mxu0 }
 0x388   :  { %8338 = vst [vmem:[#allocation53_spill] sm:$0xff] %v6034_v21  ;;  %2348 = vrot.lane.b32.xlu1 %v1830_v24, %s4017_s22  ;;  %v6037_v38 = vpop.f32.mrb[109].mxu0 }
 0x389   :  { %8339 = vst [vmem:[#allocation55_spill] sm:$0xff] %v6037_v38  ;;  %v6039_v14 = vpop.f32.mrb[110].mxu0 }
 0x38a   :  { %8340 = vst [vmem:[#allocation51_spill] sm:$0xff] %v6039_v14  ;;  %2350 = vrot.lane.b32.xlu0 %v1834_v1, %s4017_s22  ;;  %v6042_v22 = vpop.f32.mrb[111].mxu0 }
 0x38b   :  { %8341 = vst [vmem:[#allocation54_spill] sm:$0xff] %v6042_v22  ;;  %v6044_v31 = vpop.f32.mrb[108].mxu1 }
 0x38c   :  { %8342 = vst [vmem:[#allocation56_spill] sm:$0xff] %v6044_v31  ;;  %v6046_v40 = vpop.f32.mrb[109].mxu1  ;;  %2364 = vrot.lane.b32.xlu1 %v2043_v61, %s4017_s22 }
 0x38d   :  { %8343 = vst [vmem:[#allocation52_spill] sm:$0xff] %v6046_v40  ;;  %v6049_v15 = vpop.f32.mrb[110].mxu1 }
 0x38e   :  { %8344 = vst [vmem:[#allocation57_spill] sm:$0xff] %v6049_v15  ;;  %v6051_v43 = vpop.f32.mrb[111].mxu1  ;;  %2366 = vrot.lane.b32.xlu0 %v2047_v11, %s4017_s22 }
 0x38f   :  { %8345 = vst [vmem:[#allocation58_spill] sm:$0xff] %v6051_v43  ;;  %v6054_v48 = vpop.f32.mrb[112].mxu0 }
 0x390   :  { %2344 = vrot.lane.b32.xlu1 %v1838_v28, %s4017_s22  ;;  %v6057_v52 = vpop.f32.mrb[113].mxu0 }
 0x391   :  { %v6059_v17 = vpop.f32.mrb[114].mxu0 }
 0x392   :  { %2352 = vrot.lane.b32.xlu0 %v1840_v2, %s4017_s22  ;;  %v6064_v46 = vpop.f32.mrb[115].mxu0 }
 0x393   :  { %v6062_v24 = vpop.f32.mrb[112].mxu1 }
 0x394   :  { %v6066_v9 = vpop.f32.mrb[113].mxu1  ;;  %2360 = vrot.lane.b32.xlu1 %v2051_v63, %s4017_s22 }
 0x395   :  { %v6069_v1 = vpop.f32.mrb[114].mxu1 }
 0x396   :  { %v6071_v61 = vpop.f32.mrb[115].mxu1  ;;  %2368 = vrot.lane.b32.xlu0 %v5966_v19, %s4017_s22 }
 0x397   :  { %v6075_v4 = vpop.f32.mrb[116].mxu0 }
 0x398   :  { %2346 = vrot.lane.b32.xlu1 %v5961_v39, %s4017_s22  ;;  %v6079_v11 = vpop.f32.mrb[117].mxu0 }
 0x399   :  { %v6081_v28 = vpop.f32.mrb[118].mxu0 }
 0x39a   :  { %2354 = vrot.lane.b32.xlu0 %v5964_v62, %s4017_s22  ;;  %v6087_v63 = vpop.f32.mrb[119].mxu0 }
 0x39b   :  { %v6085_v2 = vpop.f32.mrb[116].mxu1 }
 0x39c   :  { %v6089_v25 = vpop.f32.mrb[117].mxu1  ;;  %2362 = vrot.lane.b32.xlu1 %v5969_v35, %s4017_s22 }
 0x39d   :  { %v6093_v19 = vpop.f32.mrb[118].mxu1 }
 0x39e   :  { %v6095_v10 = vpop.f32.mrb[119].mxu1  ;;  %2370 = vrot.lane.b32.xlu0 %v5971_v55, %s4017_s22 }
 0x39f   :  { %v6099_v39 = vpop.f32.mrb[120].mxu0 }
 0x3a0   :  { %2420 = vrot.lane.b32.xlu1 %v5974_v51, %s4018_s23  ;;  %v6103_v62 = vpop.f32.mrb[121].mxu0 }
 0x3a1   :  { %v6105_v41 = vpop.f32.mrb[122].mxu0 }
 0x3a2   :  { %2422 = vrot.lane.b32.xlu0 %v5979_v30, %s4018_s23  ;;  %v6111_v13 = vpop.f32.mrb[123].mxu0 }
 0x3a3   :  { %v6109_v35 = vpop.f32.mrb[120].mxu1 }
 0x3a4   :  { %v6113_v32 = vpop.f32.mrb[121].mxu1  ;;  %2436 = vrot.lane.b32.xlu1 %v5982_v53, %s4018_s23 }
 0x3a5   :  { %v6117_v55 = vpop.f32.mrb[122].mxu1 }
 0x3a6   :  { %v6119_v45 = vpop.f32.mrb[123].mxu1  ;;  %2438 = vrot.lane.b32.xlu0 %v5989_v47, %s4018_s23 }
 0x3a7   :  { %v6123_v51 = vpop.f32.mrb[124].mxu0 }
 0x3a8   :  { %2428 = vrot.lane.b32.xlu1 %v5977_v42, %s4018_s23  ;;  %v6129_v30 = vpop.f32.mrb[125].mxu0 }
 0x3a9   :  { %v6133_v31 = vpop.f32.mrb[126].mxu0 }
 0x3aa   :  { %2430 = vrot.lane.b32.xlu0 %v5984_v59, %s4018_s23  ;;  %v6139_v29 = vpop.f32.mrb[127].mxu0  ;;  %v6155_v59 = vpop.permute.xlu0 %2841 }
 0x3ab   :  { %v6137_v53 = vpop.f32.mrb[124].mxu1  ;;  %8349 = vst [vmem:[#allocation64_spill] sm:$0xff] %v6155_v59 }
 0x3ac   :  { %v6141_v47 = vpop.f32.mrb[125].mxu1  ;;  %2444 = vrot.lane.b32.xlu1 %v5986_v37, %s4018_s23 }
 0x3ad   :  { %v6145_v20 = vpop.f32.mrb[126].mxu1 }
 0x3ae   :  { %v6147_v42 = vpop.f32.mrb[127].mxu1  ;;  %2446 = vrot.lane.b32.xlu0 %v5991_v57, %s4018_s23 }
 0x3af   :  { %v6153_v56 = vpop.f32.mrb[128].mxu0 }
 0x3b0   :  { %2424 = vrot.lane.b32.xlu1 %v5994_v6, %s4018_s23  ;;  %v6159_v54 = vpop.f32.mrb[129].mxu0 }
 0x3b1   :  { %v6161_v36 = vpop.f32.mrb[130].mxu0 }
 0x3b2   :  { %v6163_v37 = vpop.permute.xlu1 %2180  ;;  %2432 = vrot.lane.b32.xlu0 %v5997_v50, %s4018_s23  ;;  %v6171_v57 = vpop.f32.mrb[131].mxu0 }
 0x3b3   :  { %v6167_v16 = vpop.f32.mrb[128].mxu1 }
 0x3b4   :  { %v6169_v26 = vpop.f32.mrb[129].mxu1  ;;  %2440 = vrot.lane.b32.xlu1 %v6002_v27, %s4018_s23  ;;  %v6175_v59 = vpop.permute.xlu0 %2182 }
 0x3b5   :  { %v6177_v6 = vpop.f32.mrb[130].mxu1 }
 0x3b6   :  { %v6179_v43 = vpop.f32.mrb[131].mxu1  ;;  %v6181_v14 = vpop.permute.xlu1 %2196  ;;  %2448 = vrot.lane.b32.xlu0 %v6006_v12, %s4018_s23 }
 0x3b7   :  { %v6185_v50 = vpop.f32.mrb[132].mxu0 }
 0x3b8   :  { %2426 = vrot.lane.b32.xlu1 %v5999_v8, %s4018_s23  ;;  %v6189_v15 = vpop.permute.xlu0 %2198  ;;  %v6191_v22 = vpop.f32.mrb[133].mxu0 }
 0x3b9   :  { %v6193_v27 = vpop.f32.mrb[134].mxu0 }
 0x3ba   :  { %v6195_v40 = vpop.permute.xlu1 %2188  ;;  %2434 = vrot.lane.b32.xlu0 %v6004_v0, %s4018_s23  ;;  %v6203_v12 = vpop.f32.mrb[135].mxu0 }
 0x3bb   :  { %v6199_v21 = vpop.f32.mrb[132].mxu1 }
 0x3bc   :  { %v6201_v38 = vpop.f32.mrb[133].mxu1  ;;  %2442 = vrot.lane.b32.xlu1 %v6009_v33, %s4018_s23  ;;  %v6207_v8 = vpop.permute.xlu0 %2190 }
 0x3bd   :  { %v6209_v58 = vpop.f32.mrb[134].mxu1 }
 0x3be   :  { %v6211_v23 = vpop.f32.mrb[135].mxu1  ;;  %v6213_v18 = vpop.permute.xlu1 %2204  ;;  %2450 = vrot.lane.b32.xlu0 %v6011_v44, %s4018_s23 }
 0x3bf   :  { %8350 = vst [vmem:[#allocation60_spill] sm:$0xff] %v6213_v18  ;;  %v6217_v0 = vpop.f32.mrb[136].mxu0 }
 0x3c0   :  { %2500 = vrot.lane.b32.xlu1 %v6054_v48, %s4019_s24  ;;  %v6221_v7 = vpop.permute.xlu0 %2206  ;;  %v6223_v5 = vpop.f32.mrb[137].mxu0 }
 0x3c1   :  { %8351 = vst [vmem:[#allocation62_spill] sm:$0xff] %v6221_v7  ;;  %8352 = vst [vmem:[#allocation65_spill] sm:$0xff] %v6223_v5  ;;  %v6225_v33 = vpop.f32.mrb[138].mxu0 }
 0x3c2   :  { %v6227_v34 = vpop.permute.xlu1 %2184  ;;  %2502 = vrot.lane.b32.xlu0 %v6059_v17, %s4019_s24  ;;  %v6235_v44 = vpop.f32.mrb[139].mxu0 }
 0x3c3   :  { %8353 = vst [vmem:[#allocation66_spill] sm:$0xff] %v6227_v34  ;;  %v6231_v49 = vpop.f32.mrb[136].mxu1 }
 0x3c4   :  { %v6233_v60 = vpop.f32.mrb[137].mxu1  ;;  %2516 = vrot.lane.b32.xlu1 %v6062_v24, %s4019_s24  ;;  %v6239_v48 = vpop.permute.xlu0 %2192 }
 0x3c5   :  { %8354 = vst [vmem:[#allocation71_spill] sm:$0xff] %v6233_v60  ;;  %8355 = vst [vmem:[#allocation67_spill] sm:$0xff] %v6239_v48  ;;  %v6241_v7 = vpop.f32.mrb[138].mxu1 }
 0x3c6   :  { %v6243_v18 = vpop.f32.mrb[139].mxu1  ;;  %v6245_v5 = vpop.permute.xlu1 %2200  ;;  %2518 = vrot.lane.b32.xlu0 %v6069_v1, %s4019_s24 }
 0x3c7   :  { %8356 = vst [vmem:[#allocation69_spill] sm:$0xff] %v6243_v18  ;;  %8357 = vst [vmem:[#allocation70_spill] sm:$0xff] %v6245_v5  ;;  %v6249_v17 = vpop.f32.mrb[140].mxu0 }
 0x3c8   :  { %8358 = vst [vmem:[#allocation72_spill] sm:$0xff] %v6249_v17  ;;  %2508 = vrot.lane.b32.xlu1 %v6057_v52, %s4019_s24  ;;  %v6253_v34 = vpop.permute.xlu0 %2208  ;;  %v6255_v60 = vpop.f32.mrb[141].mxu0 }
 0x3c9   :  { %8359 = vst [vmem:[#allocation68_spill] sm:$0xff] %v6255_v60  ;;  %v6257_v24 = vpop.f32.mrb[142].mxu0 }
 0x3ca   :  { %8360 = vst [vmem:[#allocation73_spill] sm:$0xff] %v6257_v24  ;;  %v6259_v48 = vpop.permute.xlu1 %2186  ;;  %2510 = vrot.lane.b32.xlu0 %v6064_v46, %s4019_s24  ;;  %v6267_v1 = vpop.f32.mrb[143].mxu0 }
 0x3cb   :  { %v6263_v5 = vpop.f32.mrb[140].mxu1  ;;  %8361 = vst [vmem:[#allocation74_spill] sm:$0xff] %v6267_v1 }
 0x3cc   :  { %v6265_v18 = vpop.f32.mrb[141].mxu1  ;;  %2524 = vrot.lane.b32.xlu1 %v6066_v9, %s4019_s24  ;;  %v6271_v52 = vpop.permute.xlu0 %2194 }
 0x3cd   :  { %v6273_v17 = vpop.f32.mrb[142].mxu1 }
 0x3ce   :  { %v6275_v60 = vpop.f32.mrb[143].mxu1  ;;  %v6277_v24 = vpop.permute.xlu1 %2202  ;;  %2526 = vrot.lane.b32.xlu0 %v6071_v61, %s4019_s24 }
 0x3cf   :  { %8362 = vst [vmem:[#allocation91_spill] sm:$0xff] %v6275_v60 }
 0x3d0   :  { %2504 = vrot.lane.b32.xlu1 %v6075_v4, %s4019_s24  ;;  %v6283_v46 = vpop.permute.xlu0 %2210 }
 0x3d2   :  { %v6285_v1 = vpop.permute.xlu1 %2260  ;;  %2512 = vrot.lane.b32.xlu0 %v6079_v11, %s4019_s24 }
 0x3d4   :  { %2520 = vrot.lane.b32.xlu1 %v6085_v2, %s4019_s24  ;;  %v6291_v9 = vpop.permute.xlu0 %2262 }
 0x3d6   :  { %v6293_v60 = vpop.permute.xlu1 %2276  ;;  %2528 = vrot.lane.b32.xlu0 %v6089_v25, %s4019_s24 }
 0x3d8   :  { %2506 = vrot.lane.b32.xlu1 %v6081_v28, %s4019_s24  ;;  %v6299_v61 = vpop.permute.xlu0 %2278 }
 0x3da   :  { %v6301_v4 = vpop.permute.xlu1 %2268  ;;  %2514 = vrot.lane.b32.xlu0 %v6087_v63, %s4019_s24 }
 0x3dc   :  { %2522 = vrot.lane.b32.xlu1 %v6093_v19, %s4019_s24  ;;  %v6307_v11 = vpop.permute.xlu0 %2270 }
 0x3de   :  { %v6309_v2 = vpop.permute.xlu1 %2284  ;;  %2530 = vrot.lane.b32.xlu0 %v6095_v10, %s4019_s24 }
 0x3e0   :  { %2580 = vrot.lane.b32.xlu1 %v6099_v39, %s4020_s25  ;;  %v6315_v25 = vpop.permute.xlu0 %2286 }
 0x3e2   :  { %v6317_v28 = vpop.permute.xlu1 %2264  ;;  %2582 = vrot.lane.b32.xlu0 %v6105_v41, %s4020_s25 }
 0x3e4   :  { %2596 = vrot.lane.b32.xlu1 %v6109_v35, %s4020_s25  ;;  %v6323_v63 = vpop.permute.xlu0 %2272 }
 0x3e5   :  { %8363 = vst [vmem:[#allocation79_spill] sm:$0xff] %v6323_v63 }
 0x3e6   :  { %v6325_v19 = vpop.permute.xlu1 %2280  ;;  %2598 = vrot.lane.b32.xlu0 %v6117_v55, %s4020_s25 }
 0x3e7   :  { %8364 = vst [vmem:[#allocation28_spill] sm:$0xff] %v6325_v19 }
 0x3e8   :  { %2588 = vrot.lane.b32.xlu1 %v6103_v62, %s4020_s25  ;;  %v6331_v10 = vpop.permute.xlu0 %2288 }
 0x3ea   :  { %v6333_v39 = vpop.permute.xlu1 %2266  ;;  %2590 = vrot.lane.b32.xlu0 %v6111_v13, %s4020_s25 }
 0x3ec   :  { %2604 = vrot.lane.b32.xlu1 %v6113_v32, %s4020_s25  ;;  %v6339_v41 = vpop.permute.xlu0 %2274 }
 0x3ee   :  { %v6341_v35 = vpop.permute.xlu1 %2282  ;;  %2606 = vrot.lane.b32.xlu0 %v6119_v45, %s4020_s25 }
 0x3f0   :  { %2584 = vrot.lane.b32.xlu1 %v6123_v51, %s4020_s25  ;;  %v6347_v62 = vpop.permute.xlu0 %2290 }
 0x3f2   :  { %v6349_v55 = vpop.permute.xlu1 %2340  ;;  %2592 = vrot.lane.b32.xlu0 %v6129_v30, %s4020_s25 }
 0x3f4   :  { %2600 = vrot.lane.b32.xlu1 %v6137_v53, %s4020_s25  ;;  %v6355_v32 = vpop.permute.xlu0 %2342 }
 0x3f6   :  { %v6357_v13 = vpop.permute.xlu1 %2356  ;;  %2608 = vrot.lane.b32.xlu0 %v6141_v47, %s4020_s25 }
 0x3f8   :  { %2586 = vrot.lane.b32.xlu1 %v6133_v31, %s4020_s25  ;;  %v6363_v45 = vpop.permute.xlu0 %2358 }
 0x3fa   :  { %v6365_v51 = vpop.permute.xlu1 %2348  ;;  %2594 = vrot.lane.b32.xlu0 %v6139_v29, %s4020_s25 }
 0x3fc   :  { %2602 = vrot.lane.b32.xlu1 %v6145_v20, %s4020_s25  ;;  %v6371_v30 = vpop.permute.xlu0 %2350 }
 0x3fe   :  { %v6373_v53 = vpop.permute.xlu1 %2364  ;;  %2610 = vrot.lane.b32.xlu0 %v6147_v42, %s4020_s25 }
 0x400   :  { %2660 = vrot.lane.b32.xlu1 %v6153_v56, %s4021_s26  ;;  %v6379_v31 = vpop.permute.xlu0 %2366 }
 0x402   :  { %v6381_v47 = vpop.permute.xlu1 %2344  ;;  %2662 = vrot.lane.b32.xlu0 %v6161_v36, %s4021_s26 }
 0x404   :  { %2676 = vrot.lane.b32.xlu1 %v6167_v16, %s4021_s26  ;;  %v6387_v29 = vpop.permute.xlu0 %2352 }
 0x405   :  { %8365 = vst [vmem:[#allocation96_spill] sm:$0xff] %v6387_v29 }
 0x406   :  { %v6389_v20 = vpop.permute.xlu1 %2360  ;;  %2678 = vrot.lane.b32.xlu0 %v6177_v6, %s4021_s26 }
 0x407   :  { %8366 = vst [vmem:[#allocation80_spill] sm:$0xff] %v6389_v20  ;;  %v8393_v20 = vld [vmem:[#allocation83_spill] sm:$0xff] }
 0x408   :  { %2668 = vrot.lane.b32.xlu1 %v6159_v54, %s4021_s26  ;;  %v6395_v56 = vpop.permute.xlu0 %2368 }
 0x40a   :  { %v6397_v42 = vpop.permute.xlu1 %2346  ;;  %2670 = vrot.lane.b32.xlu0 %v6171_v57, %s4021_s26 }
 0x40b   :  { %8367 = vst [vmem:[#allocation29_spill] sm:$0xff] %v6397_v42  ;;  %v8399_v42 = vld [vmem:[#allocation70_spill] sm:$0xff] }
 0x40c   :  { %2684 = vrot.lane.b32.xlu1 %v6169_v26, %s4021_s26  ;;  %v6403_v16 = vpop.permute.xlu0 %2354 }
 0x40e   :  { %v6405_v36 = vpop.permute.xlu1 %2362  ;;  %2686 = vrot.lane.b32.xlu0 %v6179_v43, %s4021_s26 }
 0x40f   :  { %8368 = vst [vmem:[#allocation30_spill] sm:$0xff] %v6405_v36  ;;  %v8398_v36 = vld [vmem:[#allocation49_spill] sm:$0xff] }
 0x410   :  { %2664 = vrot.lane.b32.xlu1 %v6185_v50, %s4021_s26  ;;  %v6411_v54 = vpop.permute.xlu0 %2370 }
 0x411   :  { %8369 = vst [vmem:[#allocation31_spill] sm:$0xff] %v6411_v54  ;;  %v8397_v54 = vld [vmem:[#allocation46_spill] sm:$0xff] }
 0x412   :  { %v6413_v6 = vpop.permute.xlu1 %2420  ;;  %2672 = vrot.lane.b32.xlu0 %v6191_v22, %s4021_s26 }
 0x413   :  { %8370 = vst [vmem:[#allocation10_spill] sm:$0xff] %v6413_v6 }
 0x414   :  { %2680 = vrot.lane.b32.xlu1 %v6199_v21, %s4021_s26  ;;  %v6419_v26 = vpop.permute.xlu0 %2422 }
 0x415   :  { %8371 = vst [vmem:[#allocation12_spill] sm:$0xff] %v6419_v26 }
 0x416   :  { %v6421_v57 = vpop.permute.xlu1 %2436  ;;  %2688 = vrot.lane.b32.xlu0 %v6201_v38, %s4021_s26 }
 0x417   :  { %8372 = vst [vmem:[#allocation33_spill] sm:$0xff] %v6421_v57  ;;  %v8396_v57 = vld [vmem:[#allocation48_spill] sm:$0xff] }
 0x418   :  { %2674 = vrot.lane.b32.xlu1 %v6203_v12, %s4021_s26  ;;  %v6427_v43 = vpop.permute.xlu0 %2438 }
 0x419   :  { %8373 = vst [vmem:[#allocation19_spill] sm:$0xff] %v6427_v43  ;;  %v8386_v43 = vld [vmem:[#allocation60_spill] sm:$0xff] }
 0x41a   :  { %v6429_v50 = vpop.permute.xlu1 %2428  ;;  %2666 = vrot.lane.b32.xlu0 %v6193_v27, %s4021_s26 }
 0x41b   :  { %8374 = vst [vmem:[#allocation17_spill] sm:$0xff] %v6429_v50 }
 0x41c   :  { %2690 = vrot.lane.b32.xlu1 %v6211_v23, %s4021_s26  ;;  %v6435_v21 = vpop.permute.xlu0 %2430 }
 0x41d   :  { %8375 = vst [vmem:[#allocation21_spill] sm:$0xff] %v6435_v21 }
 0x41e   :  { %v6437_v22 = vpop.permute.xlu1 %2444  ;;  %2682 = vrot.lane.b32.xlu0 %v6209_v58, %s4021_s26  ;;  %v2220_v58 = vsel %vm711_vm1, %v6163_v37, %v6195_v40 }
 0x41f   :  { %8376 = vst [vmem:[#allocation38_spill] sm:$0xff] %v6437_v22 }
 0x420   :  { %2740 = vrot.lane.b32.xlu1 %v6217_v0, %s4022_s27  ;;  %v6443_v38 = vpop.permute.xlu0 %2446  ;;  %v2216_v0 = vsel %vm711_vm1, %v6195_v40, %v6181_v14 }
 0x421   :  { %8377 = vst [vmem:[#allocation20_spill] sm:$0xff] %v6443_v38  ;;  %v8384_v38 = vld [vmem:[#allocation82_spill] sm:$0xff] }
 0x422   :  { %v6445_v12 = vpop.permute.xlu1 %2424  ;;  %2742 = vrot.lane.b32.xlu0 %v6225_v33, %s4022_s27  ;;  %v8381_v33 = vld [vmem:[#allocation65_spill] sm:$0xff]  ;;  %v2230_v22 = vmul.f32 %v2216_v0, %v8384_v38  ;;  %v8387_v0 = vld [vmem:[#allocation62_spill] sm:$0xff] }
 0x423   :  { %8378 = vst [vmem:[#allocation41_spill] sm:$0xff] %v6445_v12  ;;  %v8383_v12 = vld [vmem:[#allocation81_spill] sm:$0xff] }
 0x424   :  { %2756 = vrot.lane.b32.xlu1 %v6231_v49, %s4022_s27  ;;  %v6451_v23 = vpop.permute.xlu0 %2432  ;;  %v2221_v49 = vsel %vm711_vm1, %v6175_v59, %v6207_v8 }
 0x425   :  { %8379 = vst [vmem:[#allocation42_spill] sm:$0xff] %v6451_v23  ;;  %v2229_v23 = vmul.f32 %v2220_v58, %v8383_v12  ;;  %v2233_v40 = vmul.f32 %v2221_v49, %v8383_v12  ;;  %v2224_v58 = vsel %vm711_vm1, %v8386_v43, %v6163_v37  ;;  %v2225_v49 = vsel %vm711_vm1, %v8387_v0, %v6175_v59 }
 0x426   :  { %v6453_v27 = vpop.permute.xlu1 %2440  ;;  %2758 = vrot.lane.b32.xlu0 %v6241_v7, %s4022_s27  ;;  %v2217_v7 = vsel %vm711_vm1, %v6207_v8, %v6189_v15  ;;  %v2212_v8 = vsel %vm711_vm1, %v6181_v14, %v8386_v43  ;;  %v2213_v14 = vsel %vm711_vm1, %v6189_v15, %v8387_v0  ;;  %v8392_v43 = vld [vmem:[#allocation26_spill] sm:$0xff]  ;;  %v8394_v15 = vld [vmem:[#allocation69_spill] sm:$0xff]  ;;  %v8395_v0 = vld [vmem:[#allocation47_spill] sm:$0xff] }
 0x427   :  { %8380 = vst [vmem:[#allocation16_spill] sm:$0xff] %v6453_v27  ;;  %v2234_v21 = vmul.f32 %v2217_v7, %v8384_v38  ;;  %v8390_v7 = vld [vmem:[#allocation67_spill] sm:$0xff]  ;;  %v2231_v6 = vmul.f32 %v2212_v8, %v8393_v20  ;;  %v2232_v59 = vmul.f32 %v2225_v49, %v8392_v43  ;;  %v2245_v50 = vadd.f32 %v2229_v23, %v8395_v0 }
 0x428   :  { %2748 = vrot.lane.b32.xlu1 %v8381_v33, %s4022_s27  ;;  %v6475_v27 = vpop.permute.xlu0 %2448  ;;  %v8388_v33 = vld [vmem:[#allocation71_spill] sm:$0xff]  ;;  %v2235_v49 = vmul.f32 %v2213_v14, %v8393_v20  ;;  %v2223_v23 = vsel %vm711_vm1, %v6259_v48, %v6271_v52 }
 0x429   :  { %8382 = vst [vmem:[#allocation22_spill] sm:$0xff] %v6475_v27  ;;  %v8391_v27 = vld [vmem:[#allocation66_spill] sm:$0xff]  ;;  %v2250_v8 = vadd.f32 %v2234_v21, %v8398_v36  ;;  %v2219_v21 = vsel %vm711_vm1, %v6271_v52, %v6277_v24  ;;  %v2300_v52 = vsel %vm814_vm2, %v6285_v1, %v6301_v4 }
 0x42a   :  { %v6480_v26 = vpop.permute.xlu1 %2426  ;;  %2750 = vrot.lane.b32.xlu0 %v6235_v44, %s4022_s27  ;;  %v2222_v37 = vsel %vm711_vm1, %v8391_v27, %v8390_v7  ;;  %v2246_v7 = vadd.f32 %v2230_v22, %v8396_v57  ;;  %v8400_v57 = vld [vmem:[#allocation68_spill] sm:$0xff]  ;;  %v2227_v22 = vsel %vm711_vm1, %v6283_v46, %v6259_v48  ;;  %v2241_v48 = vmul.f32 %v2223_v23, %v8383_v12 }
 0x42b   :  { %8385 = vst [vmem:[#allocation23_spill] sm:$0xff] %v6480_v26  ;;  %v2228_v26 = vmul.f32 %v2224_v58, %v8392_v43  ;;  %v2249_v58 = vadd.f32 %v2233_v40, %v8397_v54  ;;  %v2237_v29 = vmul.f32 %v2222_v37, %v8383_v12  ;;  %v8401_v40 = vld [vmem:[#allocation45_spill] sm:$0xff]  ;;  %v8402_v37 = vld [vmem:[#allocation44_spill] sm:$0xff]  ;;  %v2297_v12 = vsel %vm814_vm2, %v6307_v11, %v6299_v61 }
 0x42c   :  { %2764 = vrot.lane.b32.xlu1 %v8388_v33, %s4022_s27  ;;  %v6499_v44 = vpop.permute.xlu0 %2434  ;;  %v2226_v33 = vsel %vm711_vm1, %v6253_v34, %v8391_v27  ;;  %v2214_v27 = vsel %vm711_vm1, %v8399_v42, %v6253_v34  ;;  %v2215_v34 = vsel %vm711_vm1, %v6277_v24, %v6283_v46  ;;  %v8404_v24 = vld [vmem:[#allocation72_spill] sm:$0xff]  ;;  %v2296_v46 = vsel %vm814_vm2, %v6301_v4, %v6293_v60 }
 0x42d   :  { %8389 = vst [vmem:[#allocation24_spill] sm:$0xff] %v6499_v44  ;;  %v2236_v36 = vmul.f32 %v2226_v33, %v8392_v43  ;;  %v2244_v14 = vadd.f32 %v2228_v26, %v8401_v40  ;;  %v8403_v33 = vld [vmem:[#allocation43_spill] sm:$0xff]  ;;  %v2239_v42 = vmul.f32 %v2214_v27, %v8393_v20  ;;  %v2242_v26 = vmul.f32 %v2219_v21, %v8384_v38  ;;  %v8406_v27 = vld [vmem:[#allocation50_spill] sm:$0xff] }
 0x42e   :  { %v6516_v44 = vpop.permute.xlu1 %2442  ;;  %2766 = vrot.lane.b32.xlu0 %v8394_v15, %s4022_s27  ;;  %v2247_v15 = vadd.f32 %v2231_v6, %v8402_v37  ;;  %v2248_v0 = vadd.f32 %v2232_v59, %v8403_v33  ;;  %v2301_v6 = vsel %vm814_vm2, %v6291_v9, %v6307_v11  ;;  %v2240_v59 = vmul.f32 %v2227_v22, %v8392_v43  ;;  %v8407_v37 = vld [vmem:[#allocation55_spill] sm:$0xff]  ;;  %v8410_v22 = vld [vmem:[#allocation84_spill] sm:$0xff] }
 0x42f   :  { %v2243_v40 = vmul.f32 %v2215_v34, %v8393_v20  ;;  %v2251_v23 = vadd.f32 %v2235_v49, %v8406_v27  ;;  %v2253_v33 = vadd.f32 %v2237_v29, %v8407_v37  ;;  %v8409_v38 = vld [vmem:[#allocation27_spill] sm:$0xff]  ;;  %v2310_v20 = vmul.f32 %v2296_v46, %v8410_v22  ;;  %v8411_v29 = vld [vmem:[#allocation52_spill] sm:$0xff]  ;;  %v8413_v27 = vld [vmem:[#allocation57_spill] sm:$0xff] }
 0x430   :  { %2752 = vrot.lane.b32.xlu1 %v8400_v57, %s4022_s27  ;;  %v6536_v54 = vpop.permute.xlu0 %2450  ;;  %v2309_v43 = vmul.f32 %v2300_v52, %v8409_v38  ;;  %v2313_v34 = vmul.f32 %v2301_v6, %v8409_v38  ;;  %v2292_v11 = vsel %vm814_vm2, %v6293_v60, %v6309_v2  ;;  %v8412_v52 = vld [vmem:[#allocation54_spill] sm:$0xff]  ;;  %v2314_v6 = vmul.f32 %v2297_v12, %v8410_v22  ;;  %v8418_v12 = vld [vmem:[#allocation85_spill] sm:$0xff] }
 0x431   :  { %v2257_v46 = vadd.f32 %v2241_v48, %v8412_v52  ;;  %v2305_v60 = vsel %vm814_vm2, %v6315_v25, %v6291_v9  ;;  %v2258_v37 = vadd.f32 %v2242_v26, %v8413_v27  ;;  %v8419_v9 = vld [vmem:[#allocation86_spill] sm:$0xff]  ;;  %v2302_v26 = vsel %vm814_vm2, %v6317_v28, %v6323_v63 }
 0x432   :  { %v6558_v57 = vpop.permute.xlu1 %2500  ;;  %2744 = vrot.lane.b32.xlu0 %v8404_v24, %s4022_s27  ;;  %v8408_v24 = vld [vmem:[#allocation53_spill] sm:$0xff]  ;;  %v2311_v52 = vmul.f32 %v2292_v11, %v8419_v9  ;;  %v2312_v27 = vmul.f32 %v2305_v60, %v8418_v12  ;;  %v2330_v11 = vadd.f32 %v2314_v6, %v2250_v8  ;;  %v2295_v8 = vsel %vm814_vm2, %v6341_v35, %v6347_v62 }
 0x433   :  { %v2252_v21 = vadd.f32 %v2236_v36, %v8408_v24  ;;  %v2255_v36 = vadd.f32 %v2239_v42, %v8411_v29  ;;  %v8414_v24 = vld [vmem:[#allocation51_spill] sm:$0xff]  ;;  %v8417_v42 = vld [vmem:[#allocation73_spill] sm:$0xff] }
 0x434   :  { %2768 = vrot.lane.b32.xlu1 %v6265_v18, %s4022_s27  ;;  %v6581_v4 = vpop.permute.xlu0 %2502  ;;  %v2304_v18 = vsel %vm814_vm2, %v6309_v2, %v6285_v1  ;;  %v6610_v1 = vadd.f32 %v2240_v59, %v8414_v24  ;;  %v8416_v2 = vld [vmem:[#allocation58_spill] sm:$0xff]  ;;  %v2306_v59 = vsel %vm814_vm2, %v6331_v10, %v6317_v28  ;;  %v2303_v28 = vsel %vm814_vm2, %v6333_v39, %v6339_v41 }
 0x435   :  { %8405 = vst [vmem:[#allocation25_spill] sm:$0xff] %v6581_v4  ;;  %v2259_v4 = vadd.f32 %v2243_v40, %v8416_v2  ;;  %v2308_v29 = vmul.f32 %v2304_v18, %v8418_v12  ;;  %v2329_v40 = vadd.f32 %v2313_v34, %v2249_v58  ;;  %v8420_v18 = vld [vmem:[#allocation74_spill] sm:$0xff]  ;;  %v2299_v58 = vsel %vm814_vm2, %v6339_v41, %v6341_v35 }
 0x436   :  { %v6597_v49 = vpop.permute.xlu1 %2516  ;;  %2760 = vrot.lane.b32.xlu0 %v6263_v5, %s4022_s27  ;;  %8415 = vst [vmem:[#allocation65_spill] sm:$0xff] %v6610_v1  ;;  %v2293_v5 = vsel %vm814_vm2, %v6299_v61, %v6315_v25  ;;  %v2325_v61 = vadd.f32 %v2309_v43, %v2245_v50  ;;  %v2326_v25 = vadd.f32 %v2310_v20, %v2246_v7  ;;  %v8443_v1 = vld [vmem:[#allocation94_spill] sm:$0xff] }
 0x437   :  { %v2315_v2 = vmul.f32 %v2293_v5, %v8419_v9  ;;  %v2317_v50 = vmul.f32 %v2302_v26, %v8409_v38  ;;  %v2316_v7 = vmul.f32 %v2306_v59, %v8418_v12  ;;  %v2324_v43 = vadd.f32 %v2308_v29, %v2244_v14  ;;  %v8422_v26 = vld [vmem:[#allocation87_spill] sm:$0xff] }
 0x438   :  { %2746 = vrot.lane.b32.xlu1 %v8417_v42, %s4022_s27  ;;  %v6619_v48 = vpop.permute.xlu0 %2518  ;;  %v2294_v42 = vsel %vm814_vm2, %v6325_v19, %v6331_v10  ;;  %v2327_v20 = vadd.f32 %v2311_v52, %v2247_v15  ;;  %v2376_v34 = vsel %vm918_vm3, %v6365_v51, %v6357_v13  ;;  %v2380_v41 = vsel %vm918_vm3, %v6349_v55, %v6365_v51  ;;  %v8421_v15 = vld [vmem:[#allocation91_spill] sm:$0xff] }
 0x439   :  { %v2328_v6 = vadd.f32 %v2312_v27, %v2248_v0  ;;  %v2319_v35 = vmul.f32 %v2294_v42, %v8419_v9  ;;  %v2321_v60 = vmul.f32 %v2303_v28, %v8409_v38  ;;  %v2331_v5 = vadd.f32 %v2315_v2, %v2251_v23  ;;  %v8423_v27 = vld [vmem:[#allocation88_spill] sm:$0xff] }
 0x43a   :  { %v6632_v24 = vpop.permute.xlu1 %2508  ;;  %2754 = vrot.lane.b32.xlu0 %v8420_v18, %s4022_s27  ;;  %v2322_v29 = vmul.f32 %v2299_v58, %v8410_v22  ;;  %v2323_v51 = vmul.f32 %v2295_v8, %v8419_v9  ;;  %v2377_v38 = vsel %vm918_vm3, %v6371_v30, %v6363_v45  ;;  %v6683_v0 = vadd.f32 %v2317_v50, %v2253_v33  ;;  %v8425_v58 = vld [vmem:[#allocation90_spill] sm:$0xff] }
 0x43b   :  { %v2332_v52 = vadd.f32 %v2316_v7, %v2252_v21  ;;  %v2389_v59 = vmul.f32 %v2380_v41, %v8422_v26  ;;  %v2390_v18 = vmul.f32 %v2376_v34, %v8423_v27  ;;  %v2372_v9 = vsel %vm918_vm3, %v6357_v13, %v6373_v53 }
 0x43c   :  { %2762 = vrot.lane.b32.xlu1 %v6273_v17, %s4022_s27  ;;  %v6657_v10 = vpop.permute.xlu0 %2510  ;;  %v2381_v17 = vsel %vm918_vm3, %v6355_v32, %v6371_v30  ;;  %v2384_v30 = vsel %vm918_vm3, %v6373_v53, %v6349_v55  ;;  %v2385_v33 = vsel %vm918_vm3, %v6379_v31, %v6355_v32  ;;  %v6702_v21 = vadd.f32 %v2319_v35, %v2255_v36  ;;  %v8424_v36 = vld [vmem:[#allocation89_spill] sm:$0xff] }
 0x43d   :  { %v2393_v23 = vmul.f32 %v2381_v17, %v8422_v26  ;;  %v2337_v2 = vadd.f32 %v2321_v60, %v2257_v46  ;;  %v2394_v28 = vmul.f32 %v2377_v38, %v8423_v27  ;;  %v2373_v13 = vsel %vm918_vm3, %v6363_v45, %v6379_v31  ;;  %v8426_v31 = vld [vmem:[#allocation29_spill] sm:$0xff]  ;;  %v8427_v60 = vld [vmem:[#allocation96_spill] sm:$0xff] }
 0x43e   :  { %v6673_v14 = vpop.permute.xlu1 %2524  ;;  %2770 = vrot.lane.b32.xlu0 %v8421_v15, %s4022_s27  ;;  %v2338_v7 = vadd.f32 %v2322_v29, %v2258_v37  ;;  %v6715_v55 = vsel %vm814_vm2, %v6347_v62, %v6333_v39  ;;  %v2339_v32 = vadd.f32 %v2323_v51, %v2259_v4  ;;  %v2386_v53 = vsel %vm918_vm3, %v6395_v56, %v6381_v47  ;;  %v8428_v29 = vld [vmem:[#allocation30_spill] sm:$0xff]  ;;  %v8430_v38 = vld [vmem:[#allocation33_spill] sm:$0xff] }
 0x43f   :  { %v2388_v46 = vmul.f32 %v2384_v30, %v8424_v36  ;;  %v2391_v8 = vmul.f32 %v2372_v9, %v8425_v58  ;;  %v2392_v45 = vmul.f32 %v2385_v33, %v8424_v36  ;;  %v2383_v37 = vsel %vm918_vm3, %v8426_v31, %v6403_v16  ;;  %v8433_v33 = vld [vmem:[#allocation80_spill] sm:$0xff] }
 0x440   :  { %v6687_v42 = vpop.permute.xlu0 %2526  ;;  %v2405_v39 = vadd.f32 %v2389_v59, %v2325_v61  ;;  %v2406_v62 = vadd.f32 %v2390_v18, %v2326_v25  ;;  %v6730_v4 = vadd.f32 %v2393_v23, %v2329_v40  ;;  %v2395_v41 = vmul.f32 %v2373_v13, %v8425_v58  ;;  %v8429_v40 = vld [vmem:[#allocation31_spill] sm:$0xff]  ;;  %v8431_v59 = vld [vmem:[#allocation17_spill] sm:$0xff]  ;;  %v8432_v18 = vld [vmem:[#allocation10_spill] sm:$0xff] }
 0x441   :  { %v6733_v35 = vadd.f32 %v2394_v28, %v2330_v11  ;;  %v2382_v17 = vsel %vm918_vm3, %v6381_v47, %v8427_v60  ;;  %v2396_v15 = vmul.f32 %v2386_v53, %v8424_v36  ;;  %v2379_v51 = vsel %vm918_vm3, %v6403_v16, %v8428_v29 }
 0x442   :  { %v6709_v50 = vpop.permute.xlu1 %2504  ;;  %v2401_v25 = vmul.f32 %v2383_v37, %v8422_v26  ;;  %v2375_v11 = vsel %vm918_vm3, %v8428_v29, %v8429_v40  ;;  %v2456_v47 = vsel %vm1022_vm4, %v8431_v59, %v8430_v38  ;;  %v2460_v23 = vsel %vm1022_vm4, %v8432_v18, %v8431_v59  ;;  %v8437_v59 = vld [vmem:[#allocation93_spill] sm:$0xff] }
 0x443   :  { %v6759_v16 = vadd.f32 %v2388_v46, %v2324_v43  ;;  %v6761_v9 = vadd.f32 %v2391_v8, %v2327_v20  ;;  %v6763_v30 = vadd.f32 %v2392_v45, %v2328_v6  ;;  %v2374_v28 = vsel %vm918_vm3, %v8433_v33, %v6395_v56  ;;  %v8434_v43 = vld [vmem:[#allocation24_spill] sm:$0xff]  ;;  %v8435_v46 = vld [vmem:[#allocation23_spill] sm:$0xff] }
 0x444   :  { %v6728_v34 = vpop.permute.xlu0 %2512  ;;  %v6771_v53 = vadd.f32 %v2395_v41, %v2331_v5  ;;  %v6774_v37 = vmul.f32 %v2382_v17, %v8422_v26  ;;  %v2402_v29 = vmul.f32 %v2379_v51, %v8423_v27  ;;  %v2463_v20 = vsel %vm1022_vm4, %v8435_v46, %v8434_v43  ;;  %v8436_v8 = vld [vmem:[#allocation92_spill] sm:$0xff] }
 0x445   :  { %v2403_v6 = vmul.f32 %v2375_v11, %v8425_v58  ;;  %v2469_v45 = vmul.f32 %v2460_v23, %v8436_v8  ;;  %v2470_v56 = vmul.f32 %v2456_v47, %v8437_v59  ;;  %v2459_v5 = vsel %vm1022_vm4, %v8434_v43, %v6516_v44  ;;  %v8438_v23 = vld [vmem:[#allocation19_spill] sm:$0xff]  ;;  %v8439_v47 = vld [vmem:[#allocation21_spill] sm:$0xff]  ;;  %v8440_v43 = vld [vmem:[#allocation12_spill] sm:$0xff] }
 0x446   :  { %v6744_v61 = vpop.permute.xlu1 %2520  ;;  %v6791_v41 = vmul.f32 %v2374_v28, %v8425_v58  ;;  %v6793_v17 = vadd.f32 %v2396_v15, %v2332_v52  ;;  %v2417_v51 = vadd.f32 %v2401_v25, %v2337_v2  ;;  %v2455_v11 = vsel %vm1022_vm4, %v6516_v44, %v6536_v54  ;;  %v8441_v58 = vld [vmem:[#allocation38_spill] sm:$0xff] }
 0x447   :  { %v2457_v27 = vsel %vm1022_vm4, %v8439_v47, %v8438_v23  ;;  %v2461_v22 = vsel %vm1022_vm4, %v8440_v43, %v8439_v47  ;;  %v2464_v52 = vsel %vm1022_vm4, %v8441_v58, %v8432_v18  ;;  %v2481_v2 = vmul.f32 %v2463_v20, %v8436_v8  ;;  %v8442_v20 = vld [vmem:[#allocation95_spill] sm:$0xff] }
 0x448   :  { %v6769_v13 = vpop.permute.xlu0 %2528  ;;  %v2418_v44 = vadd.f32 %v2402_v29, %v2338_v7  ;;  %v6818_v25 = vsel %vm918_vm3, %v8429_v40, %v8426_v31  ;;  %v2452_v28 = vsel %vm1022_vm4, %v8430_v38, %v8441_v58  ;;  %v2482_v47 = vmul.f32 %v2459_v5, %v8437_v59  ;;  %v8444_v5 = vld [vmem:[#allocation20_spill] sm:$0xff] }
 0x449   :  { %v2419_v60 = vadd.f32 %v2403_v6, %v2339_v32  ;;  %v2485_v18 = vadd.f32 %v2469_v45, %v2405_v39  ;;  %v2486_v33 = vadd.f32 %v2470_v56, %v2406_v62  ;;  %v2483_v63 = vmul.f32 %v2455_v11, %v8442_v20  ;;  %v8445_v62 = vld [vmem:[#allocation8_spill] sm:$0xff] }
 0x44a   :  { %v6788_v26 = vpop.permute.xlu1 %2506  ;;  %v2473_v7 = vmul.f32 %v2461_v22, %v8436_v8  ;;  %v2474_v29 = vmul.f32 %v2457_v27, %v8437_v59  ;;  %v2468_v31 = vmul.f32 %v2464_v52, %v8443_v1  ;;  %v2471_v38 = vmul.f32 %v2452_v28, %v8442_v20 }
 0x44b   :  { %v2465_v32 = vsel %vm1022_vm4, %v8444_v5, %v8440_v43  ;;  %v2497_v39 = vadd.f32 %v2481_v2, %v2417_v51  ;;  %v2453_v22 = vsel %vm1022_vm4, %v8438_v23, %v8444_v5  ;;  %v2498_v27 = vadd.f32 %v2482_v47, %v2418_v44  ;;  %v8447_v51 = vld [vmem:[#allocation6_spill] sm:$0xff] }
 0x44c   :  { %v6812_v15 = vpop.permute.xlu0 %2514  ;;  %v2499_v58 = vadd.f32 %v2483_v63, %v2419_v60  ;;  %v8448_v2 = vld [vmem:[#allocation34_spill] sm:$0xff]  ;;  %v2472_v59 = vmul.f32 %v2465_v32, %v8443_v1  ;;  %v2536_v23 = vsel %vm1126_vm5, %v6632_v24, %v6597_v49  ;;  %v8449_v63 = vld [vmem:[#allocation25_spill] sm:$0xff]  ;;  %v2489_v44 = vadd.f32 %v2473_v7, %v6730_v4 }
 0x44d   :  { %v2541_v60 = vsel %vm1126_vm5, %v8449_v63, %v6657_v10  ;;  %v2490_v47 = vadd.f32 %v2474_v29, %v6733_v35  ;;  %v2532_v4 = vsel %vm1126_vm5, %v6597_v49, %v6673_v14  ;;  %v8453_v35 = vld [vmem:[#allocation7_spill] sm:$0xff]  ;;  %v2549_v29 = vmul.f32 %v2536_v23, %v8445_v62  ;;  %v8454_v49 = vld [vmem:[#allocation22_spill] sm:$0xff] }
 0x44e   :  { %v2523_v19 = vpop.permute.xlu1 %2522 }
 0x44f   :  { %v2539_v40 = vsel %vm1126_vm5, %v6812_v15, %v2523_v19 }
 0x450   :  { %v2561_v6 = vmul.f32 %v2539_v40, %v8445_v62  ;;  %v2531_v45 = vpop.permute.xlu0 %2530 }
 0x451   :  { %v2535_v56 = vsel %vm1126_vm5, %v2523_v19, %v2531_v45  ;;  %v2547_v11 = vsel %vm1126_vm5, %v2531_v45, %v6788_v26  ;;  %v2540_v19 = vsel %vm1126_vm5, %v6558_v57, %v6632_v24  ;;  %v8451_v45 = vld [vmem:[#allocation42_spill] sm:$0xff] }
 0x452   :  { %v6847_v52 = vadd.f32 %v2561_v6, %v2497_v39  ;;  %v2562_v43 = vmul.f32 %v2535_v56, %v8447_v51  ;;  %v2563_v28 = vmul.f32 %v2547_v11, %v8448_v2  ;;  %v2581_v40 = vpop.permute.xlu1 %2580  ;;  %v2475_v6 = vmul.f32 %v2453_v22, %v8442_v20  ;;  %v8452_v56 = vld [vmem:[#allocation41_spill] sm:$0xff] }
 0x453   :  { %v2462_v24 = vsel %vm1022_vm4, %v8452_v56, %v8451_v45  ;;  %v2537_v11 = vsel %vm1126_vm5, %v6657_v10, %v6619_v48  ;;  %v2548_v7 = vmul.f32 %v2540_v19, %v8453_v35  ;;  %v2552_v22 = vmul.f32 %v2541_v60, %v8453_v35 }
 0x454   :  { %8446 = vst [vmem:[#allocation81_spill] sm:$0xff] %v6847_v52  ;;  %v6866_v5 = vadd.f32 %v2562_v43, %v2498_v27  ;;  %v6868_v32 = vadd.f32 %v2563_v28, %v2499_v58  ;;  %v2583_v39 = vpop.permute.xlu0 %2582  ;;  %v2544_v27 = vsel %vm1126_vm5, %v6673_v14, %v6558_v57  ;;  %v2484_v43 = vadd.f32 %v2468_v31, %v6759_v16  ;;  %v8457_v52 = vld [vmem:[#allocation32_spill] sm:$0xff] }
 0x455   :  { %v2487_v10 = vadd.f32 %v2471_v38, %v6761_v9  ;;  %v2488_v28 = vadd.f32 %v2472_v59, %v6763_v30  ;;  %v2466_v19 = vsel %vm1022_vm4, %v8454_v49, %v8452_v56  ;;  %v2553_v23 = vmul.f32 %v2537_v11, %v8445_v62  ;;  %v8455_v59 = vld [vmem:[#allocation16_spill] sm:$0xff] }
 0x456   :  { %8450 = vst [vmem:[#allocation60_spill] sm:$0xff] %v6866_v5  ;;  %v2597_v58 = vpop.permute.xlu1 %2596  ;;  %v2550_v60 = vmul.f32 %v2532_v4, %v8447_v51  ;;  %v2533_v57 = vsel %vm1126_vm5, %v6619_v48, %v6687_v42  ;;  %v2545_v14 = vsel %vm1126_vm5, %v6687_v42, %v8449_v63  ;;  %v2491_v9 = vadd.f32 %v2475_v6, %v6771_v53 }
 0x457   :  { %v2477_v30 = vmul.f32 %v2462_v24, %v8436_v8  ;;  %v2454_v31 = vsel %vm1022_vm4, %v8455_v59, %v8454_v49  ;;  %v2551_v38 = vmul.f32 %v2544_v27, %v8448_v2  ;;  %v2476_v56 = vmul.f32 %v2466_v19, %v8443_v1  ;;  %v8456_v49 = vld [vmem:[#allocation36_spill] sm:$0xff] }
 0x458   :  { %v2599_v16 = vpop.permute.xlu0 %2598  ;;  %v2564_v48 = vadd.f32 %v2548_v7, %v2484_v43  ;;  %v2565_v11 = vadd.f32 %v2549_v29, %v2485_v18  ;;  %v2568_v4 = vadd.f32 %v2552_v22, %v2488_v28  ;;  %v2554_v42 = vmul.f32 %v2533_v57, %v8447_v51 }
 0x459   :  { %v2555_v63 = vmul.f32 %v2545_v14, %v8448_v2  ;;  %v2569_v6 = vadd.f32 %v2553_v23, %v2489_v44  ;;  %v2566_v24 = vadd.f32 %v2550_v60, %v2486_v33  ;;  %v2567_v18 = vadd.f32 %v2551_v38, %v2487_v10 }
 0x45a   :  { %v2589_v5 = vpop.permute.xlu1 %2588  ;;  %v2542_v29 = vsel %vm1126_vm5, %v6709_v50, %v6728_v34  ;;  %v2570_v23 = vadd.f32 %v2554_v42, %v2490_v47  ;;  %v2538_v47 = vsel %vm1126_vm5, %v6728_v34, %v6744_v61  ;;  %v2413_v34 = vadd.f32 %v6774_v37, %v6683_v0 }
 0x45b   :  { %v2616_v53 = vsel %vm1230_vm6, %v2589_v5, %v2597_v58  ;;  %v2620_v8 = vsel %vm1230_vm6, %v2581_v40, %v2589_v5  ;;  %v2571_v60 = vadd.f32 %v2555_v63, %v2491_v9  ;;  %v2400_v0 = vmul.f32 %v6818_v25, %v8424_v36 }
 0x45c   :  { %v2628_v27 = vmul.f32 %v2620_v8, %v8456_v49  ;;  %v2629_v19 = vmul.f32 %v2616_v53, %v8457_v52  ;;  %v2591_v7 = vpop.permute.xlu0 %2590  ;;  %v8459_v8 = vld [vmem:[#allocation37_spill] sm:$0xff]  ;;  %v2493_v37 = vadd.f32 %v2477_v30, %v2413_v34  ;;  %v2543_v36 = vsel %vm1126_vm5, %v6788_v26, %v6812_v15 }
 0x45d   :  { %v2617_v22 = vsel %vm1230_vm6, %v2591_v7, %v2599_v16  ;;  %v2621_v43 = vsel %vm1230_vm6, %v2583_v39, %v2591_v7  ;;  %v2556_v7 = vmul.f32 %v2542_v29, %v8453_v35  ;;  %v2320_v29 = vmul.f32 %v6715_v55, %v8418_v12 }
 0x45e   :  { %v6931_v5 = vadd.f32 %v2628_v27, %v2564_v48  ;;  %v6933_v33 = vadd.f32 %v2629_v19, %v2565_v11  ;;  %v2632_v44 = vmul.f32 %v2621_v43, %v8456_v49  ;;  %v2633_v28 = vmul.f32 %v2617_v22, %v8457_v52  ;;  %v2605_v10 = vpop.permute.xlu1 %2604  ;;  %v8458_v48 = vld [vmem:[#allocation35_spill] sm:$0xff] }
 0x45f   :  { %v2612_v57 = vsel %vm1230_vm6, %v2597_v58, %v2605_v10  ;;  %v2624_v14 = vsel %vm1230_vm6, %v2605_v10, %v2581_v40  ;;  %v2415_v12 = vadd.f32 %v6791_v41, %v6702_v21 }
 0x460   :  { %v6941_v38 = vadd.f32 %v2632_v44, %v2568_v4  ;;  %v6943_v53 = vadd.f32 %v2633_v28, %v2569_v6  ;;  %v2630_v11 = vmul.f32 %v2612_v57, %v8458_v48  ;;  %v2631_v27 = vmul.f32 %v2624_v14, %v8459_v8  ;;  %v2607_v19 = vpop.permute.xlu0 %2606 }
 0x461   :  { %v2613_v58 = vsel %vm1230_vm6, %v2599_v16, %v2607_v19  ;;  %v2625_v40 = vsel %vm1230_vm6, %v2607_v19, %v2583_v39  ;;  %v2479_v16 = vmul.f32 %v2454_v31, %v8442_v20  ;;  %v2546_v39 = vsel %vm1126_vm5, %v6769_v13, %v6709_v50 }
 0x462   :  { %v6956_v9 = vadd.f32 %v2630_v11, %v2566_v24  ;;  %v6958_v4 = vadd.f32 %v2631_v27, %v2567_v18  ;;  %v2634_v42 = vmul.f32 %v2613_v58, %v8458_v48  ;;  %v2635_v63 = vmul.f32 %v2625_v40, %v8459_v8  ;;  %v2585_v6 = vpop.permute.xlu1 %2584 }
 0x463   :  { %v2492_v24 = vadd.f32 %v2476_v56, %v6793_v17  ;;  %v2557_v18 = vmul.f32 %v2538_v47, %v8445_v62  ;;  %v2467_v50 = vsel %vm1022_vm4, %v6536_v54, %v8435_v46  ;;  %v2559_v20 = vmul.f32 %v2546_v39, %v8448_v2  ;;  %v8460_v56 = vld [vmem:[#allocation65_spill] sm:$0xff] }
 0x464   :  { %v6973_v22 = vadd.f32 %v2634_v42, %v2570_v23  ;;  %v6975_v43 = vadd.f32 %v2635_v63, %v2571_v60  ;;  %v2593_v44 = vpop.permute.xlu0 %2592  ;;  %v2336_v21 = vadd.f32 %v2320_v29, %v8460_v56  ;;  %v2495_v41 = vadd.f32 %v2479_v16, %v2415_v12 }
 0x465   :  { %v2622_v55 = vsel %vm1230_vm6, %v2585_v6, %v2593_v44  ;;  %v2572_v17 = vadd.f32 %v2556_v7, %v2492_v24  ;;  %v2480_v46 = vmul.f32 %v2467_v50, %v8443_v1  ;;  %v2573_v25 = vadd.f32 %v2557_v18, %v2493_v37  ;;  %v8461_v50 = vld [vmem:[#allocation70_spill] sm:$0xff] }
 0x466   :  { %v2636_v62 = vmul.f32 %v2622_v55, %v8456_v49  ;;  %v2601_v31 = vpop.permute.xlu1 %2600  ;;  %v2416_v10 = vadd.f32 %v2400_v0, %v2336_v21  ;;  %v2575_v60 = vadd.f32 %v2559_v20, %v2495_v41  ;;  %v2560_v57 = vmul.f32 %v2543_v36, %v8453_v35  ;;  %v8462_v55 = vld [vmem:[#allocation67_spill] sm:$0xff]  ;;  %v8466_v41 = vld [vmem:[#allocation80_spill] sm:$0xff] }
 0x467   :  { %v2618_v54 = vsel %vm1230_vm6, %v2593_v44, %v2601_v31  ;;  %v2218_v37 = vsel %vm711_vm1, %v8462_v55, %v8461_v50  ;;  %v8467_v36 = vld [vmem:[#allocation96_spill] sm:$0xff] }
 0x468   :  { %v6997_v30 = vadd.f32 %v2636_v62, %v2572_v17  ;;  %v2637_v2 = vmul.f32 %v2618_v54, %v8457_v52  ;;  %v2609_v28 = vpop.permute.xlu0 %2608  ;;  %v2496_v11 = vadd.f32 %v2480_v46, %v2416_v10  ;;  %v8463_v17 = vld [vmem:[#allocation28_spill] sm:$0xff]  ;;  %v8465_v62 = vld [vmem:[#allocation82_spill] sm:$0xff]  ;;  %v2378_v54 = vsel %vm918_vm3, %v8467_v36, %v8466_v41 }
 0x469   :  { %v2626_v23 = vsel %vm1230_vm6, %v2609_v28, %v2585_v6  ;;  %v2238_v56 = vmul.f32 %v2218_v37, %v8465_v62  ;;  %v8468_v46 = vld [vmem:[#allocation84_spill] sm:$0xff]  ;;  %v2458_v10 = vsel %vm1022_vm4, %v8451_v45, %v8455_v59  ;;  %v2614_v59 = vsel %vm1230_vm6, %v2601_v31, %v2609_v28 }
 0x46a   :  { %v7003_v14 = vadd.f32 %v2637_v2, %v2573_v25  ;;  %v2639_v26 = vmul.f32 %v2626_v23, %v8459_v8  ;;  %v2587_v15 = vpop.permute.xlu1 %2586  ;;  %v2576_v7 = vadd.f32 %v2560_v57, %v2496_v11  ;;  %v8469_v23 = vld [vmem:[#allocation56_spill] sm:$0xff]  ;;  %v2534_v11 = vsel %vm1126_vm5, %v6744_v61, %v6769_v13 }
 0x46b   :  { %v8470_v57 = vld [vmem:[#allocation88_spill] sm:$0xff]  ;;  %v2558_v50 = vmul.f32 %v2534_v11, %v8447_v51 }
 0x46c   :  { %v7006_v1 = vadd.f32 %v2639_v26, %v2575_v60  ;;  %v2595_v27 = vpop.permute.xlu0 %2594  ;;  %v2254_v60 = vadd.f32 %v2238_v56, %v8469_v23  ;;  %v2398_v26 = vmul.f32 %v2378_v54, %v8470_v57  ;;  %v8472_v56 = vld [vmem:[#allocation11_spill] sm:$0xff]  ;;  %v8473_v54 = vld [vmem:[#allocation9_spill] sm:$0xff] }
 0x46d   :  { %v2623_v19 = vsel %vm1230_vm6, %v2587_v15, %v2595_v27  ;;  %v8475_v23 = vld [vmem:[#allocation15_spill] sm:$0xff] }
 0x46e   :  { %v2640_v47 = vmul.f32 %v2623_v19, %v8456_v49  ;;  %v7011_v58 = vpop.permute.xlu1 %2602 }
 0x470   :  { %v7013_v40 = vadd.f32 %v2640_v47, %v2576_v7  ;;  %v2611_v35 = vpop.permute.xlu0 %2610  ;;  %v8471_v7 = vld [vmem:[#allocation93_spill] sm:$0xff] }
 0x471   :  { %v2627_v42 = vsel %vm1230_vm6, %v2611_v35, %v2587_v15  ;;  %v2478_v47 = vmul.f32 %v2458_v10, %v8471_v7  ;;  %v7102_v11 = vsel %vm1230_vm6, %v7011_v58, %v2611_v35 }
 0x472   :  { %v2643_v63 = vmul.f32 %v2627_v42, %v8459_v8  ;;  %v2661_v6 = vpop.permute.xlu1 %2660 }
 0x474   :  { %v7019_v29 = vadd.f32 %v2643_v63, %v6868_v32  ;;  %v2663_v34 = vpop.permute.xlu0 %2662  ;;  %v8464_v32 = vld [vmem:[#allocation79_spill] sm:$0xff] }
 0x475   :  { %v2298_v20 = vsel %vm814_vm2, %v8464_v32, %v8463_v17 }
 0x476   :  { %v2677_v16 = vpop.permute.xlu1 %2676  ;;  %v2318_v25 = vmul.f32 %v2298_v20, %v8468_v46  ;;  %v2638_v20 = vmul.f32 %v2614_v59, %v8458_v48 }
 0x478   :  { %v2679_v39 = vpop.permute.xlu0 %2678  ;;  %v2334_v19 = vadd.f32 %v2318_v25, %v2254_v60 }
 0x47a   :  { %v2669_v24 = vpop.permute.xlu1 %2668  ;;  %v2414_v63 = vadd.f32 %v2398_v26, %v2334_v19 }
 0x47b   :  { %v2700_v37 = vsel %vm1334_vm7, %v2661_v6, %v2669_v24  ;;  %v2696_v61 = vsel %vm1334_vm7, %v2669_v24, %v2677_v16  ;;  %v2619_v24 = vsel %vm1230_vm6, %v2595_v27, %v7011_v58  ;;  %v8474_v27 = vld [vmem:[#allocation13_spill] sm:$0xff] }
 0x47c   :  { %v2671_v18 = vpop.permute.xlu0 %2670  ;;  %v2494_v55 = vadd.f32 %v2478_v47, %v2414_v63  ;;  %v2708_v41 = vmul.f32 %v2700_v37, %v8472_v56  ;;  %v2709_v46 = vmul.f32 %v2696_v61, %v8473_v54  ;;  %v7097_v26 = vmul.f32 %v2619_v24, %v8457_v52  ;;  %v8477_v61 = vld [vmem:[#allocation18_spill] sm:$0xff] }
 0x47d   :  { %v2697_v13 = vsel %vm1334_vm7, %v2671_v18, %v2679_v39  ;;  %v2701_v32 = vsel %vm1334_vm7, %v2663_v34, %v2671_v18 }
 0x47e   :  { %v2685_v49 = vpop.permute.xlu1 %2684  ;;  %v2574_v51 = vadd.f32 %v2558_v50, %v2494_v55  ;;  %v2713_v25 = vmul.f32 %v2697_v13, %v8473_v54  ;;  %v2724_v19 = vadd.f32 %v2708_v41, %v6931_v5  ;;  %v2725_v47 = vadd.f32 %v2709_v46, %v6933_v33 }
 0x47f   :  { %v2692_v31 = vsel %vm1334_vm7, %v2677_v16, %v2685_v49  ;;  %v2704_v28 = vsel %vm1334_vm7, %v2685_v49, %v2661_v6  ;;  %v2712_v16 = vmul.f32 %v2701_v32, %v8472_v56 }
 0x480   :  { %v2687_v44 = vpop.permute.xlu0 %2686  ;;  %v2710_v10 = vmul.f32 %v2692_v31, %v8474_v27  ;;  %v2711_v60 = vmul.f32 %v2704_v28, %v8475_v23  ;;  %v7092_v57 = vadd.f32 %v2638_v20, %v2574_v51  ;;  %v2729_v50 = vadd.f32 %v2713_v25, %v6943_v53  ;;  %v8476_v53 = vld [vmem:[#allocation14_spill] sm:$0xff] }
 0x481   :  { %v2693_v36 = vsel %vm1334_vm7, %v2679_v39, %v2687_v44  ;;  %v2705_v18 = vsel %vm1334_vm7, %v2687_v44, %v2663_v34  ;;  %v2728_v63 = vadd.f32 %v2712_v16, %v6941_v38  ;;  %v8478_v16 = vld [vmem:[#allocation39_spill] sm:$0xff] }
 0x482   :  { %v7021_v12 = vpop.permute.xlu1 %2664  ;;  %v2714_v39 = vmul.f32 %v2693_v36, %v8474_v27  ;;  %v2715_v34 = vmul.f32 %v2705_v18, %v8475_v23  ;;  %v2726_v55 = vadd.f32 %v2710_v10, %v6956_v9  ;;  %v2727_v58 = vadd.f32 %v2711_v60, %v6958_v4 }
 0x484   :  { %v2673_v0 = vpop.permute.xlu0 %2672  ;;  %v2730_v33 = vadd.f32 %v2714_v39, %v6973_v22  ;;  %v2731_v38 = vadd.f32 %v2715_v34, %v6975_v43 }
 0x485   :  { %v2702_v6 = vsel %vm1334_vm7, %v7021_v12, %v2673_v0 }
 0x486   :  { %v7027_v8 = vpop.permute.xlu1 %2680  ;;  %v2716_v7 = vmul.f32 %v2702_v6, %v8472_v56  ;;  %v8479_v6 = vld [vmem:[#allocation40_spill] sm:$0xff] }
 0x487   :  { %v2698_v52 = vsel %vm1334_vm7, %v2673_v0, %v7027_v8 }
 0x488   :  { %v7034_v21 = vpop.permute.xlu0 %2688  ;;  %v2732_v32 = vadd.f32 %v2716_v7, %v6997_v30  ;;  %v2717_v9 = vmul.f32 %v2698_v52, %v8473_v54 }
 0x489   :  { %v2694_v30 = vsel %vm1334_vm7, %v7027_v8, %v7034_v21  ;;  %v2706_v24 = vsel %vm1334_vm7, %v7034_v21, %v7021_v12  ;;  %v8480_v12 = vld [vmem:[#allocation63_spill] sm:$0xff] }
 0x48a   :  { %v7041_v2 = vpop.permute.xlu1 %2674 }
 0x48c   :  { %v7049_v15 = vpop.permute.xlu0 %2666 }
 0x48e   :  { %v7056_v42 = vpop.permute.xlu1 %2690 }
 0x490   :  { %v7059_v45 = vpop.permute.xlu0 %2682 }
 0x492   :  { %v2741_v17 = vpop.permute.xlu1 %2740 }
 0x494   :  { %v2743_v62 = vpop.permute.xlu0 %2742 }
 0x496   :  { %v2757_v49 = vpop.permute.xlu1 %2756 }
 0x498   :  { %v2759_v44 = vpop.permute.xlu0 %2758 }
 0x49a   :  { %v2749_v59 = vpop.permute.xlu1 %2748 }
 0x49b   :  { %v2776_v5 = vsel %vm1438_vm8, %v2749_v59, %v2757_v49  ;;  %v2780_v35 = vsel %vm1438_vm8, %v2741_v17, %v2749_v59 }
 0x49c   :  { %v2788_v37 = vmul.f32 %v2780_v35, %v8476_v53  ;;  %v2789_v13 = vmul.f32 %v2776_v5, %v8477_v61  ;;  %v2751_v0 = vpop.permute.xlu0 %2750  ;;  %v2733_v35 = vadd.f32 %v2717_v9, %v7003_v14 }
 0x49d   :  { %v2777_v4 = vsel %vm1438_vm8, %v2751_v0, %v2759_v44  ;;  %v2781_v51 = vsel %vm1438_vm8, %v2743_v62, %v2751_v0 }
 0x49e   :  { %v2804_v20 = vadd.f32 %v2788_v37, %v2724_v19  ;;  %v2805_v31 = vadd.f32 %v2789_v13, %v2725_v47  ;;  %v2792_v22 = vmul.f32 %v2781_v51, %v8476_v53  ;;  %v2793_v43 = vmul.f32 %v2777_v4, %v8477_v61  ;;  %v2765_v28 = vpop.permute.xlu1 %2764  ;;  %v8481_v13 = vld [vmem:[#allocation59_spill] sm:$0xff] }
 0x49f   :  { %v2772_v41 = vsel %vm1438_vm8, %v2757_v49, %v2765_v28  ;;  %v2784_v36 = vsel %vm1438_vm8, %v2765_v28, %v2741_v17  ;;  %v2707_v28 = vsel %vm1334_vm7, %v7056_v42, %v7049_v15 }
 0x4a0   :  { %v2808_v18 = vadd.f32 %v2792_v22, %v2728_v63  ;;  %v2809_v46 = vadd.f32 %v2793_v43, %v2729_v50  ;;  %v2790_v25 = vmul.f32 %v2772_v41, %v8478_v16  ;;  %v2791_v10 = vmul.f32 %v2784_v36, %v8479_v6  ;;  %v2767_v60 = vpop.permute.xlu0 %2766 }
 0x4a1   :  { %v2773_v8 = vsel %vm1438_vm8, %v2759_v44, %v2767_v60  ;;  %v2785_v39 = vsel %vm1438_vm8, %v2767_v60, %v2743_v62  ;;  %v7149_v21 = vadd.f32 %v8480_v12, %v2804_v20  ;;  %v7152_v49 = vadd.f32 %v8480_v12, %v2805_v31 }
 0x4a2   :  { %v2806_v17 = vadd.f32 %v2790_v25, %v2726_v55  ;;  %v2807_v34 = vadd.f32 %v2791_v10, %v2727_v58  ;;  %v2794_v19 = vmul.f32 %v2773_v8, %v8478_v16  ;;  %v2795_v7 = vmul.f32 %v2785_v39, %v8479_v6  ;;  %v2753_v47 = vpop.permute.xlu1 %2752 }
 0x4a3   :  { %v2718_v63 = vmul.f32 %v2694_v30, %v8474_v27  ;;  %v2719_v44 = vmul.f32 %v2706_v24, %v8475_v23  ;;  %v2703_v62 = vsel %vm1334_vm7, %v7049_v15, %v7041_v2  ;;  %v2892_v50 = vadd.f32 %v7152_v49, %v7149_v21 }
 0x4a4   :  { %v2810_v52 = vadd.f32 %v2794_v19, %v2730_v33  ;;  %v2811_v59 = vadd.f32 %v2795_v7, %v2731_v38  ;;  %v2745_v55 = vpop.permute.xlu0 %2744  ;;  %v7165_v58 = vadd.f32 %v8480_v12, %v2806_v17  ;;  %v7168_v5 = vadd.f32 %v8480_v12, %v2807_v34 }
 0x4a5   :  { %2893 = vadd.xlane.f32.xlu1 %v2892_v50  ;;  %v2782_v37 = vsel %vm1438_vm8, %v2745_v55, %v2753_v47  ;;  %v7174_v0 = vadd.f32 %v8481_v13, %v2808_v18  ;;  %v7177_v4 = vadd.f32 %v8481_v13, %v2809_v46  ;;  %v2734_v9 = vadd.f32 %v2718_v63, %v7092_v57 }
 0x4a6   :  { %v2796_v33 = vmul.f32 %v2782_v37, %v8476_v53  ;;  %v2769_v38 = vpop.permute.xlu1 %2768  ;;  %v2992_v51 = vadd.f32 %v7168_v5, %v7165_v58  ;;  %v7183_v20 = vadd.f32 %v8481_v13, %v2810_v52  ;;  %v7186_v14 = vadd.f32 %v8481_v13, %v2811_v59 }
 0x4a7   :  { %v2735_v31 = vadd.f32 %v2719_v44, %v7006_v1  ;;  %v2720_v22 = vmul.f32 %v2703_v62, %v8472_v56  ;;  %v2786_v43 = vsel %vm1438_vm8, %v2769_v38, %v2745_v55  ;;  %v2699_v30 = vsel %vm1334_vm7, %v7041_v2, %v7059_v45 }
 0x4a8   :  { %v2799_v24 = vmul.f32 %v2786_v43, %v8479_v6  ;;  %2993 = vadd.xlane.f32.xlu0 %v2992_v51  ;;  %v2761_v57 = vpop.permute.xlu0 %2760  ;;  %v2995_v1 = vadd.f32 %v7186_v14, %v7183_v20  ;;  %v2695_v56 = vsel %vm1334_vm7, %v7059_v45, %v7056_v42  ;;  %v2812_v41 = vadd.f32 %v2796_v33, %v2732_v32  ;;  %v8482_v32 = vld [vmem:[#allocation81_spill] sm:$0xff] }
 0x4a9   :  { %v2774_v15 = vsel %vm1438_vm8, %v2761_v57, %v2769_v38  ;;  %v2778_v36 = vsel %vm1438_vm8, %v2753_v47, %v2761_v57  ;;  %v2895_v10 = vadd.f32 %v7177_v4, %v7174_v0  ;;  %v2642_v42 = vmul.f32 %v7102_v11, %v8458_v48  ;;  %v8483_v47 = vld [vmem:[#allocation61_spill] sm:$0xff] }
 0x4aa   :  { %v2815_v2 = vadd.f32 %v2799_v24, %v2735_v31  ;;  %v2797_v18 = vmul.f32 %v2778_v36, %v8477_v61  ;;  %v2798_v46 = vmul.f32 %v2774_v15, %v8478_v16  ;;  %v2747_v25 = vpop.permute.xlu1 %2746  ;;  %2996 = vadd.xlane.f32.xlu1 %v2995_v1  ;;  %v2721_v45 = vmul.f32 %v2699_v30, %v8473_v54 }
 0x4ab   :  { %v2657_v60 = vadd.f32 %v7097_v26, %v8482_v32  ;;  %v2736_v8 = vadd.f32 %v2720_v22, %v7013_v40  ;;  %v2723_v34 = vmul.f32 %v2707_v28, %v8475_v23  ;;  %v2722_v19 = vmul.f32 %v2695_v56, %v8474_v27  ;;  %v8484_v23 = vld [vmem:[#allocation60_spill] sm:$0xff] }
 0x4ac   :  { %v2813_v39 = vadd.f32 %v2797_v18, %v2733_v35  ;;  %v2814_v12 = vadd.f32 %v2798_v46, %v2734_v9  ;;  %2896 = vadd.xlane.f32.xlu0 %v2895_v10  ;;  %v2755_v17 = vpop.permute.xlu0 %2754  ;;  %v7227_v48 = vadd.f32 %v8483_v47, %v2812_v41  ;;  %v7237_v63 = vadd.f32 %v8483_v47, %v2815_v2  ;;  %v8485_v22 = vld [vmem:[#allocation64_spill] sm:$0xff]  ;;  %v2876_v2 = vld [vmem:[%s7903_s6] sm:$0xff]  ;;  %v2877_v18 = vld [vmem:[%s7903_s6 + $0x8] sm:$0xff] }
 0x4ad   :  { %v2783_v7 = vsel %vm1438_vm8, %v2747_v25, %v2755_v17  ;;  %v2658_v27 = vadd.f32 %v2642_v42, %v8484_v23  ;;  %v2737_v44 = vadd.f32 %v2721_v45, %v2657_v60  ;;  %v2739_v35 = vadd.f32 %v2723_v34, %v7019_v29  ;;  %v2878_v46 = vld [vmem:[%s7903_s6 + $0x10] sm:$0xff] }
 0x4ae   :  { %v2800_v54 = vmul.f32 %v2783_v7, %v8476_v53  ;;  %v2763_v11 = vpop.permute.xlu1 %2762  ;;  %v7231_v26 = vadd.f32 %v8483_v47, %v2813_v39  ;;  %v7234_v40 = vadd.f32 %v8483_v47, %v2814_v12  ;;  %v2879_v7 = vld [vmem:[%s7903_s6 + $0x18] sm:$0xff]  ;;  %s3885_s6 = sld [smem:[#allocation3 + $0x11]] }
 0x4af   :  { %v2779_v62 = vsel %vm1438_vm8, %v2755_v17, %v2763_v11  ;;  %v2738_v37 = vadd.f32 %v2722_v19, %v2658_v27 }
 0x4b0   :  { %v2816_v50 = vadd.f32 %v2800_v54, %v2736_v8  ;;  %v2801_v52 = vmul.f32 %v2779_v62, %v8477_v61  ;;  %v2771_v53 = vpop.permute.xlu0 %2770  ;;  %v2898_v59 = vadd.f32 %v7231_v26, %v7227_v48  ;;  %v2998_v55 = vadd.f32 %v7237_v63, %v7234_v40 }
 0x4b1   :  { %v2775_v13 = vsel %vm1438_vm8, %v2763_v11, %v2771_v53  ;;  %v2787_v33 = vsel %vm1438_vm8, %v2771_v53, %v2747_v25 }
 0x4b2   :  { %v2817_v38 = vadd.f32 %v2801_v52, %v2737_v44  ;;  %v2802_v51 = vmul.f32 %v2775_v13, %v8478_v16  ;;  %v2803_v61 = vmul.f32 %v2787_v33, %v8479_v6  ;;  %2899 = vadd.xlane.f32.xlu0 %v2898_v59  ;;  %2999 = vadd.xlane.f32.xlu1 %v2998_v55 }
 0x4b3   :  { %v7255_v43 = vadd.f32 %v8485_v22, %v2816_v50 }
 0x4b4   :  { %v2818_v9 = vadd.f32 %v2802_v51, %v2738_v37  ;;  %v2819_v31 = vadd.f32 %v2803_v61, %v2739_v35  ;;  %v7258_v29 = vadd.f32 %v8485_v22, %v2817_v38 }
 0x4b6   :  { %v2901_v28 = vadd.f32 %v7258_v29, %v7255_v43  ;;  %v7263_v30 = vadd.f32 %v8485_v22, %v2818_v9  ;;  %v7266_v16 = vadd.f32 %v8485_v22, %v2819_v31 }
 0x4b8   :  { %2902 = vadd.xlane.f32.xlu0 %v2901_v28  ;;  %v3001_v6 = vadd.f32 %v7266_v16, %v7263_v30 }
 0x4ba   :  { %3002 = vadd.xlane.f32.xlu1 %v3001_v6 }
 0x532   :  { %v2894_v57 = vpop.xlane.xlu1 %2893 }
 0x533   :  { %v2905_v15 = vmul.f32 0.00390625, %v2894_v57 }
 0x535   :  { %v2994_v24 = vpop.xlane.xlu0 %2993  ;;  %v2909_v8 = vmul.f32 %v2905_v15, %v2876_v2 }
 0x536   :  { %v3004_v42 = vmul.f32 0.00390625, %v2994_v24 }
 0x537   :  { %v2997_v56 = vpop.xlane.xlu1 %2996  ;;  %v2914_v54 = vsel %vm2913_vm9, %v2909_v8, 0.0 }
 0x538   :  { %v3005_v36 = vmul.f32 0.00390625, %v2997_v56  ;;  %v3008_v17 = vmul.f32 %v3004_v42, %v2876_v2  ;;  %v2880_v2 = vld [vmem:[%s7904_s7] sm:$0xff] }
 0x539   :  { %v2897_v1 = vpop.xlane.xlu0 %2896 }
 0x53a   :  { %v2906_v41 = vmul.f32 0.00390625, %v2897_v1  ;;  %v3009_v39 = vmul.f32 %v3005_v36, %v2877_v18  ;;  %v3012_v50 = vsel %vm2913_vm9, %v3008_v17, 0.0  ;;  %v2881_v36 = vld [vmem:[%s7904_s7 + $0x8] sm:$0xff] }
 0x53c   :  { %v2910_v45 = vmul.f32 %v2906_v41, %v2877_v18  ;;  %v3013_v11 = vsel %vm2913_vm9, %v3009_v39, 0.0  ;;  %v2882_v39 = vld [vmem:[%s7904_s7 + $0x10] sm:$0xff] }
 0x53d   :  { %v3014_v55 = vadd.f32 %v3013_v11, %v3012_v50 }
 0x53e   :  { %v2915_v34 = vsel %vm2913_vm9, %v2910_v45, 0.0 }
 0x53f   :  { %v3000_v25 = vpop.xlane.xlu1 %2999  ;;  %v2900_v10 = vpop.xlane.xlu0 %2899  ;;  %v2916_v44 = vadd.f32 %v2915_v34, %v2914_v54 }
 0x540   :  { %v3006_v32 = vmul.f32 0.00390625, %v3000_v25  ;;  %v2907_v60 = vmul.f32 0.00390625, %v2900_v10 }
 0x542   :  { %v2911_v12 = vmul.f32 %v2907_v60, %v2878_v46  ;;  %v3010_v19 = vmul.f32 %v3006_v32, %v2878_v46 }
 0x544   :  { %v2917_v23 = vsel %vm2913_vm9, %v2911_v12, 0.0  ;;  %v3015_v52 = vsel %vm2913_vm9, %v3010_v19, 0.0 }
 0x545   :  { %v2903_v47 = vpop.xlane.xlu0 %2902  ;;  %v2918_v35 = vadd.f32 %v2917_v23, %v2916_v44  ;;  %v3016_v33 = vadd.f32 %v3015_v52, %v3014_v55 }
 0x546   :  { %v2908_v27 = vmul.f32 0.00390625, %v2903_v47 }
 0x547   :  { %v3003_v62 = vpop.xlane.xlu1 %3002 }
 0x548   :  { %v2912_v53 = vmul.f32 %v2908_v27, %v2879_v7  ;;  %v3007_v59 = vmul.f32 0.00390625, %v3003_v62 }
 0x54a   :  { %v2919_v37 = vsel %vm2913_vm9, %v2912_v53, 0.0  ;;  %v3011_v13 = vmul.f32 %v3007_v59, %v2879_v7  ;;  %v2883_v7 = vld [vmem:[%s7904_s7 + $0x18] sm:$0xff]  ;;  %s3191_s7 = sld [smem:[#allocation3]] }
 0x54b   :  { %v2920_v38 = vadd.f32 %v2919_v37, %v2918_v35 }
 0x54c   :  { %v3017_v51 = vsel %vm2913_vm9, %v3011_v13, 0.0 }
 0x54d   :  { %v2921_v61 = vrot.slane %v2920_v38, 4  ;;  %v3018_v9 = vadd.f32 %v3017_v51, %v3016_v33 }
 0x54f   :  { %v2922_v31 = vadd.f32 %v2921_v61, %v2920_v38  ;;  %v3019_v22 = vrot.slane %v3018_v9, 4 }
 0x551   :  { %v2923_v28 = vrot.slane %v2922_v31, 2  ;;  %v3020_v6 = vadd.f32 %v3019_v22, %v3018_v9 }
 0x553   :  { %v2924_v24 = vadd.f32 %v2923_v28, %v2922_v31  ;;  %v3021_v57 = vrot.slane %v3020_v6, 2 }
 0x555   :  { %v2925_v1 = vrot.slane %v2924_v24, 1  ;;  %v3022_v56 = vadd.f32 %v3021_v57, %v3020_v6 }
 0x557   :  { %v2926_v41 = vadd.f32 %v2925_v1, %v2924_v24  ;;  %v3023_v15 = vrot.slane %v3022_v56, 1 }
 0x559   :  { %v3024_v18 = vadd.f32 %v3023_v15, %v3022_v56  ;;  %v2927_v46 = vmax.f32 %v2926_v41, 0.0 }
 0x55b   :  { %v2929_v25 = vmul.f32 %v2927_v46, %v2881_v36  ;;  %v2928_v10 = vmul.f32 %v2927_v46, %v2880_v2  ;;  %v3025_v42 = vmax.f32 %v3024_v18, 0.0  ;;  %v2930_v19 = vmul.f32 %v2927_v46, %v2882_v39 }
 0x55c   :  { %v2931_v23 = vmul.f32 %v2927_v46, %v2883_v7 }
 0x55d   :  { %v2935_v45 = vsel %vm2913_vm9, %v2929_v25, 0.0  ;;  %v2932_v32 = vsel %vm2913_vm9, %v2928_v10, 0.0  ;;  %v3027_v60 = vmul.f32 %v3025_v42, %v2881_v36  ;;  %v3026_v8 = vmul.f32 %v3025_v42, %v2880_v2 }
 0x55e   :  { %2936 = vadd.xlane.f32.xlu1 %v2935_v45  ;;  %2933 = vadd.xlane.f32.xlu0 %v2932_v32  ;;  %v3028_v34 = vmul.f32 %v3025_v42, %v2882_v39  ;;  %v2938_v54 = vsel %vm2913_vm9, %v2930_v19, 0.0  ;;  %v3029_v11 = vmul.f32 %v3025_v42, %v2883_v7  ;;  %v2941_v44 = vsel %vm2913_vm9, %v2931_v23, 0.0 }
 0x55f   :  { %v3033_v12 = vsel %vm2913_vm9, %v3027_v60, 0.0  ;;  %v3030_v17 = vsel %vm2913_vm9, %v3026_v8, 0.0 }
 0x560   :  { %v3036_v47 = vsel %vm2913_vm9, %v3028_v34, 0.0  ;;  %v3039_v27 = vsel %vm2913_vm9, %v3029_v11, 0.0 }
 0x562   :  { %3034 = vadd.xlane.f32.xlu1 %v3033_v12  ;;  %3031 = vadd.xlane.f32.xlu0 %v3030_v17 }
 0x566   :  { %3037 = vadd.xlane.f32.xlu1 %v3036_v47  ;;  %2939 = vadd.xlane.f32.xlu0 %v2938_v54 }
 0x56a   :  { %3040 = vadd.xlane.f32.xlu1 %v3039_v27  ;;  %2942 = vadd.xlane.f32.xlu0 %v2941_v44 }
 0x5eb   :  { %v2937_v62 = vpop.xlane.xlu1 %2936  ;;  %v2934_v50 = vpop.xlane.xlu0 %2933 }
 0x5ec   :  { %v2945_v52 = vsub.f32 0.0, %v2937_v62  ;;  %v2944_v53 = vsub.f32 0.0, %v2934_v50 }
 0x5ee   :  { %v2950_v59 = vmul.f32 1.442695, %v2945_v52  ;;  %v2948_v55 = vmul.f32 1.442695, %v2944_v53 }
 0x5ef   :  { %v3035_v35 = vpop.xlane.xlu1 %3034  ;;  %v3032_v37 = vpop.xlane.xlu0 %3031 }
 0x5f0   :  { %3935 = vpow2.f32 %v2950_v59  ;;  %v3043_v13 = vsub.f32 0.0, %v3035_v35  ;;  %v3042_v33 = vsub.f32 0.0, %v3032_v37 }
 0x5f1   :  { %3937 = vpow2.f32 %v2948_v55 }
 0x5f2   :  { %v3048_v38 = vmul.f32 1.442695, %v3043_v13  ;;  %v3046_v51 = vmul.f32 1.442695, %v3042_v33 }
 0x5f3   :  { %v3038_v61 = vpop.xlane.xlu1 %3037  ;;  %v2940_v9 = vpop.xlane.xlu0 %2939 }
 0x5f4   :  { %3939 = vpow2.f32 %v3048_v38  ;;  %v3044_v31 = vsub.f32 0.0, %v3038_v61  ;;  %v2946_v22 = vsub.f32 0.0, %v2940_v9 }
 0x5f5   :  { %3941 = vpow2.f32 %v3046_v51 }
 0x5f6   :  { %v3050_v28 = vmul.f32 1.442695, %v3044_v31  ;;  %v2952_v6 = vmul.f32 1.442695, %v2946_v22 }
 0x5f7   :  { %v3041_v24 = vpop.xlane.xlu1 %3040  ;;  %v2943_v57 = vpop.xlane.xlu0 %2942 }
 0x5f8   :  { %3943 = vpow2.f32 %v3050_v28  ;;  %v3045_v1 = vsub.f32 0.0, %v3041_v24  ;;  %v2947_v56 = vsub.f32 0.0, %v2943_v57 }
 0x5f9   :  { %3945 = vpow2.f32 %v2952_v6 }
 0x5fa   :  { %v3936_v41 = vpop.eup %3935  ;;  %v3052_v15 = vmul.f32 1.442695, %v3045_v1  ;;  %v2954_v18 = vmul.f32 1.442695, %v2947_v56 }
 0x5fb   :  { %v3938_v36 = vpop.eup %3937  ;;  %v2957_v2 = vadd.f32 1.0, %v3936_v41 }
 0x5fc   :  { %v2956_v46 = vadd.f32 1.0, %v3938_v36  ;;  %3947 = vpow2.f32 %v3052_v15 }
 0x5fd   :  { %3949 = vrcp.f32 %v2957_v2 }
 0x5fe   :  { %v3940_v25 = vpop.eup %3939  ;;  %3951 = vpow2.f32 %v2954_v18 }
 0x5ff   :  { %v3942_v10 = vpop.eup %3941  ;;  %v3055_v42 = vadd.f32 1.0, %v3940_v25  ;;  %3953 = vrcp.f32 %v2956_v46 }
 0x600   :  { %v3054_v45 = vadd.f32 1.0, %v3942_v10 }
 0x601   :  { %3955 = vrcp.f32 %v3055_v42 }
 0x602   :  { %v3944_v32 = vpop.eup %3943  ;;  %3957 = vrcp.f32 %v3054_v45 }
 0x603   :  { %v3946_v60 = vpop.eup %3945  ;;  %v3056_v8 = vadd.f32 1.0, %v3944_v32 }
 0x604   :  { %v2958_v39 = vadd.f32 1.0, %v3946_v60 }
 0x605   :  { %3959 = vrcp.f32 %v3056_v8 }
 0x606   :  { %v3948_v12 = vpop.eup %3947  ;;  %3961 = vrcp.f32 %v2958_v39 }
 0x607   :  { %v3057_v17 = vadd.f32 1.0, %v3948_v12  ;;  %v3950_v34 = vpop.eup %3949 }
 0x608   :  { %v3952_v19 = vpop.eup %3951  ;;  %v7323_v52 = vmul.f32 %v3950_v34, %v7174_v0  ;;  %v7326_v53 = vmul.f32 %v3950_v34, %v7177_v4 }
 0x609   :  { %3963 = vrcp.f32 %v3057_v17  ;;  %v3954_v7 = vpop.eup %3953  ;;  %v2959_v47 = vadd.f32 1.0, %v3952_v19 }
 0x60a   :  { %v7329_v59 = vmul.f32 %v3954_v7, %v7149_v21 }
 0x60b   :  { %v3956_v54 = vpop.eup %3955  ;;  %3965 = vrcp.f32 %v2959_v47 }
 0x60c   :  { %v3958_v11 = vpop.eup %3957  ;;  %v7311_v23 = vmul.f32 %v3956_v54, %v7183_v20  ;;  %v7314_v27 = vmul.f32 %v3956_v54, %v7186_v14  ;;  %v7332_v20 = vmul.f32 %v3954_v7, %v7152_v49  ;;  %v3098_v35 = vmax.f32 %v7329_v59, %v7323_v52 }
 0x60d   :  { %v7317_v44 = vmul.f32 %v3958_v11, %v7165_v58  ;;  %v7320_v62 = vmul.f32 %v3958_v11, %v7168_v5  ;;  %v3134_v61 = vadd.f32 %v7323_v52, %v7329_v59 }
 0x60e   :  { %8486 = vst [vmem:[#allocation62_spill] sm:$0xff] %v7311_v23  ;;  %8487 = vst [vmem:[#allocation71_spill] sm:$0xff] %v7314_v27  ;;  %v3107_v37 = vmax.f32 %v7332_v20, %v7326_v53  ;;  %v3143_v9 = vadd.f32 %v7326_v53, %v7332_v20 }
 0x60f   :  { %8488 = vst [vmem:[#allocation66_spill] sm:$0xff] %v7317_v44  ;;  %8489 = vst [vmem:[#allocation26_spill] sm:$0xff] %v7320_v62  ;;  %v3960_v50 = vpop.eup %3959  ;;  %v3116_v0 = vmax.f32 %v7317_v44, %v7311_v23  ;;  %v3125_v4 = vmax.f32 %v7320_v62, %v7314_v27  ;;  %v3152_v49 = vadd.f32 %v7311_v23, %v7317_v44 }
 0x610   :  { %v3962_v14 = vpop.eup %3961  ;;  %v7335_v58 = vmul.f32 %v3960_v50, %v7234_v40  ;;  %v7338_v5 = vmul.f32 %v3960_v50, %v7237_v63  ;;  %v3161_v40 = vadd.f32 %v7314_v27, %v7320_v62 }
 0x611   :  { %v7345_v55 = vmul.f32 %v3962_v14, %v7227_v48  ;;  %v7348_v21 = vmul.f32 %v3962_v14, %v7231_v26 }
 0x612   :  { %8490 = vst [vmem:[#allocation83_spill] sm:$0xff] %v7335_v58  ;;  %8491 = vst [vmem:[#allocation69_spill] sm:$0xff] %v7338_v5  ;;  %v3117_v13 = vmax.f32 %v3116_v0, %v7335_v58  ;;  %v3126_v48 = vmax.f32 %v3125_v4, %v7338_v5  ;;  %v3153_v26 = vadd.f32 %v3152_v49, %v7335_v58 }
 0x613   :  { %v3964_v63 = vpop.eup %3963  ;;  %v3162_v33 = vadd.f32 %v3161_v40, %v7338_v5  ;;  %v3099_v31 = vmax.f32 %v3098_v35, %v7345_v55  ;;  %v3108_v22 = vmax.f32 %v3107_v37, %v7348_v21  ;;  %v3135_v57 = vadd.f32 %v3134_v61, %v7345_v55 }
 0x614   :  { %v7363_v38 = vmul.f32 %v3964_v63, %v7263_v30  ;;  %v7366_v51 = vmul.f32 %v3964_v63, %v7266_v16  ;;  %v3144_v1 = vadd.f32 %v3143_v9, %v7348_v21 }
 0x615   :  { %v3966_v28 = vpop.eup %3965 }
 0x616   :  { %8492 = vst [vmem:[#allocation47_spill] sm:$0xff] %v7363_v38  ;;  %8493 = vst [vmem:[#allocation48_spill] sm:$0xff] %v7366_v51  ;;  %v3118_v6 = vmax.f32 %v3117_v13, %v7363_v38  ;;  %v3127_v24 = vmax.f32 %v3126_v48, %v7366_v51  ;;  %v3154_v30 = vadd.f32 %v3153_v26, %v7363_v38 }
 0x617   :  { %v3163_v16 = vadd.f32 %v3162_v33, %v7366_v51  ;;  %v7381_v56 = vmul.f32 %v3966_v28, %v7255_v43  ;;  %v7384_v41 = vmul.f32 %v3966_v28, %v7258_v29 }
 0x618   :  { %v3119_v15 = vrot.slane %v3118_v6, 4  ;;  %v3128_v36 = vrot.slane %v3127_v24, 4  ;;  %v3155_v2 = vrot.slane %v3154_v30, 4 }
 0x619   :  { %8494 = vst [vmem:[#allocation46_spill] sm:$0xff] %v7384_v41  ;;  %v3164_v18 = vrot.slane %v3163_v16, 4  ;;  %v3100_v46 = vmax.f32 %v3099_v31, %v7381_v56  ;;  %v3109_v25 = vmax.f32 %v3108_v22, %v7384_v41  ;;  %v3136_v10 = vadd.f32 %v3135_v57, %v7381_v56 }
 0x61a   :  { %v3145_v42 = vadd.f32 %v3144_v1, %v7384_v41  ;;  %v3120_v45 = vmax.f32 %v3118_v6, %v3119_v15  ;;  %v3129_v32 = vmax.f32 %v3127_v24, %v3128_v36  ;;  %v3156_v60 = vadd.f32 %v3155_v2, %v3154_v30 }
 0x61b   :  { %v3165_v43 = vadd.f32 %v3164_v18, %v3163_v16  ;;  %v3101_v8 = vrot.slane %v3100_v46, 4  ;;  %v3110_v39 = vrot.slane %v3109_v25, 4  ;;  %v3137_v29 = vrot.slane %v3136_v10, 4 }
 0x61c   :  { %v3146_v12 = vrot.slane %v3145_v42, 4  ;;  %v3121_v17 = vrot.slane %v3120_v45, 2  ;;  %v3130_v34 = vrot.slane %v3129_v32, 2  ;;  %v3157_v19 = vrot.slane %v3156_v60, 2 }
 0x61d   :  { %v3166_v7 = vrot.slane %v3165_v43, 2  ;;  %v3102_v47 = vmax.f32 %v3100_v46, %v3101_v8  ;;  %v3111_v54 = vmax.f32 %v3109_v25, %v3110_v39  ;;  %v3138_v11 = vadd.f32 %v3137_v29, %v3136_v10 }
 0x61e   :  { %v3147_v50 = vadd.f32 %v3146_v12, %v3145_v42  ;;  %v3158_v14 = vadd.f32 %v3157_v19, %v3156_v60  ;;  %v3122_v35 = vmax.f32 %v3120_v45, %v3121_v17  ;;  %v3131_v37 = vmax.f32 %v3129_v32, %v3130_v34 }
 0x61f   :  { %v3167_v0 = vadd.f32 %v3166_v7, %v3165_v43  ;;  %v3103_v4 = vrot.slane %v3102_v47, 2  ;;  %v3112_v49 = vrot.slane %v3111_v54, 2  ;;  %v3139_v40 = vrot.slane %v3138_v11, 2 }
 0x620   :  { %v3148_v63 = vrot.slane %v3147_v50, 2  ;;  %v3159_v13 = vrot.slane %v3158_v14, 1  ;;  %v3123_v16 = vrot.slane %v3122_v35, 1  ;;  %v3132_v57 = vrot.slane %v3131_v37, 1 }
 0x621   :  { %v3168_v48 = vrot.slane %v3167_v0, 1  ;;  %v3104_v26 = vmax.f32 %v3102_v47, %v3103_v4  ;;  %v3113_v33 = vmax.f32 %v3111_v54, %v3112_v49  ;;  %v3140_v61 = vadd.f32 %v3139_v40, %v3138_v11 }
 0x622   :  { %v3149_v9 = vadd.f32 %v3148_v63, %v3147_v50  ;;  %v3160_v31 = vadd.f32 %v3159_v13, %v3158_v14  ;;  %v3192_v18 = vstv %s3191_s7  ;;  %v3198_v46 = vstv %s3865_s13 }
 0x623   :  { %v3169_v22 = vadd.f32 %v3168_v48, %v3167_v0  ;;  %v3105_v28 = vrot.slane %v3104_v26, 1  ;;  %v3114_v6 = vrot.slane %v3113_v33, 1  ;;  %v3141_v24 = vrot.slane %v3140_v61, 1 }
 0x624   :  { %v3150_v30 = vrot.slane %v3149_v9, 1  ;;  %v7394_v25 = vmul.f32 0.03125, %v3160_v31  ;;  %v7402_v32 = vmax.f32 %v3122_v35, %v3123_v16  ;;  %v7404_v60 = vmax.f32 %v3131_v37, %v3132_v57 }
 0x625   :  { %v7390_v1 = vmax.f32 %v3104_v26, %v3105_v28  ;;  %v7392_v15 = vmax.f32 %v3113_v33, %v3114_v6  ;;  %v3142_v36 = vadd.f32 %v3141_v24, %v3140_v61  ;;  %v7396_v10 = vmul.f32 0.03125, %v3169_v22 }
 0x626   :  { %v3151_v2 = vadd.f32 %v3150_v30, %v3149_v9  ;;  %v3201_v34 = vmul.f32 %v3198_v46, %v7394_v25  ;;  %v3256_v7 = vstv %s3867_s14  ;;  %v3195_v47 = vmul.f32 %v3192_v18, %v7402_v32 }
 0x627   :  { %v7398_v42 = vmul.f32 0.03125, %v3142_v36  ;;  %v3194_v43 = vmul.f32 %v3192_v18, %v7392_v15  ;;  %v3193_v39 = vmul.f32 %v3192_v18, %v7390_v1  ;;  %v3202_v19 = vmul.f32 %v3198_v46, %v7396_v10 }
 0x628   :  { %v7400_v45 = vmul.f32 0.03125, %v3151_v2  ;;  %v3196_v54 = vmul.f32 %v3192_v18, %v7404_v60  ;;  %v3250_v11 = vstv %s3866_s15  ;;  %v3205_v50 = vadd.f32 %v3201_v34, %v3195_v47 }
 0x629   :  { %v3199_v29 = vmul.f32 %v3198_v46, %v7398_v42  ;;  %v3257_v0 = vmul.f32 %v3256_v7, %v7398_v42  ;;  %v3251_v49 = vmul.f32 %v3250_v11, %v7390_v1  ;;  %v3252_v40 = vmul.f32 %v3250_v11, %v7392_v15 }
 0x62a   :  { %v3200_v8 = vmul.f32 %v3198_v46, %v7400_v45  ;;  %v3206_v14 = vadd.f32 %v3202_v19, %v3196_v54  ;;  %v3258_v4 = vmul.f32 %v3256_v7, %v7400_v45  ;;  %v3259_v37 = vmul.f32 %v3256_v7, %v7394_v25 }
 0x62b   :  { %v3203_v17 = vadd.f32 %v3199_v29, %v3193_v39  ;;  %v3261_v63 = vadd.f32 %v3257_v0, %v3251_v49  ;;  %v3260_v13 = vmul.f32 %v3256_v7, %v7396_v10  ;;  %v3314_v48 = vstv %s3870_s4 }
 0x62c   :  { %v3204_v12 = vadd.f32 %v3200_v8, %v3194_v43  ;;  %v3262_v35 = vadd.f32 %v3258_v4, %v3252_v40  ;;  %v3253_v26 = vmul.f32 %v3250_v11, %v7402_v32  ;;  %v3254_v33 = vmul.f32 %v3250_v11, %v7404_v60 }
 0x62d   :  { %3207 = vrot.lane.b32.xlu0 %v3203_v17, %s4015_s21  ;;  %v3308_v61 = vstv %s3869_s16  ;;  %v3315_v22 = vmul.f32 %v3314_v48, %v7398_v42  ;;  %v3316_v28 = vmul.f32 %v3314_v48, %v7400_v45  ;;  %v3317_v30 = vmul.f32 %v3314_v48, %v7394_v25 }
 0x62e   :  { %3209 = vrot.lane.b32.xlu1 %v3204_v12, %s4015_s21  ;;  %v3263_v9 = vadd.f32 %v3259_v37, %v3253_v26  ;;  %v3264_v31 = vadd.f32 %v3260_v13, %v3254_v33  ;;  %v3309_v6 = vmul.f32 %v3308_v61, %v7390_v1  ;;  %v3310_v24 = vmul.f32 %v3308_v61, %v7392_v15 }
 0x62f   :  { %v3366_v16 = vstv %s3872_s17  ;;  %v3318_v2 = vmul.f32 %v3314_v48, %v7396_v10  ;;  %v3372_v18 = vstv %s3873_s3  ;;  %v3311_v46 = vmul.f32 %v3308_v61, %v7402_v32 }
 0x630   :  { %v3319_v57 = vadd.f32 %v3315_v22, %v3309_v6  ;;  %v3320_v36 = vadd.f32 %v3316_v28, %v3310_v24  ;;  %v3176_v43 = vstv %s3863_s5  ;;  %v3182_v8 = vstv %s3864_s8 }
 0x631   :  { %3213 = vrot.lane.b32.xlu0 %v3206_v14, %s4015_s21  ;;  %v3312_v39 = vmul.f32 %v3308_v61, %v7404_v60  ;;  %v3321_v29 = vadd.f32 %v3317_v30, %v3311_v46  ;;  %v3367_v12 = vmul.f32 %v3366_v16, %v7390_v1  ;;  %v3373_v17 = vmul.f32 %v3372_v18, %v7398_v42 }
 0x632   :  { %3211 = vrot.lane.b32.xlu1 %v3205_v50, %s4015_s21  ;;  %s3876_s21 = sld [smem:[#allocation3 + $0xb]]  ;;  %v3374_v19 = vmul.f32 %v3372_v18, %v7400_v45  ;;  %v3178_v7 = vmul.f32 %v3176_v43, %v7392_v15  ;;  %v3184_v47 = vmul.f32 %v3182_v8, %v7400_v45  ;;  %v3368_v54 = vmul.f32 %v3366_v16, %v7392_v15 }
 0x633   :  { %v3322_v34 = vadd.f32 %v3318_v2, %v3312_v39  ;;  %v3179_v11 = vmul.f32 %v3176_v43, %v7402_v32  ;;  %v3185_v50 = vmul.f32 %v3182_v8, %v7394_v25  ;;  %v3180_v14 = vmul.f32 %v3176_v43, %v7404_v60 }
 0x634   :  { %v7451_v0 = vadd.f32 %v3184_v47, %v3178_v7  ;;  %v3183_v4 = vmul.f32 %v3182_v8, %v7398_v42  ;;  %v3186_v49 = vmul.f32 %v3182_v8, %v7396_v10  ;;  %v3375_v40 = vmul.f32 %v3372_v18, %v7394_v25 }
 0x635   :  { %3267 = vrot.lane.b32.xlu0 %v3262_v35, %s4016_s2  ;;  %v3177_v35 = vmul.f32 %v3176_v43, %v7390_v1  ;;  %v3377_v37 = vadd.f32 %v3373_v17, %v3367_v12  ;;  %v3378_v13 = vadd.f32 %v3374_v19, %v3368_v54  ;;  %v3376_v48 = vmul.f32 %v3372_v18, %v7396_v10 }
 0x636   :  { %3265 = vrot.lane.b32.xlu1 %v3261_v63, %s4016_s2  ;;  %v7456_v63 = vadd.f32 %v3185_v50, %v3179_v11  ;;  %v7460_v26 = vadd.f32 %v3186_v49, %v3180_v14 }
 0x637   :  { %v7462_v61 = vadd.f32 %v3183_v4, %v3177_v35  ;;  %v3546_v4 = vstv %s3882_s19 }
 0x638   :  { %v3430_v33 = vstv %s3876_s21 }
 0x639   :  { %3271 = vrot.lane.b32.xlu0 %v3264_v31, %s4016_s2  ;;  %v3370_v31 = vmul.f32 %v3366_v16, %v7404_v60  ;;  %v3431_v24 = vmul.f32 %v3430_v33, %v7398_v42  ;;  %v3432_v30 = vmul.f32 %v3430_v33, %v7400_v45  ;;  %v3434_v46 = vmul.f32 %v3430_v33, %v7396_v10 }
 0x63a   :  { %3269 = vrot.lane.b32.xlu1 %v3263_v9, %s4016_s2  ;;  %s3875_s2 = sld [smem:[#allocation3 + $0xa]]  ;;  %v3369_v9 = vmul.f32 %v3366_v16, %v7402_v32  ;;  %v3433_v16 = vmul.f32 %v3430_v33, %v7394_v25  ;;  %v3548_v33 = vmul.f32 %v3546_v4, %v7400_v45 }
 0x63b   :  { %v3380_v6 = vadd.f32 %v3376_v48, %v3370_v31  ;;  %v3547_v48 = vmul.f32 %v3546_v4, %v7398_v42 }
 0x63c   :  { %v3379_v28 = vadd.f32 %v3375_v40, %v3369_v9 }
 0x63d   :  { %3325 = vrot.lane.b32.xlu0 %v3320_v36, %s4017_s22 }
 0x63e   :  { %3323 = vrot.lane.b32.xlu1 %v3319_v57, %s4017_s22 }
 0x640   :  { %v3424_v22 = vstv %s3875_s2 }
 0x641   :  { %3329 = vrot.lane.b32.xlu0 %v3322_v34, %s4017_s22  ;;  %v3425_v57 = vmul.f32 %v3424_v22, %v7390_v1  ;;  %v3426_v36 = vmul.f32 %v3424_v22, %v7392_v15  ;;  %v3427_v8 = vmul.f32 %v3424_v22, %v7402_v32  ;;  %v3428_v39 = vmul.f32 %v3424_v22, %v7404_v60 }
 0x642   :  { %3327 = vrot.lane.b32.xlu1 %v3321_v29, %s4017_s22  ;;  %s3879_s22 = sld [smem:[#allocation3 + $0xd]]  ;;  %v3482_v29 = vstv %s3878_s18 }
 0x643   :  { %v3435_v2 = vadd.f32 %v3431_v24, %v3425_v57  ;;  %v3436_v18 = vadd.f32 %v3432_v30, %v3426_v36  ;;  %v3437_v12 = vadd.f32 %v3433_v16, %v3427_v8  ;;  %v3438_v17 = vadd.f32 %v3434_v46, %v3428_v39 }
 0x644   :  { %v3483_v7 = vmul.f32 %v3482_v29, %v7390_v1  ;;  %v3484_v47 = vmul.f32 %v3482_v29, %v7392_v15  ;;  %v3485_v49 = vmul.f32 %v3482_v29, %v7402_v32  ;;  %v3486_v40 = vmul.f32 %v3482_v29, %v7404_v60 }
 0x645   :  { %3383 = vrot.lane.b32.xlu0 %v3378_v13, %s4018_s23  ;;  %v3550_v24 = vmul.f32 %v3546_v4, %v7396_v10  ;;  %v3604_v30 = vstv %s3885_s6 }
 0x646   :  { %3381 = vrot.lane.b32.xlu1 %v3377_v37, %s4018_s23  ;;  %v3605_v46 = vmul.f32 %v3604_v30, %v7398_v42 }
 0x648   :  { %v3488_v43 = vstv %s3879_s22 }
 0x649   :  { %3387 = vrot.lane.b32.xlu0 %v3380_v6, %s4018_s23  ;;  %v3489_v34 = vmul.f32 %v3488_v43, %v7398_v42  ;;  %v3490_v19 = vmul.f32 %v3488_v43, %v7400_v45  ;;  %v3491_v50 = vmul.f32 %v3488_v43, %v7394_v25  ;;  %v3492_v14 = vmul.f32 %v3488_v43, %v7396_v10 }
 0x64a   :  { %3385 = vrot.lane.b32.xlu1 %v3379_v28, %s4018_s23  ;;  %s3881_s23 = sld [smem:[#allocation3 + $0xe]]  ;;  %v3549_v6 = vmul.f32 %v3546_v4, %v7394_v25  ;;  %v3606_v43 = vmul.f32 %v3604_v30, %v7400_v45 }
 0x64b   :  { %v3493_v54 = vadd.f32 %v3489_v34, %v3483_v7  ;;  %v3494_v11 = vadd.f32 %v3490_v19, %v3484_v47  ;;  %v3495_v37 = vadd.f32 %v3491_v50, %v3485_v49  ;;  %v3496_v13 = vadd.f32 %v3492_v14, %v3486_v40 }
 0x64c   :  { %v3608_v34 = vmul.f32 %v3604_v30, %v7396_v10 }
 0x64d   :  { %3441 = vrot.lane.b32.xlu0 %v3436_v18, %s4019_s24 }
 0x64e   :  { %3439 = vrot.lane.b32.xlu1 %v3435_v2, %s4019_s24 }
 0x650   :  { %v3540_v35 = vstv %s3881_s23 }
 0x651   :  { %3445 = vrot.lane.b32.xlu0 %v3438_v17, %s4019_s24  ;;  %v3541_v9 = vmul.f32 %v3540_v35, %v7390_v1  ;;  %v3542_v31 = vmul.f32 %v3540_v35, %v7392_v15  ;;  %v3543_v57 = vmul.f32 %v3540_v35, %v7402_v32  ;;  %v3544_v36 = vmul.f32 %v3540_v35, %v7404_v60  ;;  %v3219_v35 = vld [vmem:[%s7898_s1] sm:$0xf] }
 0x652   :  { %3443 = vrot.lane.b32.xlu1 %v3437_v12, %s4019_s24  ;;  %s3884_s24 = sld [smem:[#allocation3 + $0x10]]  ;;  %v3607_v17 = vmul.f32 %v3604_v30, %v7394_v25 }
 0x653   :  { %v3551_v22 = vadd.f32 %v3547_v48, %v3541_v9  ;;  %v3552_v28 = vadd.f32 %v3548_v33, %v3542_v31  ;;  %v3553_v18 = vadd.f32 %v3549_v6, %v3543_v57  ;;  %v3554_v16 = vadd.f32 %v3550_v24, %v3544_v36  ;;  %v7547_v33 = vld [vmem:[%s7898_s1 + $0x8] sm:$0xf]  ;;  %v7554_v6 = vld [vmem:[%s7898_s1 + $0xc] sm:$0xf]  ;;  %v8497_v24 = vld [vmem:[#allocation77_spill] sm:$0xff] }
 0x654   :  { %v8495_v9 = vld [vmem:[#allocation75_spill] sm:$0xff]  ;;  %v3224_v30 = vrot.slane %v3219_v35, %v8497_v24  ;;  %v8498_v57 = vld [vmem:[#allocation78_spill] sm:$0xff] }
 0x655   :  { %3499 = vrot.lane.b32.xlu0 %v3494_v11, %s4020_s25  ;;  %v3228_v31 = vrot.slane %v3219_v35, %v8495_v9  ;;  %v3236_v36 = vrot.slane %v3219_v35, %v8498_v57 }
 0x656   :  { %3497 = vrot.lane.b32.xlu1 %v3493_v54, %s4020_s25 }
 0x658   :  { %v3598_v2 = vstv %s3884_s24 }
 0x659   :  { %3503 = vrot.lane.b32.xlu0 %v3496_v13, %s4020_s25  ;;  %v3599_v8 = vmul.f32 %v3598_v2, %v7390_v1  ;;  %v3600_v39 = vmul.f32 %v3598_v2, %v7392_v15  ;;  %v3601_v42 = vmul.f32 %v3598_v2, %v7402_v32  ;;  %v3602_v45 = vmul.f32 %v3598_v2, %v7404_v60 }
 0x65a   :  { %3501 = vrot.lane.b32.xlu1 %v3495_v37, %s4020_s25  ;;  %v7538_v37 = vld [vmem:[%s7898_s1 + $0x4] sm:$0xf] }
 0x65b   :  { %v3609_v29 = vadd.f32 %v3605_v46, %v3599_v8  ;;  %v3610_v12 = vadd.f32 %v3606_v43, %v3600_v39  ;;  %v3611_v19 = vadd.f32 %v3607_v17, %v3601_v42  ;;  %v3612_v7 = vadd.f32 %v3608_v34, %v3602_v45  ;;  %v7603_v45 = vld [vmem:[%s7898_s1 + $0x1c] sm:$0xf] }
 0x65c   :  { %v3286_v2 = vrot.slane %v7538_v37, %v8495_v9  ;;  %v3282_v46 = vrot.slane %v7538_v37, %v8497_v24  ;;  %v3294_v43 = vrot.slane %v7538_v37, %v8498_v57  ;;  %v3344_v8 = vrot.slane %v7547_v33, %v8495_v9 }
 0x65d   :  { %3557 = vrot.lane.b32.xlu0 %v3552_v28, %s4021_s26  ;;  %v3340_v17 = vrot.slane %v7547_v33, %v8497_v24  ;;  %v3352_v34 = vrot.slane %v7547_v33, %v8498_v57  ;;  %v3402_v42 = vrot.slane %v7554_v6, %v8495_v9 }
 0x65e   :  { %3555 = vrot.lane.b32.xlu1 %v3551_v22, %s4021_s26  ;;  %v8496_v22 = vld [vmem:[#allocation76_spill] sm:$0xff] }
 0x65f   :  { %v3232_v28 = vrot.slane %v3219_v35, %v8496_v22  ;;  %v3348_v39 = vrot.slane %v7547_v33, %v8496_v22 }
 0x661   :  { %3561 = vrot.lane.b32.xlu0 %v3554_v16, %s4021_s26  ;;  %v7565_v16 = vld [vmem:[%s7898_s1 + $0x14] sm:$0xf] }
 0x662   :  { %3559 = vrot.lane.b32.xlu1 %v3553_v18, %s4021_s26  ;;  %v3290_v18 = vrot.slane %v7538_v37, %v8496_v22  ;;  %v7628_v37 = vld [vmem:[%s7898_s1 + $0x20] sm:$0xf] }
 0x665   :  { %3615 = vrot.lane.b32.xlu0 %v3610_v12, %s4022_s27 }
 0x666   :  { %3613 = vrot.lane.b32.xlu1 %v3609_v29, %s4022_s27 }
 0x669   :  { %3619 = vrot.lane.b32.xlu0 %v3612_v7, %s4022_s27  ;;  %v3398_v7 = vrot.slane %v7554_v6, %v8497_v24 }
 0x66a   :  { %3617 = vrot.lane.b32.xlu1 %v3611_v19, %s4022_s27  ;;  %v7590_v19 = vld [vmem:[%s7898_s1 + $0x18] sm:$0xf] }
 0x69f   :  { %v3208_v15 = vpop.permute.xlu0 %3207 }
 0x6a0   :  { %v3210_v1 = vpop.permute.xlu1 %3209 }
 0x6a1   :  { %v3217_v51 = vsel %vm711_vm1, %v3208_v15, %v3210_v1 }
 0x6a2   :  { %v3242_v62 = vmul.f32 %v3228_v31, %v3217_v51 }
 0x6a3   :  { %v3214_v25 = vpop.permute.xlu0 %3213 }
 0x6a4   :  { %v3212_v47 = vpop.permute.xlu1 %3211  ;;  %v3218_v58 = vsel %vm711_vm1, %v3214_v25, %v3208_v15 }
 0x6a5   :  { %v3216_v38 = vsel %vm711_vm1, %v3210_v1, %v3212_v47  ;;  %v3215_v35 = vsel %vm711_vm1, %v3212_v47, %v3214_v25  ;;  %v3584_v25 = vrot.slane %v7603_v45, %v8498_v57 }
 0x6a6   :  { %v3243_v44 = vmul.f32 %v3232_v28, %v3216_v38  ;;  %v3241_v38 = vmul.f32 %v3224_v30, %v3218_v58  ;;  %v3244_v31 = vmul.f32 %v3236_v36, %v3215_v35 }
 0x6a7   :  { %v3268_v10 = vpop.permute.xlu0 %3267 }
 0x6a8   :  { %v3266_v54 = vpop.permute.xlu1 %3265 }
 0x6a9   :  { %v3275_v1 = vsel %vm814_vm2, %v3266_v54, %v3268_v10 }
 0x6aa   :  { %v3300_v15 = vmul.f32 %v3286_v2, %v3275_v1 }
 0x6ab   :  { %v3272_v50 = vpop.permute.xlu0 %3271 }
 0x6ac   :  { %v7518_v11 = vpop.permute.xlu1 %3269  ;;  %v3276_v47 = vsel %vm814_vm2, %v3272_v50, %v3266_v54 }
 0x6ad   :  { %v3274_v41 = vsel %vm814_vm2, %v3268_v10, %v7518_v11  ;;  %v3273_v28 = vsel %vm814_vm2, %v7518_v11, %v3272_v50  ;;  %v3246_v11 = vadd.f32 %v3242_v62, %v7451_v0  ;;  %v3247_v50 = vadd.f32 %v3243_v44, %v7456_v63 }
 0x6ae   :  { %v3301_v27 = vmul.f32 %v3290_v18, %v3274_v41  ;;  %v3299_v30 = vmul.f32 %v3282_v46, %v3276_v47  ;;  %v3302_v36 = vmul.f32 %v3294_v43, %v3273_v28  ;;  %v3245_v44 = vadd.f32 %v3241_v38, %v7462_v61 }
 0x6af   :  { %v7522_v32 = vpop.permute.xlu0 %3325  ;;  %v3248_v0 = vadd.f32 %v3244_v31, %v7460_v26 }
 0x6b0   :  { %v7520_v14 = vpop.permute.xlu1 %3323  ;;  %v3305_v46 = vadd.f32 %v3301_v27, %v3247_v50  ;;  %v3303_v35 = vadd.f32 %v3299_v30, %v3245_v44  ;;  %v8502_v30 = vrot.slane %v7565_v16, %v8495_v9 }
 0x6b1   :  { %v3333_v54 = vsel %vm918_vm3, %v7520_v14, %v7522_v32  ;;  %v3306_v61 = vadd.f32 %v3302_v36, %v3248_v0 }
 0x6b2   :  { %v3358_v2 = vmul.f32 %v3344_v8, %v3333_v54 }
 0x6b3   :  { %v7526_v4 = vpop.permute.xlu0 %3329 }
 0x6b4   :  { %v7524_v60 = vpop.permute.xlu1 %3327  ;;  %v3334_v58 = vsel %vm918_vm3, %v7526_v4, %v7520_v14 }
 0x6b5   :  { %v3332_v51 = vsel %vm918_vm3, %v7522_v32, %v7524_v60  ;;  %v3331_v41 = vsel %vm918_vm3, %v7524_v60, %v7526_v4  ;;  %v3357_v14 = vmul.f32 %v3340_v17, %v3334_v58  ;;  %v3304_v4 = vadd.f32 %v3300_v15, %v3246_v11 }
 0x6b6   :  { %v3359_v63 = vmul.f32 %v3348_v39, %v3332_v51  ;;  %v3360_v43 = vmul.f32 %v3352_v34, %v3331_v41  ;;  %v3634_v39 = vrot.slane %v7628_v37, %v8495_v9  ;;  %v8499_v34 = vrot.slane %v7554_v6, %v8496_v22 }
 0x6b7   :  { %v7530_v40 = vpop.permute.xlu0 %3383  ;;  %v8501_v58 = vrot.slane %v7554_v6, %v8498_v57 }
 0x6b8   :  { %v7528_v49 = vpop.permute.xlu1 %3381  ;;  %v3363_v17 = vadd.f32 %v3359_v63, %v3305_v46  ;;  %v3364_v38 = vadd.f32 %v3360_v43, %v3306_v61  ;;  %v8506_v43 = vrot.slane %v7590_v19, %v8495_v9  ;;  %v8509_v61 = vrot.slane %v7590_v19, %v8498_v57 }
 0x6b9   :  { %v3391_v32 = vsel %vm1022_vm4, %v7528_v49, %v7530_v40 }
 0x6ba   :  { %v3416_v1 = vmul.f32 %v3402_v42, %v3391_v32  ;;  %v8503_v32 = vrot.slane %v7565_v16, %v8496_v22 }
 0x6bb   :  { %v7542_v48 = vpop.permute.xlu0 %3387 }
 0x6bc   :  { %v7540_v13 = vpop.permute.xlu1 %3385  ;;  %v3392_v62 = vsel %vm1022_vm4, %v7542_v48, %v7528_v49  ;;  %v3362_v49 = vadd.f32 %v3358_v2, %v3304_v4 }
 0x6bd   :  { %v3390_v8 = vsel %vm1022_vm4, %v7530_v40, %v7540_v13  ;;  %v3415_v47 = vmul.f32 %v3398_v7, %v3392_v62  ;;  %v3389_v27 = vsel %vm1022_vm4, %v7540_v13, %v7542_v48  ;;  %v3361_v40 = vadd.f32 %v3357_v14, %v3303_v35 }
 0x6be   :  { %v3417_v42 = vmul.f32 %v8499_v34, %v3390_v8  ;;  %v8500_v13 = vrot.slane %v7565_v16, %v8497_v24  ;;  %v3420_v54 = vadd.f32 %v3416_v1, %v3362_v49  ;;  %v8505_v14 = vrot.slane %v7565_v16, %v8498_v57 }
 0x6bf   :  { %v7577_v12 = vpop.permute.xlu0 %3441  ;;  %v3419_v11 = vadd.f32 %v3415_v47, %v3361_v40  ;;  %v8508_v35 = vrot.slane %v7603_v45, %v8497_v24  ;;  %v8510_v34 = vrot.slane %v7603_v45, %v8495_v9 }
 0x6c0   :  { %v7575_v29 = vpop.permute.xlu1 %3439  ;;  %v3421_v2 = vadd.f32 %v3417_v42, %v3363_v17 }
 0x6c1   :  { %v3449_v26 = vsel %vm1126_vm5, %v7575_v29, %v7577_v12 }
 0x6c2   :  { %v3473_v48 = vmul.f32 %v8500_v13, %v3449_v26 }
 0x6c3   :  { %v7615_v33 = vpop.permute.xlu0 %3445 }
 0x6c4   :  { %v7613_v5 = vpop.permute.xlu1 %3443  ;;  %v3450_v50 = vsel %vm1126_vm5, %v7615_v33, %v7575_v29  ;;  %v8504_v29 = vrot.slane %v7590_v19, %v8497_v24  ;;  %v3477_v63 = vadd.f32 %v3473_v48, %v3419_v11 }
 0x6c5   :  { %v3448_v7 = vsel %vm1126_vm5, %v7577_v12, %v7613_v5  ;;  %v3447_v31 = vsel %vm1126_vm5, %v7613_v5, %v7615_v33  ;;  %v3418_v12 = vmul.f32 %v8501_v58, %v3389_v27  ;;  %v3638_v27 = vrot.slane %v7628_v37, %v8496_v22 }
 0x6c6   :  { %v3474_v41 = vmul.f32 %v8502_v30, %v3448_v7  ;;  %v3475_v62 = vmul.f32 %v8503_v32, %v3447_v31  ;;  %v8511_v7 = vrot.slane %v7603_v45, %v8496_v22  ;;  %v3642_v31 = vrot.slane %v7628_v37, %v8498_v57 }
 0x6c7   :  { %v3500_v23 = vpop.permute.xlu0 %3499  ;;  %v3422_v47 = vadd.f32 %v3418_v12, %v3364_v38 }
 0x6c8   :  { %v3498_v10 = vpop.permute.xlu1 %3497  ;;  %v3478_v26 = vadd.f32 %v3474_v41, %v3420_v54  ;;  %v3479_v17 = vadd.f32 %v3475_v62, %v3421_v2 }
 0x6c9   :  { %v3507_v28 = vsel %vm1230_vm6, %v3498_v10, %v3500_v23 }
 0x6ca   :  { %v3531_v33 = vmul.f32 %v8504_v29, %v3507_v28 }
 0x6cb   :  { %v3504_v60 = vpop.permute.xlu0 %3503 }
 0x6cc   :  { %v3502_v18 = vpop.permute.xlu1 %3501  ;;  %v3508_v44 = vsel %vm1230_vm6, %v3504_v60, %v3498_v10  ;;  %v8507_v10 = vrot.slane %v7590_v19, %v8496_v22  ;;  %v3535_v40 = vadd.f32 %v3531_v33, %v3477_v63  ;;  %v8512_v22 = vrot.slane %v7628_v37, %v8497_v24 }
 0x6cd   :  { %v3506_v5 = vsel %vm1230_vm6, %v3500_v23, %v3502_v18  ;;  %v3505_v36 = vsel %vm1230_vm6, %v3502_v18, %v3504_v60  ;;  %v3476_v18 = vmul.f32 %v8505_v14, %v3450_v50  ;;  %v3534_v49 = vmul.f32 %v8509_v61, %v3508_v44 }
 0x6ce   :  { %v3532_v8 = vmul.f32 %v8506_v43, %v3506_v5  ;;  %v3533_v60 = vmul.f32 %v8507_v10, %v3505_v36 }
 0x6cf   :  { %v3558_v51 = vpop.permute.xlu0 %3557  ;;  %v3480_v13 = vadd.f32 %v3476_v18, %v3422_v47 }
 0x6d0   :  { %v3556_v15 = vpop.permute.xlu1 %3555  ;;  %v3536_v28 = vadd.f32 %v3532_v8, %v3478_v26  ;;  %v3537_v9 = vadd.f32 %v3533_v60, %v3479_v17 }
 0x6d1   :  { %v3565_v6 = vsel %vm1334_vm7, %v3556_v15, %v3558_v51  ;;  %v3538_v12 = vadd.f32 %v3534_v49, %v3480_v13 }
 0x6d2   :  { %v3589_v1 = vmul.f32 %v8508_v35, %v3565_v6 }
 0x6d3   :  { %v3562_v23 = vpop.permute.xlu0 %3561 }
 0x6d4   :  { %v3560_v0 = vpop.permute.xlu1 %3559  ;;  %v3566_v16 = vsel %vm1334_vm7, %v3562_v23, %v3556_v15  ;;  %v3593_v54 = vadd.f32 %v3589_v1, %v3535_v40  ;;  %v3983_v40 = vld [vmem:[%s7897_s0] sm:$0xff] }
 0x6d5   :  { %v3564_v4 = vsel %vm1334_vm7, %v3558_v51, %v3560_v0  ;;  %v3563_v46 = vsel %vm1334_vm7, %v3560_v0, %v3562_v23  ;;  %v3592_v19 = vmul.f32 %v3584_v25, %v3566_v16 }
 0x6d6   :  { %v3590_v42 = vmul.f32 %v8510_v34, %v3564_v4  ;;  %v3591_v51 = vmul.f32 %v8511_v7, %v3563_v46 }
 0x6d7   :  { %v3616_v38 = vpop.permute.xlu0 %3615  ;;  %v3596_v25 = vadd.f32 %v3592_v19, %v3538_v12 }
 0x6d8   :  { %v3614_v15 = vpop.permute.xlu1 %3613  ;;  %v3594_v11 = vadd.f32 %v3590_v42, %v3536_v28  ;;  %v3595_v50 = vadd.f32 %v3591_v51, %v3537_v9  ;;  %v3984_v42 = vld [vmem:[%s7897_s0 + $0x20] sm:$0xff] }
 0x6d9   :  { %v3623_v48 = vsel %vm1438_vm8, %v3614_v15, %v3616_v38  ;;  %v8513_v28 = vld [vmem:[#allocation46_spill] sm:$0xff] }
 0x6da   :  { %v3647_v58 = vmul.f32 %v8512_v22, %v3623_v48 }
 0x6db   :  { %v3620_v45 = vpop.permute.xlu0 %3619 }
 0x6dc   :  { %v3651_v30 = vadd.f32 %v3647_v58, %v3593_v54  ;;  %v3618_v41 = vpop.permute.xlu1 %3617  ;;  %v3624_v36 = vsel %vm1438_vm8, %v3620_v45, %v3614_v15  ;;  %v8514_v54 = vld [vmem:[#allocation66_spill] sm:$0xff] }
 0x6dd   :  { %v3622_v5 = vsel %vm1438_vm8, %v3616_v38, %v3618_v41  ;;  %v3621_v57 = vsel %vm1438_vm8, %v3618_v41, %v3620_v45  ;;  %v3650_v32 = vmul.f32 %v3642_v31, %v3624_v36  ;;  %v8515_v58 = vld [vmem:[#allocation26_spill] sm:$0xff]  ;;  %v8518_v36 = vld [vmem:[#allocation83_spill] sm:$0xff] }
 0x6de   :  { %v3655_v6 = vsub.f32 0.0, %v3651_v30  ;;  %v3648_v2 = vmul.f32 %v3634_v39, %v3622_v5  ;;  %v3649_v37 = vmul.f32 %v3638_v27, %v3621_v57  ;;  %v8517_v30 = vld [vmem:[#allocation71_spill] sm:$0xff] }
 0x6df   :  { %v3654_v44 = vadd.f32 %v3650_v32, %v3596_v25  ;;  %v3990_v5 = vld [vmem:[%s7897_s0 + $0x68] sm:$0xff] }
 0x6e0   :  { %v3659_v62 = vmul.f32 1.442695, %v3655_v6  ;;  %v3652_v29 = vadd.f32 %v3648_v2, %v3594_v11  ;;  %v3653_v33 = vadd.f32 %v3649_v37, %v3595_v50  ;;  %v8516_v11 = vld [vmem:[#allocation62_spill] sm:$0xff]  ;;  %v8519_v2 = vld [vmem:[#allocation69_spill] sm:$0xff]  ;;  %v8520_v32 = vld [vmem:[#allocation47_spill] sm:$0xff] }
 0x6e1   :  { %v3658_v63 = vsub.f32 0.0, %v3654_v44  ;;  %v3991_v44 = vld [vmem:[%s7897_s0 + $0x10] sm:$0xff] }
 0x6e2   :  { %3967 = vpow2.f32 %v3659_v62  ;;  %v3656_v0 = vsub.f32 0.0, %v3652_v29  ;;  %v3657_v23 = vsub.f32 0.0, %v3653_v33  ;;  %v8521_v29 = vld [vmem:[#allocation48_spill] sm:$0xff] }
 0x6e3   :  { %v3665_v4 = vmul.f32 1.442695, %v3658_v63 }
 0x6e4   :  { %v3661_v14 = vmul.f32 1.442695, %v3656_v0  ;;  %v3663_v18 = vmul.f32 1.442695, %v3657_v23  ;;  %v3992_v23 = vld [vmem:[%s7897_s0 + $0x18] sm:$0xff] }
 0x6e6   :  { %3969 = vpow2.f32 %v3661_v14  ;;  %v3993_v14 = vld [vmem:[%s7897_s0 + $0x30] sm:$0xff] }
 0x6e7   :  { %3971 = vpow2.f32 %v3663_v18 }
 0x6e8   :  { %3973 = vpow2.f32 %v3665_v4  ;;  %v3994_v4 = vld [vmem:[%s7897_s0 + $0x38] sm:$0xff] }
 0x6ec   :  { %v3968_v3 = vpop.eup %3967 }
 0x6ed   :  { %v3667_v46 = vadd.f32 1.0, %v3968_v3 }
 0x6ef   :  { %3975 = vrcp.f32 %v3667_v46  ;;  %v3995_v46 = vld [vmem:[%s7897_s0 + $0x50] sm:$0xff] }
 0x6f0   :  { %v3970_v39 = vpop.eup %3969 }
 0x6f1   :  { %v3972_v43 = vpop.eup %3971  ;;  %v3668_v8 = vadd.f32 1.0, %v3970_v39 }
 0x6f2   :  { %v3974_v10 = vpop.eup %3973  ;;  %v3669_v60 = vadd.f32 1.0, %v3972_v43  ;;  %v3996_v43 = vld [vmem:[%s7897_s0 + $0x58] sm:$0xff] }
 0x6f3   :  { %3977 = vrcp.f32 %v3668_v8  ;;  %v3670_v35 = vadd.f32 1.0, %v3974_v10  ;;  %v3997_v10 = vld [vmem:[%s7897_s0 + $0x70] sm:$0xff] }
 0x6f4   :  { %3979 = vrcp.f32 %v3669_v60 }
 0x6f5   :  { %3981 = vrcp.f32 %v3670_v35  ;;  %v3998_v35 = vld [vmem:[%s7897_s0 + $0x78] sm:$0xff] }
 0x6f9   :  { %v3976_v1 = vpop.eup %3975 }
 0x6fa   :  { %v3682_v16 = vrot.slane %v3976_v1, %v8497_v24 }
 0x6fc   :  { %v3695_v47 = vmul.f32 %v3682_v16, %v7329_v59  ;;  %v3699_v26 = vmul.f32 %v3682_v16, %v7323_v52  ;;  %v3703_v61 = vmul.f32 %v3682_v16, %v7345_v55  ;;  %v3707_v49 = vmul.f32 %v3682_v16, %v7381_v56  ;;  %v3985_v52 = vld [vmem:[%s7897_s0 + $0x40] sm:$0xff] }
 0x6fd   :  { %v3978_v27 = vpop.eup %3977  ;;  %v3986_v55 = vld [vmem:[%s7897_s0 + $0x60] sm:$0xff] }
 0x6fe   :  { %v3980_v17 = vpop.eup %3979  ;;  %v3711_v34 = vadd.f32 %v3983_v40, %v3695_v47  ;;  %v3715_v7 = vadd.f32 %v3984_v42, %v3699_v26  ;;  %v3719_v59 = vadd.f32 %v3985_v52, %v3703_v61  ;;  %v3723_v56 = vadd.f32 %v3986_v55, %v3707_v49 }
 0x6ff   :  { %v3982_v51 = vpop.eup %3981  ;;  %v3686_v15 = vrot.slane %v3978_v27, %v8497_v24  ;;  %v3690_v38 = vrot.slane %v3980_v17, %v8497_v24 }
 0x700   :  { %3727 = vst [vmem:[%s7906_s9] sm:$0xff] %v3711_v34  ;;  %3731 = vst [vmem:[%s7906_s9 + $0x20] sm:$0xff] %v3715_v7  ;;  %v3694_v13 = vrot.slane %v3982_v51, %v8497_v24  ;;  %v3987_v24 = vld [vmem:[%s7897_s0 + $0x8] sm:$0xff] }
 0x701   :  { %3735 = vst [vmem:[%s7906_s9 + $0x40] sm:$0xff] %v3719_v59  ;;  %3739 = vst [vmem:[%s7906_s9 + $0x60] sm:$0xff] %v3723_v56  ;;  %v3696_v19 = vmul.f32 %v3686_v15, %v7332_v20  ;;  %v3700_v48 = vmul.f32 %v3686_v15, %v7326_v53  ;;  %v3704_v31 = vmul.f32 %v3686_v15, %v7348_v21  ;;  %v3988_v53 = vld [vmem:[%s7897_s0 + $0x28] sm:$0xff] }
 0x702   :  { %v3708_v9 = vmul.f32 %v3686_v15, %v8513_v28  ;;  %v3697_v22 = vmul.f32 %v3690_v38, %v8514_v54  ;;  %v3698_v12 = vmul.f32 %v3694_v13, %v8515_v58  ;;  %v3701_v50 = vmul.f32 %v3690_v38, %v8516_v11  ;;  %v3989_v21 = vld [vmem:[%s7897_s0 + $0x48] sm:$0xff] }
 0x703   :  { %v3702_v41 = vmul.f32 %v3694_v13, %v8517_v30  ;;  %v3712_v45 = vadd.f32 %v3987_v24, %v3696_v19  ;;  %v3716_v20 = vadd.f32 %v3988_v53, %v3700_v48  ;;  %v3720_v25 = vadd.f32 %v3989_v21, %v3704_v31 }
 0x704   :  { %v3724_v57 = vadd.f32 %v3990_v5, %v3708_v9  ;;  %v3705_v6 = vmul.f32 %v3690_v38, %v8518_v36  ;;  %v3706_v37 = vmul.f32 %v3694_v13, %v8519_v2  ;;  %v3709_v62 = vmul.f32 %v3690_v38, %v8520_v32 }
 0x705   :  { %v3710_v33 = vmul.f32 %v3694_v13, %v8521_v29  ;;  %3728 = vst [vmem:[%s7906_s9 + $0x8] sm:$0xff] %v3712_v45  ;;  %3732 = vst [vmem:[%s7906_s9 + $0x28] sm:$0xff] %v3716_v20  ;;  %v3713_v0 = vadd.f32 %v3991_v44, %v3697_v22  ;;  %v3714_v63 = vadd.f32 %v3992_v23, %v3698_v12 }
 0x706   :  { %3736 = vst [vmem:[%s7906_s9 + $0x48] sm:$0xff] %v3720_v25  ;;  %3740 = vst [vmem:[%s7906_s9 + $0x68] sm:$0xff] %v3724_v57  ;;  %v3717_v18 = vadd.f32 %v3993_v14, %v3701_v50  ;;  %v3718_v3 = vadd.f32 %v3994_v4, %v3702_v41  ;;  %v3721_v39 = vadd.f32 %v3995_v46, %v3705_v6 }
 0x707   :  { %v3722_v8 = vadd.f32 %v3996_v43, %v3706_v37  ;;  %v3725_v60 = vadd.f32 %v3997_v10, %v3709_v62  ;;  %v3726_v1 = vadd.f32 %v3998_v35, %v3710_v33  ;;  %3729 = vst [vmem:[%s7906_s9 + $0x10] sm:$0xff] %v3713_v0  ;;  %3730 = vst [vmem:[%s7906_s9 + $0x18] sm:$0xff] %v3714_v63 }
 0x708   :  { %3733 = vst [vmem:[%s7906_s9 + $0x30] sm:$0xff] %v3717_v18  ;;  %3734 = vst [vmem:[%s7906_s9 + $0x38] sm:$0xff] %v3718_v3 }
 0x709   :  { %3737 = vst [vmem:[%s7906_s9 + $0x50] sm:$0xff] %v3721_v39  ;;  %3738 = vst [vmem:[%s7906_s9 + $0x58] sm:$0xff] %v3722_v8 }
 0x70a   :  { %3741 = vst [vmem:[%s7906_s9 + $0x70] sm:$0xff] %v3725_v60  ;;  %3742 = vst [vmem:[%s7906_s9 + $0x78] sm:$0xff] %v3726_v1 }
 0x70b   :  { %3747 = vsyncpa [#allocation4], 1 }

</bundles_post_ra>
